<compile_context>
chip_gen: v5e
topology: v5e:2x2
jax: 0.10.0
libtpu: 0.0.40
codegen_flags: <defaults>
</compile_context>

<pallas_src>
import jax
import jax.numpy as jnp
from jax.experimental import pallas as pl
from jax.experimental.pallas import tpu as pltpu

IMAGE_SIZE = 256          # flattened input features (e.g. 1 x 16 x 16)
H0, H1 = 1024, 512
H2 = 64                   # true fc2 width
H2_PAD = 128              # fc2 width padded to a full lane tile
OUT_PAD = 128             # scalar output padded to a full lane tile (column 0 is real)


def _mlp_kernel(x_ref, w0_ref, b0_ref, w1_ref, b1_ref,
                w2_ref, b2_ref, w3_ref, b3_ref, o_ref):
    # Cast x (f32 from HBM) to bf16 for the MXU; cheap VPU op, saves a wrapper pass.
    x = x_ref[...].astype(jnp.bfloat16)
    # fc0 + relu : bf16 operands on the MXU, f32 accumulation, f32 bias/ReLU on the VPU.
    h = jnp.dot(x, w0_ref[...], preferred_element_type=jnp.float32)
    h = jnp.maximum(h + b0_ref[...], 0.0)
    # fc1 + relu
    h = jnp.dot(h.astype(jnp.bfloat16), w1_ref[...], preferred_element_type=jnp.float32)
    h = jnp.maximum(h + b1_ref[...], 0.0)
    # dropout(p=0.5): identity in eval mode.
    # TODO(synk): training-mode dropout (Bernoulli mask via pltpu.prng_*) not emitted.
    # fc2 + relu (output padded 64 -> 128 lanes; padded columns are exactly 0)
    h = jnp.dot(h.astype(jnp.bfloat16), w2_ref[...], preferred_element_type=jnp.float32)
    h = jnp.maximum(h + b2_ref[...], 0.0)
    # fc3 (output padded 1 -> 128 lanes; column 0 is the real output)
    o = jnp.dot(h.astype(jnp.bfloat16), w3_ref[...], preferred_element_type=jnp.float32)
    o_ref[...] = o + b3_ref[...]


def prepare_params(params):
    """One-time parameter prep (hoisted out of the per-call forward):
    pad the 64-wide fc2/fc3 dims to 128 lanes and cast matmul operands to bf16
    (biases stay f32 and are added in the f32 accumulator)."""
    w0, b0, w1, b1, w2, b2, w3, b3 = params
    w2p = jnp.zeros((H1, H2_PAD), jnp.float32).at[:, :H2].set(w2)
    b2p = jnp.zeros((1, H2_PAD), jnp.float32).at[:, :H2].set(b2.reshape(1, -1))
    w3p = jnp.zeros((H2_PAD, OUT_PAD), jnp.float32).at[:H2, 0:1].set(w3)
    b3p = jnp.zeros((1, OUT_PAD), jnp.float32).at[:, 0:1].set(b3.reshape(1, 1))
    return (w0.astype(jnp.bfloat16), b0.reshape(1, -1).astype(jnp.float32),
            w1.astype(jnp.bfloat16), b1.reshape(1, -1).astype(jnp.float32),
            w2p.astype(jnp.bfloat16), b2p,
            w3p.astype(jnp.bfloat16), b3p)


def _pick_batch_tile(B):
    if B >= 256:
        return 256                          # fills the 256-wide MXU M axis on v6e/v7x
    return max(16, ((B + 15) // 16) * 16)   # small batch: one grid step, sublane aligned


def model_a_forward(x, prepped_params):
    """x: any shape whose trailing dims flatten to IMAGE_SIZE (NCHW ok).
    Returns a 1-D array of length B, matching `self.fc3(x).view(-1)`."""
    x2d = x.reshape(-1, IMAGE_SIZE).astype(jnp.float32)
    B = x2d.shape[0]
    TB = _pick_batch_tile(B)
    Bp = ((B + TB - 1) // TB) * TB
    if Bp != B:
        x2d = jnp.pad(x2d, ((0, Bp - B), (0, 0)))

    w0, b0, w1, b1, w2, b2, w3, b3 = prepped_params
    n_tiles = Bp // TB

    def _const(shape):
        # Same block index every grid step -> Pallas keeps the tile VMEM-resident
        # (weights are not re-streamed from HBM per step).
        return pl.BlockSpec(shape, lambda i: (0, 0))

    out = pl.pallas_call(
        _mlp_kernel,
        out_shape=jax.ShapeDtypeStruct((Bp, OUT_PAD), jnp.float32),
        grid=(n_tiles,),
        in_specs=[
            pl.BlockSpec((TB, IMAGE_SIZE), lambda i: (i, 0)),   # x: tiled over batch
            _const((IMAGE_SIZE, H0)), _const((1, H0)),
            _const((H0, H1)), _const((1, H1)),
            _const((H1, H2_PAD)), _const((1, H2_PAD)),
            _const((H2_PAD, OUT_PAD)), _const((1, OUT_PAD)),
        ],
        out_specs=pl.BlockSpec((TB, OUT_PAD), lambda i: (i, 0)),
        compiler_params=pltpu.CompilerParams(
            dimension_semantics=("parallel",)),   # megacore sharding on v7x; no-op on v5e/v6e
    )(x2d, w0, b0, w1, b1, w2, b2, w3, b3)

    return out[:B, 0]  # .view(-1)


def init_params(key):
    """Deterministic init matching nn.Linear's default U(-1/sqrt(fan_in), +1/sqrt(fan_in))."""
    dims = [(IMAGE_SIZE, H0), (H0, H1), (H1, H2), (H2, 1)]
    params = []
    for i, (fin, fout) in enumerate(dims):
        kw, kb = jax.random.split(jax.random.fold_in(key, i))
        bound = 1.0 / (fin ** 0.5)
        w = jax.random.uniform(kw, (fin, fout), jnp.float32, -bound, bound)
        b = jax.random.uniform(kb, (fout,), jnp.float32, -bound, bound)
        params += [w, b]
    return tuple(params)


def _reference_f32(x, params):
    """Pure-f32 reference (matches the PyTorch forward exactly)."""
    w0, b0, w1, b1, w2, b2, w3, b3 = params
    h = x.reshape(-1, IMAGE_SIZE).astype(jnp.float32)
    h = jnp.maximum(h @ w0 + b0, 0.0)
    h = jnp.maximum(h @ w1 + b1, 0.0)
    h = jnp.maximum(h @ w2 + b2, 0.0)
    return (h @ w3 + b3).reshape(-1)


def _reference_mixed(x, params):
    """Mirrors the kernel's numerics: bf16 matmul operands, f32 accumulation, f32 bias/ReLU."""
    w0, b0, w1, b1, w2, b2, w3, b3 = params
    bf, f32 = jnp.bfloat16, jnp.float32
    h = x.reshape(-1, IMAGE_SIZE).astype(f32).astype(bf)
    h = jnp.maximum(jnp.dot(h, w0.astype(bf), preferred_element_type=f32) + b0, 0.0)
    h = jnp.maximum(jnp.dot(h.astype(bf), w1.astype(bf), preferred_element_type=f32) + b1, 0.0)
    h = jnp.maximum(jnp.dot(h.astype(bf), w2.astype(bf), preferred_element_type=f32) + b2, 0.0)
    return (jnp.dot(h.astype(bf), w3.astype(bf), preferred_element_type=f32) + b3).reshape(-1)


if __name__ == "__main__":
    key = jax.random.PRNGKey(0)
    params = init_params(key)
    prepped = prepare_params(params)   # one-time prep, hoisted out of the forward

    # small NCHW-style input: batch=8, channels=1, 16x16 -> image_size=256
    x = jax.random.normal(jax.random.fold_in(key, 100), (8, 1, 16, 16), jnp.float32)

    y = model_a_forward(x, prepped)
    y = jax.block_until_ready(y)
    assert y.shape == (8,)

    # Tight check vs a reference with identical mixed-precision numerics.
    y_mixed = _reference_mixed(x, params)
    assert jnp.allclose(y, y_mixed, atol=2e-3, rtol=2e-3), "mismatch vs mixed-precision reference"
    # Looser sanity check vs the pure-f32 (PyTorch-equivalent) reference.
    y_f32 = _reference_f32(x, params)
    assert jnp.allclose(y, y_f32, atol=5e-2, rtol=5e-2), "mismatch vs f32 reference"

    print("KERNEL_OK")
</pallas_src>

<mosaic_0001>
module attributes {stable_mosaic.version = 11 : i64} {
  func.func @_mlp_kernel(%arg0: i32, %arg1: memref<16x256xf32, #tpu.memory_space<vmem>>, %arg2: memref<256x1024xbf16, #tpu.memory_space<vmem>>, %arg3: memref<1x1024xf32, #tpu.memory_space<vmem>>, %arg4: memref<1024x512xbf16, #tpu.memory_space<vmem>>, %arg5: memref<1x512xf32, #tpu.memory_space<vmem>>, %arg6: memref<512x128xbf16, #tpu.memory_space<vmem>>, %arg7: memref<1x128xf32, #tpu.memory_space<vmem>>, %arg8: memref<128x128xbf16, #tpu.memory_space<vmem>>, %arg9: memref<1x128xf32, #tpu.memory_space<vmem>>, %arg10: memref<16x128xf32, #tpu.memory_space<vmem>>) attributes {dimension_semantics = [#tpu.dimension_semantics<parallel>], iteration_bounds = array<i64: 1>, scalar_prefetch = 0 : i64, scratch_operands = 0 : i64, tpu.core_type = #tpu.core_type<tc>, window_params = [{transform_indices = @transform_0, window_bounds = array<i64: 16, 256>}, {pipeline_mode = #tpu.pipeline_mode<synchronous>, transform_indices = @transform_1, window_bounds = array<i64: 256, 1024>}, {pipeline_mode = #tpu.pipeline_mode<synchronous>, transform_indices = @transform_2, window_bounds = array<i64: 1, 1024>}, {pipeline_mode = #tpu.pipeline_mode<synchronous>, transform_indices = @transform_3, window_bounds = array<i64: 1024, 512>}, {pipeline_mode = #tpu.pipeline_mode<synchronous>, transform_indices = @transform_4, window_bounds = array<i64: 1, 512>}, {pipeline_mode = #tpu.pipeline_mode<synchronous>, transform_indices = @transform_5, window_bounds = array<i64: 512, 128>}, {pipeline_mode = #tpu.pipeline_mode<synchronous>, transform_indices = @transform_6, window_bounds = array<i64: 1, 128>}, {pipeline_mode = #tpu.pipeline_mode<synchronous>, transform_indices = @transform_7, window_bounds = array<i64: 128, 128>}, {pipeline_mode = #tpu.pipeline_mode<synchronous>, transform_indices = @transform_8, window_bounds = array<i64: 1, 128>}, {transform_indices = @transform_9, window_bounds = array<i64: 16, 128>}]} {
    %c0 = arith.constant 0 : index
    %c0_0 = arith.constant 0 : index
    %0 = vector.load %arg1[%c0, %c0_0] : memref<16x256xf32, #tpu.memory_space<vmem>>, vector<16x256xf32>
    %1 = arith.truncf %0 : vector<16x256xf32> to vector<16x256xbf16>
    %c0_1 = arith.constant 0 : index
    %c0_2 = arith.constant 0 : index
    %2 = vector.load %arg2[%c0_1, %c0_2] : memref<256x1024xbf16, #tpu.memory_space<vmem>>, vector<256x1024xbf16>
    %cst = arith.constant dense<0.000000e+00> : vector<16x1024xf32>
    %3 = tpu.matmul %1, %2, %cst {dimension_numbers = #tpu.dot_dimension_numbers<[1], [0], [0], [1], [0, 0, 1, 1], [], []>} : vector<16x256xbf16>, vector<256x1024xbf16>, vector<16x1024xf32> -> vector<16x1024xf32>
    %c0_3 = arith.constant 0 : index
    %c0_4 = arith.constant 0 : index
    %4 = vector.load %arg3[%c0_3, %c0_4] : memref<1x1024xf32, #tpu.memory_space<vmem>>, vector<1x1024xf32>
    %5 = vector.broadcast %4 : vector<1x1024xf32> to vector<16x1024xf32>
    %6 = arith.addf %3, %5 : vector<16x1024xf32>
    %cst_5 = arith.constant 0.000000e+00 : f32
    %7 = vector.broadcast %cst_5 : f32 to vector<16x1024xf32>
    %8 = arith.maximumf %6, %7 : vector<16x1024xf32>
    %9 = arith.truncf %8 : vector<16x1024xf32> to vector<16x1024xbf16>
    %c0_6 = arith.constant 0 : index
    %c0_7 = arith.constant 0 : index
    %10 = vector.load %arg4[%c0_6, %c0_7] : memref<1024x512xbf16, #tpu.memory_space<vmem>>, vector<1024x512xbf16>
    %cst_8 = arith.constant dense<0.000000e+00> : vector<16x512xf32>
    %11 = tpu.matmul %9, %10, %cst_8 {dimension_numbers = #tpu.dot_dimension_numbers<[1], [0], [0], [1], [0, 0, 1, 1], [], []>} : vector<16x1024xbf16>, vector<1024x512xbf16>, vector<16x512xf32> -> vector<16x512xf32>
    %c0_9 = arith.constant 0 : index
    %c0_10 = arith.constant 0 : index
    %12 = vector.load %arg5[%c0_9, %c0_10] : memref<1x512xf32, #tpu.memory_space<vmem>>, vector<1x512xf32>
    %13 = vector.broadcast %12 : vector<1x512xf32> to vector<16x512xf32>
    %14 = arith.addf %11, %13 : vector<16x512xf32>
    %cst_11 = arith.constant 0.000000e+00 : f32
    %15 = vector.broadcast %cst_11 : f32 to vector<16x512xf32>
    %16 = arith.maximumf %14, %15 : vector<16x512xf32>
    %17 = arith.truncf %16 : vector<16x512xf32> to vector<16x512xbf16>
    %c0_12 = arith.constant 0 : index
    %c0_13 = arith.constant 0 : index
    %18 = vector.load %arg6[%c0_12, %c0_13] : memref<512x128xbf16, #tpu.memory_space<vmem>>, vector<512x128xbf16>
    %cst_14 = arith.constant dense<0.000000e+00> : vector<16x128xf32>
    %19 = tpu.matmul %17, %18, %cst_14 {dimension_numbers = #tpu.dot_dimension_numbers<[1], [0], [0], [1], [0, 0, 1, 1], [], []>} : vector<16x512xbf16>, vector<512x128xbf16>, vector<16x128xf32> -> vector<16x128xf32>
    %c0_15 = arith.constant 0 : index
    %c0_16 = arith.constant 0 : index
    %20 = vector.load %arg7[%c0_15, %c0_16] : memref<1x128xf32, #tpu.memory_space<vmem>>, vector<1x128xf32>
    %21 = vector.broadcast %20 : vector<1x128xf32> to vector<16x128xf32>
    %22 = arith.addf %19, %21 : vector<16x128xf32>
    %cst_17 = arith.constant 0.000000e+00 : f32
    %23 = vector.broadcast %cst_17 : f32 to vector<16x128xf32>
    %24 = arith.maximumf %22, %23 : vector<16x128xf32>
    %25 = arith.truncf %24 : vector<16x128xf32> to vector<16x128xbf16>
    %c0_18 = arith.constant 0 : index
    %c0_19 = arith.constant 0 : index
    %26 = vector.load %arg8[%c0_18, %c0_19] : memref<128x128xbf16, #tpu.memory_space<vmem>>, vector<128x128xbf16>
    %cst_20 = arith.constant dense<0.000000e+00> : vector<16x128xf32>
    %27 = tpu.matmul %25, %26, %cst_20 {dimension_numbers = #tpu.dot_dimension_numbers<[1], [0], [0], [1], [0, 0, 1, 1], [], []>} : vector<16x128xbf16>, vector<128x128xbf16>, vector<16x128xf32> -> vector<16x128xf32>
    %c0_21 = arith.constant 0 : index
    %c0_22 = arith.constant 0 : index
    %28 = vector.load %arg9[%c0_21, %c0_22] : memref<1x128xf32, #tpu.memory_space<vmem>>, vector<1x128xf32>
    %29 = vector.broadcast %28 : vector<1x128xf32> to vector<16x128xf32>
    %30 = arith.addf %27, %29 : vector<16x128xf32>
    %c0_23 = arith.constant 0 : index
    %c0_24 = arith.constant 0 : index
    %31 = vector.load %arg10[%c0_23, %c0_24] : memref<16x128xf32, #tpu.memory_space<vmem>>, vector<16x128xf32>
    tpu.vector_store %arg10[%c0_23, %c0_24], %30 {strides = array<i32>} : memref<16x128xf32, #tpu.memory_space<vmem>>, vector<16x128xf32>,
    return
  }
  func.func @transform_0(%arg0: i32) -> (i32, i32) {
    %c0_i32 = arith.constant 0 : i32
    %c0_i32_0 = arith.constant 0 : i32
    return %arg0, %c0_i32 : i32, i32
  }
  func.func @transform_1(%arg0: i32) -> (i32, i32) {
    %c0_i32 = arith.constant 0 : i32
    %c0_i32_0 = arith.constant 0 : i32
    %c0_i32_1 = arith.constant 0 : i32
    return %c0_i32, %c0_i32_0 : i32, i32
  }
  func.func @transform_2(%arg0: i32) -> (i32, i32) {
    %c0_i32 = arith.constant 0 : i32
    %c0_i32_0 = arith.constant 0 : i32
    %c0_i32_1 = arith.constant 0 : i32
    return %c0_i32, %c0_i32_0 : i32, i32
  }
  func.func @transform_3(%arg0: i32) -> (i32, i32) {
    %c0_i32 = arith.constant 0 : i32
    %c0_i32_0 = arith.constant 0 : i32
    %c0_i32_1 = arith.constant 0 : i32
    return %c0_i32, %c0_i32_0 : i32, i32
  }
  func.func @transform_4(%arg0: i32) -> (i32, i32) {
    %c0_i32 = arith.constant 0 : i32
    %c0_i32_0 = arith.constant 0 : i32
    %c0_i32_1 = arith.constant 0 : i32
    return %c0_i32, %c0_i32_0 : i32, i32
  }
  func.func @transform_5(%arg0: i32) -> (i32, i32) {
    %c0_i32 = arith.constant 0 : i32
    %c0_i32_0 = arith.constant 0 : i32
    %c0_i32_1 = arith.constant 0 : i32
    return %c0_i32, %c0_i32_0 : i32, i32
  }
  func.func @transform_6(%arg0: i32) -> (i32, i32) {
    %c0_i32 = arith.constant 0 : i32
    %c0_i32_0 = arith.constant 0 : i32
    %c0_i32_1 = arith.constant 0 : i32
    return %c0_i32, %c0_i32_0 : i32, i32
  }
  func.func @transform_7(%arg0: i32) -> (i32, i32) {
    %c0_i32 = arith.constant 0 : i32
    %c0_i32_0 = arith.constant 0 : i32
    %c0_i32_1 = arith.constant 0 : i32
    return %c0_i32, %c0_i32_0 : i32, i32
  }
  func.func @transform_8(%arg0: i32) -> (i32, i32) {
    %c0_i32 = arith.constant 0 : i32
    %c0_i32_0 = arith.constant 0 : i32
    %c0_i32_1 = arith.constant 0 : i32
    return %c0_i32, %c0_i32_0 : i32, i32
  }
  func.func @transform_9(%arg0: i32) -> (i32, i32) {
    %c0_i32 = arith.constant 0 : i32
    %c0_i32_0 = arith.constant 0 : i32
    return %arg0, %c0_i32 : i32, i32
  }
}

</mosaic_0001>

<bundles_post_ra>
// kernel: tpu_custom_call.1
= control target key start
LH: loop header
LB: loop body
LE: loop exit
PB: predicated region body
PF: predicated region fallthrough
CT: control target
= control target key end

     0   :  { %14 = vsyncpa [#allocation3], 0  ;;  %s6153_s0 = inlined_call_operand.hbm [shape: f32[16,256], index: 0, kind: input, shape index: {}]   ;;  %s6154_s1 = inlined_call_operand.hbm [shape: bf16[256,1024], index: 1, kind: input, shape index: {}]   ;;  %s6155_s2 = inlined_call_operand.hbm [shape: f32[1,1024], index: 2, kind: input, shape index: {}]   ;;  %s6156_s3 = inlined_call_operand.hbm [shape: bf16[1024,512], index: 3, kind: input, shape index: {}]   ;;  %s6157_s4 = inlined_call_operand.hbm [shape: f32[1,512], index: 4, kind: input, shape index: {}]   ;;  %s6158_s5 = inlined_call_operand.hbm [shape: bf16[512,128], index: 5, kind: input, shape index: {}]   ;;  %s6159_s6 = inlined_call_operand.vmem [shape: f32[1,128], index: 6, kind: input, shape index: {}]   ;;  %s6160_s7 = inlined_call_operand.hbm [shape: bf16[128,128], index: 7, kind: input, shape index: {}]   ;;  %s6161_s8 = inlined_call_operand.vmem [shape: f32[1,128], index: 8, kind: input, shape index: {}]   ;;  %s6162_s9 = inlined_call_operand.hbm [shape: f32[16,128], index: 9, kind: output, shape index: {}]  }
   0x1   :  { %15 = vsyncpa [#allocation6], 0 }
   0x2   :  { %16 = vsyncpa [#allocation9], 0 }
   0x3   :  { %17 = vsyncpa [#allocation12], 0  ;;  %s36_s11 = sshll.u32 %s6154_s1, 4  ;;  %s37_s11 = int_to_ptr.hbm [resolvable:$true] %s36_s11 }
   0x4   :  { %18 = vsyncpa [#allocation4], 0  ;;  %s5949_s12 = smov [#allocation5]   ;;  %s5950_s14 = smov 512  }
   0x5   :  { %s38_s13 = sshll.u32 %s5949_s12, 4  ;;  %s5951_s15 = smov 32   ;;  %s39_s13 = int_to_ptr.vmem [resolvable:$true] %s38_s13 }
   0x6   :  { %44 = dma.hbm_to_vmem [thread:$0]  %s37_s11, 16384, %s39_s13, [#allocation6], %s5950_s14, %s5950_s14, %s5951_s15  }
   0x7   :  { %s60_s18 = sshll.u32 %s6156_s3, 4  ;;  %s5952_s19 = smov [#allocation8]   ;;  %s61_s18 = int_to_ptr.hbm [resolvable:$true] %s60_s18 }
   0x8   :  { %s62_s20 = sshll.u32 %s5952_s19, 4  ;;  %s84_s23 = sshll.u32 %s6158_s5, 4  ;;  %s63_s20 = int_to_ptr.vmem [resolvable:$true] %s62_s20  ;;  %s85_s23 = int_to_ptr.hbm [resolvable:$true] %s84_s23 }
   0x9   :  { %s5953_s1 = smov 256   ;;  %s5954_s24 = smov 16  }
   0xa   :  { %68 = dma.hbm_to_vmem [thread:$0]  %s61_s18, 32768, %s63_s20, [#allocation9], %s5953_s1, %s5953_s1, %s5954_s24  }
   0xb   :  { %s5955_s25 = smov [#allocation11]   ;;  %s23_s29 = sshll.u32 %s6153_s0, 4  ;;  %s24_s29 = int_to_ptr.hbm [resolvable:$true] %s23_s29 }
   0xc   :  { %s86_s26 = sshll.u32 %s5955_s25, 4  ;;  %s5956_s3 = smov 64   ;;  %s87_s26 = int_to_ptr.vmem [resolvable:$true] %s86_s26 }
   0xd   :  { %s5957_s30 = smov 4   ;;  %s5958_s10 = smov [#allocation2]  }
   0xe   :  { %92 = dma.hbm_to_vmem [thread:$0]  %s85_s23, 4096, %s87_s26, [#allocation12], %s5956_s3, %s5956_s3, %s5957_s30  }
   0xf   :  { %s25_s11 = sshll.u32 %s5958_s10, 4  ;;  %s50_s13 = sshll.u32 %s6155_s2, 4  ;;  %s26_s11 = int_to_ptr.vmem [resolvable:$true] %s25_s11  ;;  %s51_s13 = int_to_ptr.hbm [resolvable:$true] %s50_s13 }
  0x10   :  { %31 = dma.hbm_to_vmem [thread:$0]  %s24_s29, 512, %s26_s11, [#allocation3], %s5953_s1, %s5953_s1, %s5954_s24  }
  0x11   :  { %s74_s16 = sshll.u32 %s6157_s4, 4  ;;  %s5959_s17 = smov [#allocation7]   ;;  %s75_s16 = int_to_ptr.hbm [resolvable:$true] %s74_s16 }
  0x12   :  { %s52_s18 = sshll.u32 %s5959_s17, 4  ;;  %s5960_s0 = smov [#allocation10]   ;;  %s53_s18 = int_to_ptr.vmem [resolvable:$true] %s52_s18 }
  0x13   :  { %55 = dma.hbm_to_vmem [thread:$0]  %s51_s13, 128, %s53_s18, [#allocation6]  }
  0x14   :  { %s76_s19 = sshll.u32 %s5960_s0, 4  ;;  %s99_s22 = sshll.u32 %s6160_s7, 4  ;;  %s77_s19 = int_to_ptr.vmem [resolvable:$true] %s76_s19  ;;  %s100_s22 = int_to_ptr.hbm [resolvable:$true] %s99_s22 }
  0x15   :  { %79 = dma.hbm_to_vmem [thread:$0]  %s75_s16, 64, %s77_s19, [#allocation9]  }
  0x16   :  { %s5961_s2 = smov [#allocation13]  }
  0x17   :  { %s101_s23 = sshll.u32 %s5961_s2, 4  ;;  %s102_s23 = int_to_ptr.vmem [resolvable:$true] %s101_s23 }
  0x18   :  { %107 = dma.hbm_to_vmem [thread:$0]  %s100_s22, 1024, %s102_s23, [#allocation12], %s5956_s3, %s5956_s3, %s5957_s30  }
  0x19   :  { %5939 = dma.done.wait [#allocation3], 512  }
  0x1a   :  { %5940 = vsyncadd [#allocation3], 4294966784 }
  0x1b   :  { %5941 = dma.done.wait [#allocation6], 16512  }
  0x1c   :  { %5942 = vsyncadd [#allocation6], 4294950784 }
  0x1d   :  { %5943 = dma.done.wait [#allocation9], 32832  }
  0x1e   :  { %5944 = vsyncadd [#allocation9], 4294934464 }
  0x1f   :  { %5945 = dma.done.wait [#allocation12], 5120  }
  0x20   :  { %5946 = vsyncadd [#allocation12], 4294962176  ;;  %v3835_v0 = vld [vmem:[#allocation5 + $0x1c0] sm:$0xf]  ;;  %v5361_v5 = vld [vmem:[#allocation5 + $0x1c4] sm:$0xf] }
  0x21   :  { %v5365_v1 = vld [vmem:[#allocation5 + $0x1dc] sm:$0xf0]  ;;  %v3837_v6 = vld [vmem:[#allocation5 + $0x1e0] sm:$0xf0]  ;;  %s3593_s28 = sshll.u32 %s6162_s9, 4  ;;  %s5963_s29 = smov 128   ;;  %s3594_s28 = int_to_ptr.hbm [resolvable:$true] %s3593_s28 }
  0x22   :  { %v4091_v2 = vld [vmem:[#allocation5 + $0x3c0] sm:$0xf]  ;;  %v3836_v3 = vor.u32 %v5365_v1, %v3835_v0  ;;  %v3840_v8 = vor.u32 %v5361_v5, %v3837_v6  ;;  %v5425_v9 = vld [vmem:[#allocation5 + $0x3c4] sm:$0xf]  ;;  %s5964_s3 = smov 8  }
  0x23   :  { %v5429_v4 = vld [vmem:[#allocation5 + $0x3dc] sm:$0xf0]  ;;  %v4093_v10 = vld [vmem:[#allocation5 + $0x3e0] sm:$0xf0] }
  0x24   :  { %v4092_v7 = vor.u32 %v5429_v4, %v4091_v2  ;;  %v3803_v11 = vld [vmem:[#allocation5 + $0x180] sm:$0xf]  ;;  %930 = vmatpush.bf16.msra.mxu0 %v3836_v3  ;;  %v4096_v12 = vor.u32 %v5425_v9, %v4093_v10  ;;  %958 = vmatpush.bf16.msra.mxu2 %v3840_v8  ;;  %v5353_v18 = vld [vmem:[#allocation5 + $0x184] sm:$0xf] }
  0x25   :  { %v5357_v13 = vld [vmem:[#allocation5 + $0x19c] sm:$0xf0]  ;;  %v3805_v19 = vld [vmem:[#allocation5 + $0x1a0] sm:$0xf0] }
  0x26   :  { %v4059_v14 = vld [vmem:[#allocation5 + $0x380] sm:$0xf]  ;;  %944 = vmatpush.bf16.msra.mxu1 %v4092_v7  ;;  %v3804_v16 = vor.u32 %v5357_v13, %v3803_v11  ;;  %v5417_v20 = vld [vmem:[#allocation5 + $0x384] sm:$0xf]  ;;  %972 = vmatpush.bf16.msra.mxu3 %v4096_v12  ;;  %v3808_v21 = vor.u32 %v5353_v18, %v3805_v19 }
  0x27   :  { %v5421_v15 = vld [vmem:[#allocation5 + $0x39c] sm:$0xf0]  ;;  %v4061_v22 = vld [vmem:[#allocation5 + $0x3a0] sm:$0xf0] }
  0x28   :  { %v4060_v17 = vor.u32 %v5421_v15, %v4059_v14  ;;  %v3771_v23 = vld [vmem:[#allocation5 + $0x140] sm:$0xf]  ;;  %v4064_v25 = vor.u32 %v5417_v20, %v4061_v22  ;;  %v5345_v28 = vld [vmem:[#allocation5 + $0x144] sm:$0xf]  ;;  %931 = vmatpush.bf16.msra.mxu0 %v3804_v16  ;;  %959 = vmatpush.bf16.msra.mxu2 %v3808_v21 }
  0x29   :  { %v5349_v24 = vld [vmem:[#allocation5 + $0x15c] sm:$0xf0]  ;;  %v3773_v30 = vld [vmem:[#allocation5 + $0x160] sm:$0xf0] }
  0x2a   :  { %v4027_v26 = vld [vmem:[#allocation5 + $0x340] sm:$0xf]  ;;  %v3772_v29 = vor.u32 %v5349_v24, %v3771_v23  ;;  %v5409_v31 = vld [vmem:[#allocation5 + $0x344] sm:$0xf]  ;;  %945 = vmatpush.bf16.msra.mxu1 %v4060_v17  ;;  %v3776_v34 = vor.u32 %v5345_v28, %v3773_v30  ;;  %973 = vmatpush.bf16.msra.mxu3 %v4064_v25  ;;  %v3843_v28 = vld [vmem:[#allocation5 + $0x1c8] sm:$0xf] }
  0x2b   :  { %v5413_v27 = vld [vmem:[#allocation5 + $0x35c] sm:$0xf0]  ;;  %v4029_v32 = vld [vmem:[#allocation5 + $0x360] sm:$0xf0]  ;;  %v4099_v30 = vld [vmem:[#allocation5 + $0x3c8] sm:$0xf] }
  0x2c   :  { %v4028_v33 = vor.u32 %v5413_v27, %v4027_v26  ;;  %v3739_v35 = vld [vmem:[#allocation5 + $0x100] sm:$0xf]  ;;  %v4032_v38 = vor.u32 %v5409_v31, %v4029_v32  ;;  %v5337_v40 = vld [vmem:[#allocation5 + $0x104] sm:$0xf]  ;;  %932 = vmatpush.bf16.msra.mxu0 %v3772_v29  ;;  %960 = vmatpush.bf16.msra.mxu2 %v3776_v34  ;;  %v5366_v29 = vld [vmem:[#allocation5 + $0x1e4] sm:$0xf0] }
  0x2d   :  { %v5341_v36 = vld [vmem:[#allocation5 + $0x11c] sm:$0xf0]  ;;  %v3741_v41 = vld [vmem:[#allocation5 + $0x120] sm:$0xf0]  ;;  %v5430_v32 = vld [vmem:[#allocation5 + $0x3e4] sm:$0xf0] }
  0x2e   :  { %v3995_v37 = vld [vmem:[#allocation5 + $0x300] sm:$0xf]  ;;  %v5401_v42 = vld [vmem:[#allocation5 + $0x304] sm:$0xf]  ;;  %v3740_v44 = vor.u32 %v5341_v36, %v3739_v35  ;;  %946 = vmatpush.bf16.msra.mxu1 %v4028_v33  ;;  %v3744_v46 = vor.u32 %v5337_v40, %v3741_v41  ;;  %974 = vmatpush.bf16.msra.mxu3 %v4032_v38  ;;  %v5362_v33 = vld [vmem:[#allocation5 + $0x1cc] sm:$0xf]  ;;  %v3844_v40 = vor.u32 %v5366_v29, %v3843_v28 }
  0x2f   :  { %v5405_v39 = vld [vmem:[#allocation5 + $0x31c] sm:$0xf0]  ;;  %v3997_v43 = vld [vmem:[#allocation5 + $0x320] sm:$0xf0]  ;;  %v3845_v34 = vld [vmem:[#allocation5 + $0x1e8] sm:$0xf0] }
  0x30   :  { %v3996_v45 = vor.u32 %v5405_v39, %v3995_v37  ;;  %v3707_v47 = vld [vmem:[#allocation5 + $0xc0] sm:$0xf]  ;;  %v4000_v50 = vor.u32 %v5401_v42, %v3997_v43  ;;  %v5329_v52 = vld [vmem:[#allocation5 + $0xc4] sm:$0xf]  ;;  %933 = vmatpush.bf16.msra.mxu0 %v3740_v44  ;;  %961 = vmatpush.bf16.msra.mxu2 %v3744_v46  ;;  %v5426_v37 = vld [vmem:[#allocation5 + $0x3cc] sm:$0xf]  ;;  %v4100_v43 = vor.u32 %v5430_v32, %v4099_v30 }
  0x31   :  { %v5333_v48 = vld [vmem:[#allocation5 + $0xdc] sm:$0xf0]  ;;  %v3709_v53 = vld [vmem:[#allocation5 + $0xe0] sm:$0xf0]  ;;  %v4101_v38 = vld [vmem:[#allocation5 + $0x3e8] sm:$0xf0]  ;;  %v3848_v44 = vor.u32 %v5362_v33, %v3845_v34 }
  0x32   :  { %v3963_v49 = vld [vmem:[#allocation5 + $0x2c0] sm:$0xf]  ;;  %v5393_v54 = vld [vmem:[#allocation5 + $0x2c4] sm:$0xf]  ;;  %v3708_v56 = vor.u32 %v5333_v48, %v3707_v47  ;;  %947 = vmatpush.bf16.msra.mxu1 %v3996_v45  ;;  %v3712_v58 = vor.u32 %v5329_v52, %v3709_v53  ;;  %975 = vmatpush.bf16.msra.mxu3 %v4000_v50  ;;  %v3811_v41 = vld [vmem:[#allocation5 + $0x188] sm:$0xf]  ;;  %v4104_v48 = vor.u32 %v5426_v37, %v4101_v38 }
  0x33   :  { %v5397_v51 = vld [vmem:[#allocation5 + $0x2dc] sm:$0xf0]  ;;  %v3965_v55 = vld [vmem:[#allocation5 + $0x2e0] sm:$0xf0]  ;;  %v5358_v42 = vld [vmem:[#allocation5 + $0x1a4] sm:$0xf0] }
  0x34   :  { %v3964_v57 = vor.u32 %v5397_v51, %v3963_v49  ;;  %v3675_v59 = vld [vmem:[#allocation5 + $0x80] sm:$0xf]  ;;  %v3968_v62 = vor.u32 %v5393_v54, %v3965_v55  ;;  %v5321_v0 = vld [vmem:[#allocation5 + $0x84] sm:$0xf]  ;;  %934 = vmatpush.bf16.msra.mxu0 %v3708_v56  ;;  %962 = vmatpush.bf16.msra.mxu2 %v3712_v58  ;;  %v4067_v45 = vld [vmem:[#allocation5 + $0x388] sm:$0xf]  ;;  %v3812_v55 = vor.u32 %v5358_v42, %v3811_v41 }
  0x35   :  { %v5325_v60 = vld [vmem:[#allocation5 + $0x9c] sm:$0xf0]  ;;  %v3677_v1 = vld [vmem:[#allocation5 + $0xa0] sm:$0xf0]  ;;  %v5422_v46 = vld [vmem:[#allocation5 + $0x3a4] sm:$0xf0] }
  0x36   :  { %v3931_v61 = vld [vmem:[#allocation5 + $0x280] sm:$0xf]  ;;  %v5385_v2 = vld [vmem:[#allocation5 + $0x284] sm:$0xf]  ;;  %v3676_v4 = vor.u32 %v5325_v60, %v3675_v59  ;;  %948 = vmatpush.bf16.msra.mxu1 %v3964_v57  ;;  %v3680_v6 = vor.u32 %v5321_v0, %v3677_v1  ;;  %976 = vmatpush.bf16.msra.mxu3 %v3968_v62  ;;  %v5354_v47 = vld [vmem:[#allocation5 + $0x18c] sm:$0xf]  ;;  %v4068_v58 = vor.u32 %v5422_v46, %v4067_v45 }
  0x37   :  { %v5389_v63 = vld [vmem:[#allocation5 + $0x29c] sm:$0xf0]  ;;  %v3933_v3 = vld [vmem:[#allocation5 + $0x2a0] sm:$0xf0]  ;;  %v3813_v49 = vld [vmem:[#allocation5 + $0x1a8] sm:$0xf0] }
  0x38   :  { %v3932_v5 = vor.u32 %v5389_v63, %v3931_v61  ;;  %v3643_v7 = vld [vmem:[#allocation5 + $0x40] sm:$0xf]  ;;  %v3936_v10 = vor.u32 %v5385_v2, %v3933_v3  ;;  %v5313_v12 = vld [vmem:[#allocation5 + $0x44] sm:$0xf]  ;;  %935 = vmatpush.bf16.msra.mxu0 %v3676_v4  ;;  %963 = vmatpush.bf16.msra.mxu2 %v3680_v6  ;;  %v5418_v50 = vld [vmem:[#allocation5 + $0x38c] sm:$0xf]  ;;  %v3816_v59 = vor.u32 %v5354_v47, %v3813_v49 }
  0x39   :  { %v5317_v8 = vld [vmem:[#allocation5 + $0x5c] sm:$0xf0]  ;;  %v3645_v13 = vld [vmem:[#allocation5 + $0x60] sm:$0xf0]  ;;  %v4069_v51 = vld [vmem:[#allocation5 + $0x3a8] sm:$0xf0] }
  0x3a   :  { %v3899_v9 = vld [vmem:[#allocation5 + $0x240] sm:$0xf]  ;;  %v5377_v14 = vld [vmem:[#allocation5 + $0x244] sm:$0xf]  ;;  %v3644_v16 = vor.u32 %v5317_v8, %v3643_v7  ;;  %949 = vmatpush.bf16.msra.mxu1 %v3932_v5  ;;  %v3648_v20 = vor.u32 %v5313_v12, %v3645_v13  ;;  %977 = vmatpush.bf16.msra.mxu3 %v3936_v10  ;;  %v140_v53 = vld [vmem:[#allocation2 + $0x10] sm:$0xff]  ;;  %v4072_v0 = vor.u32 %v5418_v50, %v4069_v51 }
  0x3b   :  { %v5381_v11 = vld [vmem:[#allocation5 + $0x25c] sm:$0xf0]  ;;  %v3901_v15 = vld [vmem:[#allocation5 + $0x260] sm:$0xf0]  ;;  %v139_v54 = vld [vmem:[#allocation2 + $0x8] sm:$0xff] }
  0x3c   :  { %v3611_v17 = vld [vmem:[#allocation5] sm:$0xf]  ;;  %v3900_v19 = vor.u32 %v5381_v11, %v3899_v9  ;;  %v5305_v23 = vld [vmem:[#allocation5 + $0x4] sm:$0xf]  ;;  %v3904_v24 = vor.u32 %v5377_v14, %v3901_v15  ;;  %936 = vmatpush.bf16.msra.mxu0 %v3644_v16  ;;  %964 = vmatpush.bf16.msra.mxu2 %v3648_v20  ;;  %v141_v57 = vld [vmem:[#allocation2 + $0x18] sm:$0xff] }
  0x3d   :  { %v5309_v18 = vld [vmem:[#allocation5 + $0x1c] sm:$0xf0]  ;;  %v3613_v25 = vld [vmem:[#allocation5 + $0x20] sm:$0xf0]  ;;  %v3779_v60 = vld [vmem:[#allocation5 + $0x148] sm:$0xf]  ;;  %v6038_v63 = vpack.c.bf16 %v141_v57, %v139_v54 }
  0x3e   :  { %v3867_v21 = vld [vmem:[#allocation5 + $0x200] sm:$0xf]  ;;  %v5369_v26 = vld [vmem:[#allocation5 + $0x204] sm:$0xf]  ;;  %v3612_v31 = vor.u32 %v5309_v18, %v3611_v17  ;;  %950 = vmatpush.bf16.msra.mxu1 %v3900_v19  ;;  %v3616_v36 = vor.u32 %v5305_v23, %v3613_v25  ;;  %978 = vmatpush.bf16.msra.mxu3 %v3904_v24  ;;  %v5350_v61 = vld [vmem:[#allocation5 + $0x164] sm:$0xf0] }
  0x3f   :  { %v5373_v22 = vld [vmem:[#allocation5 + $0x21c] sm:$0xf0]  ;;  %v3869_v27 = vld [vmem:[#allocation5 + $0x220] sm:$0xf0]  ;;  %v4035_v62 = vld [vmem:[#allocation5 + $0x348] sm:$0xf]  ;;  %v3780_v6 = vor.u32 %v5350_v61, %v3779_v60 }
  0x40   :  { %v3868_v35 = vor.u32 %v5373_v22, %v3867_v21  ;;  %v3872_v39 = vor.u32 %v5369_v26, %v3869_v27  ;;  %937 = vmatpush.bf16.msra.mxu0 %v3612_v31  ;;  %965 = vmatpush.bf16.msra.mxu2 %v3616_v36  ;;  %v138_v52 = vld [vmem:[#allocation2] sm:$0xff]  ;;  %v5414_v1 = vld [vmem:[#allocation5 + $0x364] sm:$0xf0]  ;;  %v5346_v2 = vld [vmem:[#allocation5 + $0x14c] sm:$0xf] }
  0x41   :  { %v6036_v56 = vpack.c.bf16 %v140_v53, %v138_v52  ;;  %v3781_v3 = vld [vmem:[#allocation5 + $0x168] sm:$0xf0]  ;;  %v4036_v7 = vor.u32 %v5414_v1, %v4035_v62  ;;  %v3747_v9 = vld [vmem:[#allocation5 + $0x108] sm:$0xf] }
  0x42   :  { %951 = vmatpush.bf16.msra.mxu1 %v3868_v35  ;;  %979 = vmatpush.bf16.msra.mxu3 %v3872_v39  ;;  %v5410_v4 = vld [vmem:[#allocation5 + $0x34c] sm:$0xf]  ;;  %v3784_v8 = vor.u32 %v5346_v2, %v3781_v3  ;;  %v5342_v10 = vld [vmem:[#allocation5 + $0x124] sm:$0xf0] }
  0x43   :  { %966 = vmatmul.bf16.vlgmr.msra.gmra.mxu2 %v6036_v56  ;;  %v4037_v5 = vld [vmem:[#allocation5 + $0x368] sm:$0xf0]  ;;  %938 = vmatmul.bf16.vlgmr.msra.gmra.mxu0 %v6036_v56  ;;  %v4003_v11 = vld [vmem:[#allocation5 + $0x308] sm:$0xf]  ;;  %v3748_v18 = vor.u32 %v5342_v10, %v3747_v9  ;;  %v5363_v9 = vld [vmem:[#allocation5 + $0x1d4] sm:$0xf] }
  0x44   :  { %986 = vmatpush.bf16.msrb.mxu0 %v3844_v40  ;;  %1014 = vmatpush.bf16.msrb.mxu2 %v3848_v44  ;;  %v4040_v12 = vor.u32 %v5410_v4, %v4037_v5  ;;  %v5406_v13 = vld [vmem:[#allocation5 + $0x324] sm:$0xf0]  ;;  %v5338_v14 = vld [vmem:[#allocation5 + $0x10c] sm:$0xf]  ;;  %v3851_v4 = vld [vmem:[#allocation5 + $0x1d0] sm:$0xf] }
  0x45   :  { %980 = vmatmul.bf16.vlgmr.msra.gmra.mxu3 %v6038_v63  ;;  %952 = vmatmul.bf16.vlgmr.msra.gmra.mxu1 %v6038_v63  ;;  %v3749_v15 = vld [vmem:[#allocation5 + $0x128] sm:$0xf0]  ;;  %v4004_v19 = vor.u32 %v5406_v13, %v4003_v11  ;;  %v3715_v21 = vld [vmem:[#allocation5 + $0xc8] sm:$0xf]  ;;  %v5367_v5 = vld [vmem:[#allocation5 + $0x1ec] sm:$0xf0] }
  0x46   :  { %1000 = vmatpush.bf16.msrb.mxu1 %v4100_v43  ;;  %1028 = vmatpush.bf16.msrb.mxu3 %v4104_v48  ;;  %v5402_v16 = vld [vmem:[#allocation5 + $0x30c] sm:$0xf]  ;;  %v3752_v20 = vor.u32 %v5338_v14, %v3749_v15  ;;  %v5334_v22 = vld [vmem:[#allocation5 + $0xe4] sm:$0xf0]  ;;  %v3853_v10 = vld [vmem:[#allocation5 + $0x1f0] sm:$0xf0] }
  0x47   :  { %v4005_v17 = vld [vmem:[#allocation5 + $0x328] sm:$0xf0]  ;;  %v3971_v23 = vld [vmem:[#allocation5 + $0x2c8] sm:$0xf]  ;;  %v3716_v30 = vor.u32 %v5334_v22, %v3715_v21  ;;  %v5427_v13 = vld [vmem:[#allocation5 + $0x3d4] sm:$0xf] }
  0x48   :  { %987 = vmatpush.bf16.msrb.mxu0 %v3812_v55  ;;  %1015 = vmatpush.bf16.msrb.mxu2 %v3816_v59  ;;  %v4008_v24 = vor.u32 %v5402_v16, %v4005_v17  ;;  %v5398_v25 = vld [vmem:[#allocation5 + $0x2e4] sm:$0xf0]  ;;  %v5330_v26 = vld [vmem:[#allocation5 + $0xcc] sm:$0xf]  ;;  %v4109_v14 = vld [vmem:[#allocation5 + $0x3f0] sm:$0xf0]  ;;  %v3852_v16 = vor.u32 %v5367_v5, %v3851_v4 }
  0x49   :  { %v3717_v27 = vld [vmem:[#allocation5 + $0xe8] sm:$0xf0]  ;;  %v3972_v31 = vor.u32 %v5398_v25, %v3971_v23  ;;  %v3683_v33 = vld [vmem:[#allocation5 + $0x88] sm:$0xf]  ;;  %v4075_v21 = vld [vmem:[#allocation5 + $0x390] sm:$0xf]  ;;  %v4112_v22 = vor.u32 %v5427_v13, %v4109_v14 }
  0x4a   :  { %1001 = vmatpush.bf16.msrb.mxu1 %v4068_v58  ;;  %1029 = vmatpush.bf16.msrb.mxu3 %v4072_v0  ;;  %v5394_v28 = vld [vmem:[#allocation5 + $0x2cc] sm:$0xf]  ;;  %v3720_v32 = vor.u32 %v5330_v26, %v3717_v27  ;;  %v5326_v34 = vld [vmem:[#allocation5 + $0xa4] sm:$0xf0]  ;;  %v5423_v23 = vld [vmem:[#allocation5 + $0x3ac] sm:$0xf0] }
  0x4b   :  { %v3973_v29 = vld [vmem:[#allocation5 + $0x2e8] sm:$0xf0]  ;;  %v3939_v35 = vld [vmem:[#allocation5 + $0x288] sm:$0xf]  ;;  %v3684_v42 = vor.u32 %v5326_v34, %v3683_v33  ;;  %v3821_v25 = vld [vmem:[#allocation5 + $0x1b0] sm:$0xf0] }
  0x4c   :  { %988 = vmatpush.bf16.msrb.mxu0 %v3780_v6  ;;  %1016 = vmatpush.bf16.msrb.mxu2 %v3784_v8  ;;  %v3976_v36 = vor.u32 %v5394_v28, %v3973_v29  ;;  %v5390_v37 = vld [vmem:[#allocation5 + $0x2a4] sm:$0xf0]  ;;  %v5322_v38 = vld [vmem:[#allocation5 + $0x8c] sm:$0xf]  ;;  %v4107_v6 = vld [vmem:[#allocation5 + $0x3d0] sm:$0xf]  ;;  %v4076_v29 = vor.u32 %v5423_v23, %v4075_v21 }
  0x4d   :  { %v3685_v39 = vld [vmem:[#allocation5 + $0xa8] sm:$0xf0]  ;;  %v3940_v43 = vor.u32 %v5390_v37, %v3939_v35  ;;  %v3651_v45 = vld [vmem:[#allocation5 + $0x48] sm:$0xf]  ;;  %v5431_v8 = vld [vmem:[#allocation5 + $0x3ec] sm:$0xf0] }
  0x4e   :  { %1002 = vmatpush.bf16.msrb.mxu1 %v4036_v7  ;;  %1030 = vmatpush.bf16.msrb.mxu3 %v4040_v12  ;;  %v5386_v40 = vld [vmem:[#allocation5 + $0x28c] sm:$0xf]  ;;  %v3688_v44 = vor.u32 %v5322_v38, %v3685_v39  ;;  %v5318_v46 = vld [vmem:[#allocation5 + $0x64] sm:$0xf0]  ;;  %v4108_v17 = vor.u32 %v5431_v8, %v4107_v6  ;;  %v5419_v26 = vld [vmem:[#allocation5 + $0x394] sm:$0xf] }
  0x4f   :  { %v3941_v41 = vld [vmem:[#allocation5 + $0x2a8] sm:$0xf0]  ;;  %v3907_v47 = vld [vmem:[#allocation5 + $0x248] sm:$0xf]  ;;  %v3652_v54 = vor.u32 %v5318_v46, %v3651_v45  ;;  %v4077_v27 = vld [vmem:[#allocation5 + $0x3b0] sm:$0xf0] }
  0x50   :  { %989 = vmatpush.bf16.msrb.mxu0 %v3748_v18  ;;  %1017 = vmatpush.bf16.msrb.mxu2 %v3752_v20  ;;  %v3944_v48 = vor.u32 %v5386_v40, %v3941_v41  ;;  %v5382_v49 = vld [vmem:[#allocation5 + $0x264] sm:$0xf0]  ;;  %v5314_v50 = vld [vmem:[#allocation5 + $0x4c] sm:$0xf]  ;;  %v3856_v18 = vor.u32 %v5363_v9, %v3853_v10  ;;  %v5359_v20 = vld [vmem:[#allocation5 + $0x1ac] sm:$0xf0]  ;;  %v4080_v34 = vor.u32 %v5419_v26, %v4077_v27 }
  0x51   :  { %v3653_v51 = vld [vmem:[#allocation5 + $0x68] sm:$0xf0]  ;;  %v3619_v55 = vld [vmem:[#allocation5 + $0x8] sm:$0xf]  ;;  %v3908_v58 = vor.u32 %v5382_v49, %v3907_v47  ;;  %v4043_v33 = vld [vmem:[#allocation5 + $0x350] sm:$0xf] }
  0x52   :  { %1003 = vmatpush.bf16.msrb.mxu1 %v4004_v19  ;;  %1031 = vmatpush.bf16.msrb.mxu3 %v4008_v24  ;;  %v5378_v52 = vld [vmem:[#allocation5 + $0x24c] sm:$0xf]  ;;  %v5310_v57 = vld [vmem:[#allocation5 + $0x24] sm:$0xf0]  ;;  %v3656_v59 = vor.u32 %v5314_v50, %v3653_v51  ;;  %v3819_v19 = vld [vmem:[#allocation5 + $0x190] sm:$0xf] }
  0x53   :  { %v3909_v53 = vld [vmem:[#allocation5 + $0x268] sm:$0xf0]  ;;  %v3875_v60 = vld [vmem:[#allocation5 + $0x208] sm:$0xf]  ;;  %v3620_v7 = vor.u32 %v5310_v57, %v3619_v55  ;;  %v5355_v24 = vld [vmem:[#allocation5 + $0x194] sm:$0xf]  ;;  %v3820_v28 = vor.u32 %v5359_v20, %v3819_v19 }
  0x54   :  { %990 = vmatpush.bf16.msrb.mxu0 %v3716_v30  ;;  %1018 = vmatpush.bf16.msrb.mxu2 %v3720_v32  ;;  %v5374_v61 = vld [vmem:[#allocation5 + $0x224] sm:$0xf0]  ;;  %v5306_v62 = vld [vmem:[#allocation5 + $0xc] sm:$0xf]  ;;  %v3912_v0 = vor.u32 %v5378_v52, %v3909_v53  ;;  %v3824_v30 = vor.u32 %v5355_v24, %v3821_v25  ;;  %v5351_v32 = vld [vmem:[#allocation5 + $0x16c] sm:$0xf0] }
  0x55   :  { %v3621_v1 = vld [vmem:[#allocation5 + $0x28] sm:$0xf0]  ;;  %v3876_v11 = vor.u32 %v5374_v61, %v3875_v60  ;;  %v5415_v35 = vld [vmem:[#allocation5 + $0x36c] sm:$0xf0]  ;;  %v3789_v37 = vld [vmem:[#allocation5 + $0x170] sm:$0xf0] }
  0x56   :  { %1004 = vmatpush.bf16.msrb.mxu1 %v3972_v31  ;;  %1032 = vmatpush.bf16.msrb.mxu3 %v3976_v36  ;;  %v5370_v2 = vld [vmem:[#allocation5 + $0x20c] sm:$0xf]  ;;  %v3624_v12 = vor.u32 %v5306_v62, %v3621_v1  ;;  %v3787_v31 = vld [vmem:[#allocation5 + $0x150] sm:$0xf]  ;;  %v5347_v36 = vld [vmem:[#allocation5 + $0x154] sm:$0xf]  ;;  %v4044_v41 = vor.u32 %v5415_v35, %v4043_v33 }
  0x57   :  { %v3877_v3 = vld [vmem:[#allocation5 + $0x228] sm:$0xf0]  ;;  %v5411_v38 = vld [vmem:[#allocation5 + $0x354] sm:$0xf]  ;;  %v3788_v40 = vor.u32 %v5351_v32, %v3787_v31  ;;  %v4011_v45 = vld [vmem:[#allocation5 + $0x310] sm:$0xf] }
  0x58   :  { %991 = vmatpush.bf16.msrb.mxu0 %v3684_v42  ;;  %1019 = vmatpush.bf16.msrb.mxu2 %v3688_v44  ;;  %v3880_v15 = vor.u32 %v5370_v2, %v3877_v3  ;;  %v4045_v39 = vld [vmem:[#allocation5 + $0x370] sm:$0xf0]  ;;  %v3792_v42 = vor.u32 %v5347_v36, %v3789_v37  ;;  %v5343_v44 = vld [vmem:[#allocation5 + $0x12c] sm:$0xf0] }
  0x59   :  { %v4048_v46 = vor.u32 %v5411_v38, %v4045_v39  ;;  %v5407_v47 = vld [vmem:[#allocation5 + $0x32c] sm:$0xf0]  ;;  %v3757_v49 = vld [vmem:[#allocation5 + $0x130] sm:$0xf0]  ;;  %v3859_v38 = vld [vmem:[#allocation5 + $0x1d8] sm:$0xf] }
  0x5a   :  { %1005 = vmatpush.bf16.msrb.mxu1 %v3940_v43  ;;  %1033 = vmatpush.bf16.msrb.mxu3 %v3944_v48  ;;  %v3755_v43 = vld [vmem:[#allocation5 + $0x110] sm:$0xf]  ;;  %v5339_v48 = vld [vmem:[#allocation5 + $0x114] sm:$0xf]  ;;  %v4012_v53 = vor.u32 %v5407_v47, %v4011_v45  ;;  %v5368_v39 = vld [vmem:[#allocation5 + $0x1f4] sm:$0xf0] }
  0x5b   :  { %v5403_v50 = vld [vmem:[#allocation5 + $0x314] sm:$0xf]  ;;  %v3756_v52 = vor.u32 %v5343_v44, %v3755_v43  ;;  %v3723_v55 = vld [vmem:[#allocation5 + $0xd0] sm:$0xf]  ;;  %v5364_v43 = vld [vmem:[#allocation5 + $0x1dc] sm:$0xf] }
  0x5c   :  { %992 = vmatpush.bf16.msrb.mxu0 %v3652_v54  ;;  %1020 = vmatpush.bf16.msrb.mxu2 %v3656_v59  ;;  %v4013_v51 = vld [vmem:[#allocation5 + $0x330] sm:$0xf0]  ;;  %v3760_v54 = vor.u32 %v5339_v48, %v3757_v49  ;;  %v5335_v57 = vld [vmem:[#allocation5 + $0xec] sm:$0xf0]  ;;  %v3861_v44 = vld [vmem:[#allocation5 + $0x1f8] sm:$0xf0] }
  0x5d   :  { %v4016_v59 = vor.u32 %v5403_v50, %v4013_v51  ;;  %v5399_v60 = vld [vmem:[#allocation5 + $0x2ec] sm:$0xf0]  ;;  %v5331_v61 = vld [vmem:[#allocation5 + $0xd4] sm:$0xf]  ;;  %v3724_v2 = vor.u32 %v5335_v57, %v3723_v55  ;;  %v5428_v47 = vld [vmem:[#allocation5 + $0x3dc] sm:$0xf]  ;;  %v3860_v50 = vor.u32 %v5368_v39, %v3859_v38 }
  0x5e   :  { %1006 = vmatpush.bf16.msrb.mxu1 %v3908_v58  ;;  %1034 = vmatpush.bf16.msrb.mxu3 %v3912_v0  ;;  %v3979_v58 = vld [vmem:[#allocation5 + $0x2d0] sm:$0xf]  ;;  %v3725_v62 = vld [vmem:[#allocation5 + $0xf0] sm:$0xf0]  ;;  %v4117_v48 = vld [vmem:[#allocation5 + $0x3f8] sm:$0xf0] }
  0x5f   :  { %v5395_v0 = vld [vmem:[#allocation5 + $0x2d4] sm:$0xf]  ;;  %v3980_v3 = vor.u32 %v5399_v60, %v3979_v58  ;;  %v3728_v4 = vor.u32 %v5331_v61, %v3725_v62  ;;  %v3691_v5 = vld [vmem:[#allocation5 + $0x90] sm:$0xf]  ;;  %v4083_v55 = vld [vmem:[#allocation5 + $0x398] sm:$0xf]  ;;  %v4120_v57 = vor.u32 %v5428_v47, %v4117_v48 }
  0x60   :  { %993 = vmatpush.bf16.msrb.mxu0 %v3620_v7  ;;  %1021 = vmatpush.bf16.msrb.mxu2 %v3624_v12  ;;  %v3981_v1 = vld [vmem:[#allocation5 + $0x2f0] sm:$0xf0]  ;;  %v5327_v6 = vld [vmem:[#allocation5 + $0xac] sm:$0xf0]  ;;  %v5424_v58 = vld [vmem:[#allocation5 + $0x3b4] sm:$0xf0] }
  0x61   :  { %v3947_v7 = vld [vmem:[#allocation5 + $0x290] sm:$0xf]  ;;  %v3984_v8 = vor.u32 %v5395_v0, %v3981_v1  ;;  %v5323_v10 = vld [vmem:[#allocation5 + $0x94] sm:$0xf]  ;;  %v3692_v14 = vor.u32 %v5327_v6, %v3691_v5  ;;  %v3829_v60 = vld [vmem:[#allocation5 + $0x1b8] sm:$0xf0]  ;;  %v4084_v1 = vor.u32 %v5424_v58, %v4083_v55 }
  0x62   :  { %1007 = vmatpush.bf16.msrb.mxu1 %v3876_v11  ;;  %1035 = vmatpush.bf16.msrb.mxu3 %v3880_v15  ;;  %v5391_v9 = vld [vmem:[#allocation5 + $0x2ac] sm:$0xf0]  ;;  %v3693_v11 = vld [vmem:[#allocation5 + $0xb0] sm:$0xf0]  ;;  %v5420_v61 = vld [vmem:[#allocation5 + $0x39c] sm:$0xf] }
  0x63   :  { %994 = vmatmul.bf16.vlgmr.msrb.gmra.mxu0 %v6036_v56  ;;  %1022 = vmatmul.bf16.vlgmr.msrb.gmra.mxu2 %v6036_v56  ;;  %v5387_v12 = vld [vmem:[#allocation5 + $0x294] sm:$0xf]  ;;  %v3948_v15 = vor.u32 %v5391_v9, %v3947_v7  ;;  %v3915_v19 = vld [vmem:[#allocation5 + $0x250] sm:$0xf]  ;;  %v4085_v62 = vld [vmem:[#allocation5 + $0x3b8] sm:$0xf0] }
  0x64   :  { %1042 = vmatpush.bf16.msra.mxu0 %v3852_v16  ;;  %1070 = vmatpush.bf16.msra.mxu2 %v3856_v18  ;;  %v3949_v13 = vld [vmem:[#allocation5 + $0x2b0] sm:$0xf0]  ;;  %v3696_v16 = vor.u32 %v5323_v10, %v3693_v11  ;;  %v5319_v18 = vld [vmem:[#allocation5 + $0x6c] sm:$0xf0]  ;;  %v4051_v5 = vld [vmem:[#allocation5 + $0x358] sm:$0xf]  ;;  %v4088_v6 = vor.u32 %v5420_v61, %v4085_v62 }
  0x65   :  { %1008 = vmatmul.bf16.vlgmr.msrb.gmra.mxu1 %v6038_v63  ;;  %1036 = vmatmul.bf16.vlgmr.msrb.gmra.mxu3 %v6038_v63  ;;  %v3952_v20 = vor.u32 %v5387_v12, %v3949_v13  ;;  %v5383_v21 = vld [vmem:[#allocation5 + $0x26c] sm:$0xf0]  ;;  %v3661_v23 = vld [vmem:[#allocation5 + $0x70] sm:$0xf0]  ;;  %v5416_v7 = vld [vmem:[#allocation5 + $0x374] sm:$0xf0] }
  0x66   :  { %1056 = vmatpush.bf16.msra.mxu1 %v4108_v17  ;;  %1084 = vmatpush.bf16.msra.mxu3 %v4112_v22  ;;  %v3659_v17 = vld [vmem:[#allocation5 + $0x50] sm:$0xf]  ;;  %v5315_v22 = vld [vmem:[#allocation5 + $0x54] sm:$0xf]  ;;  %v3797_v9 = vld [vmem:[#allocation5 + $0x178] sm:$0xf0]  ;;  %v4052_v13 = vor.u32 %v5416_v7, %v4051_v5 }
  0x67   :  { %v5379_v24 = vld [vmem:[#allocation5 + $0x254] sm:$0xf]  ;;  %v3660_v26 = vor.u32 %v5319_v18, %v3659_v17  ;;  %v3627_v27 = vld [vmem:[#allocation5 + $0x10] sm:$0xf]  ;;  %v5412_v10 = vld [vmem:[#allocation5 + $0x35c] sm:$0xf] }
  0x68   :  { %1043 = vmatpush.bf16.msra.mxu0 %v3820_v28  ;;  %1071 = vmatpush.bf16.msra.mxu2 %v3824_v30  ;;  %v3917_v25 = vld [vmem:[#allocation5 + $0x270] sm:$0xf0]  ;;  %v5311_v28 = vld [vmem:[#allocation5 + $0x2c] sm:$0xf0]  ;;  %v3664_v30 = vor.u32 %v5315_v22, %v3661_v23  ;;  %v4053_v11 = vld [vmem:[#allocation5 + $0x378] sm:$0xf0] }
  0x69   :  { %v3883_v31 = vld [vmem:[#allocation5 + $0x210] sm:$0xf]  ;;  %v5307_v33 = vld [vmem:[#allocation5 + $0x14] sm:$0xf]  ;;  %v4019_v17 = vld [vmem:[#allocation5 + $0x318] sm:$0xf]  ;;  %v4056_v18 = vor.u32 %v5412_v10, %v4053_v11 }
  0x6a   :  { %1057 = vmatpush.bf16.msra.mxu1 %v4076_v29  ;;  %1085 = vmatpush.bf16.msra.mxu3 %v4080_v34  ;;  %v3916_v29 = vor.u32 %v5383_v21, %v3915_v19  ;;  %v5375_v32 = vld [vmem:[#allocation5 + $0x22c] sm:$0xf0]  ;;  %v3920_v34 = vor.u32 %v5379_v24, %v3917_v25  ;;  %v3629_v35 = vld [vmem:[#allocation5 + $0x30] sm:$0xf0]  ;;  %v5408_v19 = vld [vmem:[#allocation5 + $0x334] sm:$0xf0] }
  0x6b   :  { %v5371_v36 = vld [vmem:[#allocation5 + $0x214] sm:$0xf]  ;;  %v3884_v45 = vor.u32 %v5375_v32, %v3883_v31  ;;  %v3765_v21 = vld [vmem:[#allocation5 + $0x138] sm:$0xf0]  ;;  %v4020_v25 = vor.u32 %v5408_v19, %v4019_v17  ;;  %v5400_v31 = vld [vmem:[#allocation5 + $0x2f4] sm:$0xf0] }
  0x6c   :  { %1044 = vmatpush.bf16.msra.mxu0 %v3788_v40  ;;  %1072 = vmatpush.bf16.msra.mxu2 %v3792_v42  ;;  %v3885_v37 = vld [vmem:[#allocation5 + $0x230] sm:$0xf0]  ;;  %v4115_v40 = vld [vmem:[#allocation5 + $0x3d8] sm:$0xf]  ;;  %v5404_v22 = vld [vmem:[#allocation5 + $0x31c] sm:$0xf] }
  0x6d   :  { %v5432_v42 = vld [vmem:[#allocation5 + $0x3f4] sm:$0xf0]  ;;  %v3888_v49 = vor.u32 %v5371_v36, %v3885_v37  ;;  %v4021_v23 = vld [vmem:[#allocation5 + $0x338] sm:$0xf0]  ;;  %v4235_v10 = vld [vmem:[#allocation8 + $0xe0] sm:$0xf] }
  0x6e   :  { %1058 = vmatpush.bf16.msra.mxu1 %v4044_v41  ;;  %1086 = vmatpush.bf16.msra.mxu3 %v4048_v46  ;;  %v3628_v41 = vor.u32 %v5311_v28, %v3627_v27  ;;  %v3632_v46 = vor.u32 %v5307_v33, %v3629_v35  ;;  %v4116_v51 = vor.u32 %v5432_v42, %v4115_v40  ;;  %v3731_v27 = vld [vmem:[#allocation5 + $0xd8] sm:$0xf]  ;;  %v5332_v32 = vld [vmem:[#allocation5 + $0xdc] sm:$0xf]  ;;  %v4219_v19 = vld [vmem:[#allocation8 + $0xc0] sm:$0xf] }
  0x6f   :  { %v5336_v28 = vld [vmem:[#allocation5 + $0xf4] sm:$0xf0]  ;;  %v3733_v33 = vld [vmem:[#allocation5 + $0xf8] sm:$0xf0] }
  0x70   :  { %1045 = vmatpush.bf16.msra.mxu0 %v3756_v52  ;;  %1073 = vmatpush.bf16.msra.mxu2 %v3760_v54  ;;  %v3864_v52 = vor.u32 %v5364_v43, %v3861_v44  ;;  %v5360_v54 = vld [vmem:[#allocation5 + $0x1b4] sm:$0xf0]  ;;  %v3989_v35 = vld [vmem:[#allocation5 + $0x2f8] sm:$0xf0]  ;;  %v3732_v36 = vor.u32 %v5336_v28, %v3731_v27  ;;  %v3736_v38 = vor.u32 %v5332_v32, %v3733_v33  ;;  %v4331_v28 = vld [vmem:[#allocation8 + $0x1a0] sm:$0xf] }
  0x71   :  { %v3699_v39 = vld [vmem:[#allocation5 + $0x98] sm:$0xf]  ;;  %v5324_v44 = vld [vmem:[#allocation5 + $0x9c] sm:$0xf] }
  0x72   :  { %1059 = vmatpush.bf16.msra.mxu1 %v4012_v53  ;;  %1087 = vmatpush.bf16.msra.mxu3 %v4016_v59  ;;  %v3827_v53 = vld [vmem:[#allocation5 + $0x198] sm:$0xf]  ;;  %v5356_v59 = vld [vmem:[#allocation5 + $0x19c] sm:$0xf] }
  0x73   :  { %v3828_v0 = vor.u32 %v5360_v54, %v3827_v53  ;;  %v5328_v40 = vld [vmem:[#allocation5 + $0xb4] sm:$0xf0]  ;;  %v3957_v47 = vld [vmem:[#allocation5 + $0x2b8] sm:$0xf0] }
  0x74   :  { %1046 = vmatpush.bf16.msra.mxu0 %v3724_v2  ;;  %1074 = vmatpush.bf16.msra.mxu2 %v3728_v4  ;;  %v3832_v2 = vor.u32 %v5356_v59, %v3829_v60  ;;  %v5352_v4 = vld [vmem:[#allocation5 + $0x174] sm:$0xf0]  ;;  %v3700_v48 = vor.u32 %v5328_v40, %v3699_v39  ;;  %v3669_v58 = vld [vmem:[#allocation5 + $0x78] sm:$0xf0]  ;;  %v4299_v40 = vld [vmem:[#allocation8 + $0x160] sm:$0xf] }
  0x75   :  { %v5392_v43 = vld [vmem:[#allocation5 + $0x2b4] sm:$0xf0]  ;;  %v5380_v59 = vld [vmem:[#allocation5 + $0x25c] sm:$0xf] }
  0x76   :  { %1060 = vmatpush.bf16.msra.mxu1 %v3980_v3  ;;  %1088 = vmatpush.bf16.msra.mxu3 %v3984_v8  ;;  %v3795_v3 = vld [vmem:[#allocation5 + $0x158] sm:$0xf]  ;;  %v5348_v8 = vld [vmem:[#allocation5 + $0x15c] sm:$0xf] }
  0x77   :  { %v3796_v12 = vor.u32 %v5352_v4, %v3795_v3  ;;  %v3923_v53 = vld [vmem:[#allocation5 + $0x258] sm:$0xf]  ;;  %v3925_v60 = vld [vmem:[#allocation5 + $0x278] sm:$0xf0] }
  0x78   :  { %1047 = vmatpush.bf16.msra.mxu0 %v3692_v14  ;;  %1075 = vmatpush.bf16.msra.mxu2 %v3696_v16  ;;  %v3800_v14 = vor.u32 %v5348_v8, %v3797_v9  ;;  %v5344_v16 = vld [vmem:[#allocation5 + $0x134] sm:$0xf0]  ;;  %v3928_v5 = vor.u32 %v5380_v59, %v3925_v60  ;;  %v3637_v7 = vld [vmem:[#allocation5 + $0x38] sm:$0xf0]  ;;  %v4267_v59 = vld [vmem:[#allocation8 + $0x120] sm:$0xf] }
  0x79   :  { %v5384_v55 = vld [vmem:[#allocation5 + $0x274] sm:$0xf0]  ;;  %v5372_v8 = vld [vmem:[#allocation5 + $0x21c] sm:$0xf] }
  0x7a   :  { %1061 = vmatpush.bf16.msra.mxu1 %v3948_v15  ;;  %1089 = vmatpush.bf16.msra.mxu3 %v3952_v20  ;;  %v3763_v15 = vld [vmem:[#allocation5 + $0x118] sm:$0xf]  ;;  %v5340_v20 = vld [vmem:[#allocation5 + $0x11c] sm:$0xf] }
  0x7b   :  { %v3764_v24 = vor.u32 %v5344_v16, %v3763_v15  ;;  %v3635_v62 = vld [vmem:[#allocation5 + $0x18] sm:$0xf]  ;;  %v3893_v9 = vld [vmem:[#allocation5 + $0x238] sm:$0xf0] }
  0x7c   :  { %1048 = vmatpush.bf16.msra.mxu0 %v3660_v26  ;;  %1076 = vmatpush.bf16.msra.mxu2 %v3664_v30  ;;  %v3768_v26 = vor.u32 %v5340_v20, %v3765_v21  ;;  %v4024_v30 = vor.u32 %v5404_v22, %v4021_v23  ;;  %v3891_v3 = vld [vmem:[#allocation5 + $0x218] sm:$0xf]  ;;  %v3896_v17 = vor.u32 %v5372_v8, %v3893_v9  ;;  %v4347_v22 = vld [vmem:[#allocation8 + $0x1c0] sm:$0xf] }
  0x7d   :  { %v5376_v4 = vld [vmem:[#allocation5 + $0x234] sm:$0xf0] }
  0x7e   :  { %1062 = vmatpush.bf16.msra.mxu1 %v3916_v29  ;;  %1090 = vmatpush.bf16.msra.mxu3 %v3920_v34  ;;  %v3987_v29 = vld [vmem:[#allocation5 + $0x2d8] sm:$0xf]  ;;  %v5396_v34 = vld [vmem:[#allocation5 + $0x2dc] sm:$0xf]  ;;  %v3892_v15 = vor.u32 %v5376_v4, %v3891_v3 }
  0x7f   :  { %v3988_v37 = vor.u32 %v5400_v31, %v3987_v29  ;;  %v3992_v42 = vor.u32 %v5396_v34, %v3989_v35  ;;  %v5463_v11 = vld [vmem:[#allocation8 + $0xec] sm:$0xf0]  ;;  %v4187_v31 = vld [vmem:[#allocation8 + $0x80] sm:$0xf] }
  0x80   :  { %1049 = vmatpush.bf16.msra.mxu0 %v3628_v41  ;;  %1077 = vmatpush.bf16.msra.mxu2 %v3632_v46  ;;  %v3955_v41 = vld [vmem:[#allocation5 + $0x298] sm:$0xf]  ;;  %v5388_v46 = vld [vmem:[#allocation5 + $0x29c] sm:$0xf]  ;;  %v4315_v34 = vld [vmem:[#allocation8 + $0x180] sm:$0xf] }
  0x81   :  { %v3960_v54 = vor.u32 %v5388_v46, %v3957_v47  ;;  %v5459_v20 = vld [vmem:[#allocation8 + $0xcc] sm:$0xf0]  ;;  %v4283_v47 = vld [vmem:[#allocation8 + $0x140] sm:$0xf] }
  0x82   :  { %1063 = vmatpush.bf16.msra.mxu1 %v3884_v45  ;;  %1091 = vmatpush.bf16.msra.mxu3 %v3888_v49  ;;  %v3701_v45 = vld [vmem:[#allocation5 + $0xb8] sm:$0xf0]  ;;  %v3956_v49 = vor.u32 %v5392_v43, %v3955_v41  ;;  %v5491_v23 = vld [vmem:[#allocation8 + $0x1cc] sm:$0xf0]  ;;  %v4491_v41 = vld [vmem:[#allocation8 + $0x2e0] sm:$0xf] }
  0x83   :  { %1050 = vmatmul.bf16.vlgmr.msra.gmra.mxu0 %v6036_v56  ;;  %1078 = vmatmul.bf16.vlgmr.msra.gmra.mxu2 %v6036_v56  ;;  %v4348_v27 = vor.u32 %v5491_v23, %v4347_v22  ;;  %v5487_v29 = vld [vmem:[#allocation8 + $0x1ac] sm:$0xf0] }
  0x84   :  { %1098 = vmatpush.bf16.msrb.mxu0 %v3860_v50  ;;  %1126 = vmatpush.bf16.msrb.mxu2 %v3864_v52  ;;  %v3704_v50 = vor.u32 %v5324_v44, %v3701_v45  ;;  %v5320_v52 = vld [vmem:[#allocation5 + $0x74] sm:$0xf0]  ;;  %v4332_v33 = vor.u32 %v5487_v29, %v4331_v28  ;;  %v4155_v44 = vld [vmem:[#allocation8 + $0x40] sm:$0xf] }
  0x85   :  { %1064 = vmatmul.bf16.vlgmr.msra.gmra.mxu1 %v6038_v63  ;;  %1092 = vmatmul.bf16.vlgmr.msra.gmra.mxu3 %v6038_v63  ;;  %v5451_v32 = vld [vmem:[#allocation8 + $0x8c] sm:$0xf0] }
  0x86   :  { %1112 = vmatpush.bf16.msrb.mxu1 %v4116_v51  ;;  %1140 = vmatpush.bf16.msrb.mxu3 %v4120_v57  ;;  %v3667_v51 = vld [vmem:[#allocation5 + $0x58] sm:$0xf]  ;;  %v5316_v57 = vld [vmem:[#allocation5 + $0x5c] sm:$0xf] }
  0x87   :  { %v3668_v61 = vor.u32 %v5320_v52, %v3667_v51  ;;  %v5483_v35 = vld [vmem:[#allocation8 + $0x18c] sm:$0xf0]  ;;  %v4619_v52 = vld [vmem:[#allocation8 + $0x3e0] sm:$0xf] }
  0x88   :  { %1099 = vmatpush.bf16.msrb.mxu0 %v3828_v0  ;;  %1127 = vmatpush.bf16.msrb.mxu2 %v3832_v2  ;;  %v3924_v0 = vor.u32 %v5384_v55, %v3923_v53  ;;  %v5312_v2 = vld [vmem:[#allocation5 + $0x34] sm:$0xf0]  ;;  %v4316_v39 = vor.u32 %v5483_v35, %v4315_v34  ;;  %v4139_v53 = vld [vmem:[#allocation8 + $0x20] sm:$0xf] }
  0x89   :  { %v5443_v45 = vld [vmem:[#allocation8 + $0x4c] sm:$0xf0]  ;;  %v4699_v34 = vld [vmem:[#allocation8 + $0x480] sm:$0xf] }
  0x8a   :  { %1113 = vmatpush.bf16.msrb.mxu1 %v4084_v1  ;;  %1141 = vmatpush.bf16.msrb.mxu3 %v4088_v6  ;;  %v3672_v1 = vor.u32 %v5316_v57, %v3669_v58  ;;  %v5308_v6 = vld [vmem:[#allocation5 + $0x1c] sm:$0xf]  ;;  %v5523_v51 = vld [vmem:[#allocation8 + $0x2cc] sm:$0xf0] }
  0x8b   :  { %v3640_v16 = vor.u32 %v5308_v6, %v3637_v7  ;;  %v5559_v58 = vld [vmem:[#allocation8 + $0x3ec] sm:$0xf0]  ;;  %v4459_v6 = vld [vmem:[#allocation8 + $0x2a0] sm:$0xf] }
  0x8c   :  { %1100 = vmatpush.bf16.msrb.mxu0 %v3796_v12  ;;  %1128 = vmatpush.bf16.msrb.mxu2 %v3800_v14  ;;  %v3636_v12 = vor.u32 %v5312_v2, %v3635_v62  ;;  %v5495_v14 = vld [vmem:[#allocation8 + $0x1ec] sm:$0xf0]  ;;  %v4123_v62 = vld [vmem:[#allocation8] sm:$0xf] }
  0x8d   :  { %v5471_v60 = vld [vmem:[#allocation8 + $0x12c] sm:$0xf0]  ;;  %v4747_v2 = vld [vmem:[#allocation8 + $0x4e0] sm:$0xf] }
  0x8e   :  { %1114 = vmatpush.bf16.msrb.mxu1 %v4052_v13  ;;  %1142 = vmatpush.bf16.msrb.mxu3 %v4056_v18  ;;  %v4363_v13 = vld [vmem:[#allocation8 + $0x1e0] sm:$0xf]  ;;  %v4236_v18 = vor.u32 %v5463_v11, %v4235_v10  ;;  %v5591_v3 = vld [vmem:[#allocation8 + $0x4ec] sm:$0xf0]  ;;  %v4268_v4 = vor.u32 %v5471_v60, %v4267_v59 }
  0x8f   :  { %v4364_v21 = vor.u32 %v5495_v14, %v4363_v13  ;;  %v5519_v7 = vld [vmem:[#allocation8 + $0x2ac] sm:$0xf0]  ;;  %v4603_v10 = vld [vmem:[#allocation8 + $0x3c0] sm:$0xf] }
  0x90   :  { %1101 = vmatpush.bf16.msrb.mxu0 %v3764_v24  ;;  %1129 = vmatpush.bf16.msrb.mxu2 %v3768_v26  ;;  %v4220_v24 = vor.u32 %v5459_v20, %v4219_v19  ;;  %v5455_v26 = vld [vmem:[#allocation8 + $0xac] sm:$0xf0]  ;;  %v4460_v9 = vor.u32 %v5519_v7, %v4459_v6  ;;  %v4395_v6 = vld [vmem:[#allocation8 + $0x220] sm:$0xf] }
  0x91   :  { %v5467_v8 = vld [vmem:[#allocation8 + $0x10c] sm:$0xf0] }
  0x92   :  { %1115 = vmatpush.bf16.msrb.mxu1 %v4020_v25  ;;  %1143 = vmatpush.bf16.msrb.mxu3 %v4024_v30  ;;  %v4203_v25 = vld [vmem:[#allocation8 + $0xa0] sm:$0xf]  ;;  %v5555_v11 = vld [vmem:[#allocation8 + $0x3cc] sm:$0xf0] }
  0x93   :  { %v4204_v30 = vor.u32 %v5455_v26, %v4203_v25  ;;  %v5623_v13 = vld [vmem:[#allocation8 + $0x5ec] sm:$0xf0]  ;;  %v4604_v14 = vor.u32 %v5555_v11, %v4603_v10 }
  0x94   :  { %1102 = vmatpush.bf16.msrb.mxu0 %v3732_v36  ;;  %1130 = vmatpush.bf16.msrb.mxu2 %v3736_v38  ;;  %v4188_v36 = vor.u32 %v5451_v32, %v4187_v31  ;;  %v5447_v38 = vld [vmem:[#allocation8 + $0x6c] sm:$0xf0]  ;;  %v4587_v32 = vld [vmem:[#allocation8 + $0x3a0] sm:$0xf] }
  0x95   :  { %v5587_v19 = vld [vmem:[#allocation8 + $0x4cc] sm:$0xf0] }
  0x96   :  { %1116 = vmatpush.bf16.msrb.mxu1 %v3988_v37  ;;  %1144 = vmatpush.bf16.msrb.mxu3 %v3992_v42  ;;  %v4171_v37 = vld [vmem:[#allocation8 + $0x60] sm:$0xf]  ;;  %v5527_v42 = vld [vmem:[#allocation8 + $0x2ec] sm:$0xf0] }
  0x97   :  { %v4492_v43 = vor.u32 %v5527_v42, %v4491_v41  ;;  %v5515_v22 = vld [vmem:[#allocation8 + $0x28c] sm:$0xf0] }
  0x98   :  { %1103 = vmatpush.bf16.msrb.mxu0 %v3700_v48  ;;  %1131 = vmatpush.bf16.msrb.mxu2 %v3704_v50  ;;  %v5475_v48 = vld [vmem:[#allocation8 + $0x14c] sm:$0xf0]  ;;  %v4475_v50 = vld [vmem:[#allocation8 + $0x2c0] sm:$0xf] }
  0x99   :  { %v4284_v55 = vor.u32 %v5475_v48, %v4283_v47  ;;  %v4476_v57 = vor.u32 %v5523_v51, %v4475_v50  ;;  %v5619_v25 = vld [vmem:[#allocation8 + $0x5cc] sm:$0xf0]  ;;  %v4683_v47 = vld [vmem:[#allocation8 + $0x460] sm:$0xf] }
  0x9a   :  { %1117 = vmatpush.bf16.msrb.mxu1 %v3956_v49  ;;  %1145 = vmatpush.bf16.msrb.mxu3 %v3960_v54  ;;  %v4156_v49 = vor.u32 %v5443_v45, %v4155_v44  ;;  %v5439_v54 = vld [vmem:[#allocation8 + $0x2c] sm:$0xf0]  ;;  %v4571_v45 = vld [vmem:[#allocation8 + $0x380] sm:$0xf] }
  0x9b   :  { %v5583_v28 = vld [vmem:[#allocation8 + $0x4ac] sm:$0xf0] }
  0x9c   :  { %1104 = vmatpush.bf16.msrb.mxu0 %v3668_v61  ;;  %1132 = vmatpush.bf16.msrb.mxu2 %v3672_v1  ;;  %v4620_v61 = vor.u32 %v5559_v58, %v4619_v52  ;;  %v5435_v1 = vld [vmem:[#allocation8 + $0xc] sm:$0xf0]  ;;  %v4411_v52 = vld [vmem:[#allocation8 + $0x240] sm:$0xf] }
  0x9d   :  { %v5575_v50 = vld [vmem:[#allocation8 + $0x46c] sm:$0xf0] }
  0x9e   :  { %1118 = vmatpush.bf16.msrb.mxu1 %v3924_v0  ;;  %1146 = vmatpush.bf16.msrb.mxu3 %v3928_v5  ;;  %v4140_v0 = vor.u32 %v5439_v54, %v4139_v53  ;;  %v4251_v5 = vld [vmem:[#allocation8 + $0x100] sm:$0xf]  ;;  %v4684_v51 = vor.u32 %v5575_v50, %v4683_v47  ;;  %v5507_v53 = vld [vmem:[#allocation8 + $0x24c] sm:$0xf0] }
  0x9f   :  { %v4827_v54 = vld [vmem:[#allocation8 + $0x580] sm:$0xf]  ;;  %v5611_v58 = vld [vmem:[#allocation8 + $0x58c] sm:$0xf0] }
  0xa0   :  { %1105 = vmatpush.bf16.msrb.mxu0 %v3636_v12  ;;  %1133 = vmatpush.bf16.msrb.mxu2 %v3640_v16  ;;  %v4875_v12 = vld [vmem:[#allocation8 + $0x5e0] sm:$0xf]  ;;  %v4748_v16 = vor.u32 %v5591_v3, %v4747_v2  ;;  %v4828_v60 = vor.u32 %v5611_v58, %v4827_v54  ;;  %v5503_v7 = vld [vmem:[#allocation8 + $0x22c] sm:$0xf0] }
  0xa1   :  { %v4876_v20 = vor.u32 %v5623_v13, %v4875_v12  ;;  %v4667_v3 = vld [vmem:[#allocation8 + $0x440] sm:$0xf]  ;;  %v4396_v11 = vor.u32 %v5503_v7, %v4395_v6  ;;  %v5607_v12 = vld [vmem:[#allocation8 + $0x56c] sm:$0xf0]  ;;  %v5493_v7 = vld [vmem:[#allocation8 + $0x1e4] sm:$0xf] }
  0xa2   :  { %1119 = vmatpush.bf16.msrb.mxu1 %v3892_v15  ;;  %1147 = vmatpush.bf16.msrb.mxu3 %v3896_v17  ;;  %v4124_v15 = vor.u32 %v5435_v1, %v4123_v62  ;;  %v4731_v17 = vld [vmem:[#allocation8 + $0x4c0] sm:$0xf]  ;;  %v5543_v62 = vld [vmem:[#allocation8 + $0x36c] sm:$0xf0] }
  0xa3   :  { %1106 = vmatmul.bf16.vlgmr.msrb.gmra.mxu0 %v6036_v56  ;;  %1134 = vmatmul.bf16.vlgmr.msrb.gmra.mxu2 %v6036_v56  ;;  %v5479_v56 = vld [vmem:[#allocation8 + $0x16c] sm:$0xf0]  ;;  %v4732_v26 = vor.u32 %v5587_v19, %v4731_v17  ;;  %v4651_v17 = vld [vmem:[#allocation8 + $0x420] sm:$0xf] }
  0xa4   :  { %2724 = vmatpush.bf16.msra.mxu0 %v4236_v18  ;;  %v4300_v46 = vor.u32 %v5479_v56, %v4299_v40  ;;  %2752 = vmatpush.bf16.msra.mxu2 %v4492_v43  ;;  %v4252_v18 = vor.u32 %v5467_v8, %v4251_v5  ;;  %v5511_v40 = vld [vmem:[#allocation8 + $0x26c] sm:$0xf0]  ;;  %v4843_v56 = vld [vmem:[#allocation8 + $0x5a0] sm:$0xf] }
  0xa5   :  { %1120 = vmatmul.bf16.vlgmr.msrb.gmra.mxu1 %v6038_v63  ;;  %1148 = vmatmul.bf16.vlgmr.msrb.gmra.mxu3 %v6038_v63  ;;  %v4172_v63 = vor.u32 %v5447_v38, %v4171_v37  ;;  %v5579_v37 = vld [vmem:[#allocation8 + $0x48c] sm:$0xf0]  ;;  %v4811_v8 = vld [vmem:[#allocation8 + $0x560] sm:$0xf] }
  0xa6   :  { %2738 = vmatpush.bf16.msra.mxu1 %v4364_v21  ;;  %2766 = vmatpush.bf16.msra.mxu3 %v4620_v61  ;;  %v4443_v21 = vld [vmem:[#allocation8 + $0x280] sm:$0xf]  ;;  %v4700_v38 = vor.u32 %v5579_v37, %v4699_v34  ;;  %v5599_v50 = vld [vmem:[#allocation8 + $0x52c] sm:$0xf0] }
  0xa7   :  { %v4444_v23 = vor.u32 %v5515_v22, %v4443_v21  ;;  %v4555_v61 = vld [vmem:[#allocation8 + $0x360] sm:$0xf]  ;;  %v5567_v21 = vld [vmem:[#allocation8 + $0x42c] sm:$0xf0] }
  0xa8   :  { %2725 = vmatpush.bf16.msra.mxu0 %v4220_v24  ;;  %2753 = vmatpush.bf16.msra.mxu2 %v4476_v57  ;;  %v4859_v24 = vld [vmem:[#allocation8 + $0x5c0] sm:$0xf]  ;;  %v4412_v57 = vor.u32 %v5507_v53, %v4411_v52  ;;  %v4556_v2 = vor.u32 %v5543_v62, %v4555_v61  ;;  %v5531_v53 = vld [vmem:[#allocation8 + $0x30c] sm:$0xf0]  ;;  %v4221_v61 = vld [vmem:[#allocation8 + $0xd0] sm:$0xf0] }
  0xa9   :  { %v4860_v29 = vor.u32 %v5619_v25, %v4859_v24  ;;  %v4379_v24 = vld [vmem:[#allocation8 + $0x200] sm:$0xf]  ;;  %v5499_v25 = vld [vmem:[#allocation8 + $0x20c] sm:$0xf0] }
  0xaa   :  { %2739 = vmatpush.bf16.msra.mxu1 %v4348_v27  ;;  %2767 = vmatpush.bf16.msra.mxu3 %v4604_v14  ;;  %v4715_v27 = vld [vmem:[#allocation8 + $0x4a0] sm:$0xf]  ;;  %v4812_v14 = vor.u32 %v5607_v12, %v4811_v8  ;;  %v5651_v58 = vld [vmem:[#allocation8 + $0x6cc] sm:$0xf0]  ;;  %v4365_v8 = vld [vmem:[#allocation8 + $0x1f0] sm:$0xf0] }
  0xab   :  { %v4716_v31 = vor.u32 %v5583_v28, %v4715_v27  ;;  %v4380_v28 = vor.u32 %v5499_v25, %v4379_v24  ;;  %v4523_v34 = vld [vmem:[#allocation8 + $0x320] sm:$0xf]  ;;  %v5453_v12 = vld [vmem:[#allocation8 + $0xa4] sm:$0xf] }
  0xac   :  { %2726 = vmatpush.bf16.msra.mxu0 %v4204_v30  ;;  %2754 = vmatpush.bf16.msra.mxu2 %v4460_v9  ;;  %v6056_v30 = vld [vmem:[#allocation7] sm:$0xff]  ;;  %v4507_v52 = vld [vmem:[#allocation8 + $0x300] sm:$0xf]  ;;  %v5449_v24 = vld [vmem:[#allocation8 + $0x84] sm:$0xf] }
  0xad   :  { %v274_v35 = vperm.slane %v6056_v30, 0  ;;  %v4763_v62 = vld [vmem:[#allocation8 + $0x500] sm:$0xf]  ;;  %v276_v25 = vperm.slane %v6056_v30, 2 }
  0xae   :  { %2740 = vmatpush.bf16.msra.mxu1 %v4332_v33  ;;  %v5551_v33 = vld [vmem:[#allocation8 + $0x3ac] sm:$0xf0] }
  0xb0   :  { %2727 = vmatpush.bf16.msra.mxu0 %v4188_v36  ;;  %2755 = vmatpush.bf16.msra.mxu2 %v4444_v23  ;;  %v4588_v36 = vor.u32 %v5551_v33, %v4587_v32  ;;  %v4652_v23 = vor.u32 %v5567_v21, %v4651_v17  ;;  %v5489_v17 = vld [vmem:[#allocation8 + $0x1c4] sm:$0xf] }
  0xb2   :  { %2741 = vmatpush.bf16.msra.mxu1 %v4316_v39  ;;  %v4427_v39 = vld [vmem:[#allocation8 + $0x260] sm:$0xf]  ;;  %2768 = vmatpush.bf16.msra.mxu3 %v4588_v36 }
  0xb3   :  { %v4428_v42 = vor.u32 %v5511_v40, %v4427_v39  ;;  %v4635_v39 = vld [vmem:[#allocation8 + $0x400] sm:$0xf]  ;;  %v5563_v40 = vld [vmem:[#allocation8 + $0x40c] sm:$0xf0] }
  0xb4   :  { %2728 = vmatpush.bf16.msra.mxu0 %v4172_v63  ;;  %v5615_v63 = vld [vmem:[#allocation8 + $0x5ac] sm:$0xf0] }
  0xb5   :  { %v4844_v44 = vor.u32 %v5615_v63, %v4843_v56  ;;  %2756 = vmatpush.bf16.msra.mxu2 %v4428_v42  ;;  %v5003_v56 = vld [vmem:[#allocation8 + $0x6e0] sm:$0xf]  ;;  %v4636_v42 = vor.u32 %v5563_v40, %v4635_v39  ;;  %v5655_v63 = vld [vmem:[#allocation8 + $0x6ec] sm:$0xf0]  ;;  %v5445_v40 = vld [vmem:[#allocation8 + $0x64] sm:$0xf] }
  0xb6   :  { %2742 = vmatpush.bf16.msra.mxu1 %v4300_v46  ;;  %v5547_v46 = vld [vmem:[#allocation8 + $0x38c] sm:$0xf0]  ;;  %v5004_v47 = vor.u32 %v5655_v63, %v5003_v56  ;;  %v4173_v63 = vld [vmem:[#allocation8 + $0x70] sm:$0xf0] }
  0xb7   :  { %v5639_v39 = vld [vmem:[#allocation8 + $0x66c] sm:$0xf0] }
  0xb8   :  { %2729 = vmatpush.bf16.msra.mxu0 %v4156_v49  ;;  %v4572_v49 = vor.u32 %v5547_v46, %v4571_v45 }
  0xb9   :  { %2757 = vmatpush.bf16.msra.mxu2 %v4412_v57  ;;  %v4987_v57 = vld [vmem:[#allocation8 + $0x6c0] sm:$0xf] }
  0xba   :  { %2743 = vmatpush.bf16.msra.mxu1 %v4284_v55  ;;  %v275_v55 = vperm.slane %v6056_v30, 1  ;;  %2769 = vmatpush.bf16.msra.mxu3 %v4572_v49  ;;  %v4779_v49 = vld [vmem:[#allocation8 + $0x520] sm:$0xf] }
  0xbc   :  { %2730 = vmatpush.bf16.msra.mxu0 %v4140_v0 }
  0xbd   :  { %2758 = vmatpush.bf16.msra.mxu2 %v4396_v11  ;;  %v5647_v11 = vld [vmem:[#allocation8 + $0x6ac] sm:$0xf0] }
  0xbe   :  { %2744 = vmatpush.bf16.msra.mxu1 %v4268_v4  ;;  %v5571_v4 = vld [vmem:[#allocation8 + $0x44c] sm:$0xf0]  ;;  %2770 = vmatpush.bf16.msra.mxu3 %v4556_v2 }
  0xbf   :  { %v4668_v5 = vor.u32 %v5571_v4, %v4667_v3  ;;  %v5595_v2 = vld [vmem:[#allocation8 + $0x50c] sm:$0xf0]  ;;  %v5131_v3 = vld [vmem:[#allocation8 + $0x7e0] sm:$0xf] }
  0xc0   :  { %2731 = vmatpush.bf16.msra.mxu0 %v4124_v15  ;;  %v939_v41 = vpop.f32.mrf.mxu0  ;;  %v4539_v15 = vld [vmem:[#allocation8 + $0x340] sm:$0xf]  ;;  %v5687_v4 = vld [vmem:[#allocation8 + $0x7ec] sm:$0xf0] }
  0xc1   :  { %v940_v48 = vadd.f32 %v939_v41, %v274_v35  ;;  %2759 = vmatpush.bf16.msra.mxu2 %v4380_v28  ;;  %v5132_v6 = vor.u32 %v5687_v4, %v5131_v3  ;;  %v4301_v4 = vld [vmem:[#allocation8 + $0x170] sm:$0xf0] }
  0xc2   :  { %2745 = vmatpush.bf16.msra.mxu1 %v4252_v18  ;;  %v953_v43 = vpop.f32.mrf.mxu1 }
  0xc3   :  { %v954_v0 = vadd.f32 %v953_v43, %v940_v48  ;;  %v5461_v43 = vld [vmem:[#allocation8 + $0xe4] sm:$0xf] }
  0xc4   :  { %2780 = vmatpush.bf16.msrb.mxu0 %v4748_v16  ;;  %v5539_v16 = vld [vmem:[#allocation8 + $0x34c] sm:$0xf0] }
  0xc5   :  { %v1154_v18 = vmax.f32 %v954_v0, 0.0  ;;  %2808 = vmatpush.bf16.msrb.mxu2 %v5004_v47  ;;  %v5481_v47 = vld [vmem:[#allocation8 + $0x184] sm:$0xf] }
  0xc6   :  { %2794 = vmatpush.bf16.msrb.mxu1 %v4876_v20  ;;  %v967_v59 = vpop.f32.mrf.mxu2  ;;  %v4540_v20 = vor.u32 %v5539_v16, %v4539_v15  ;;  %v5115_v15 = vld [vmem:[#allocation8 + $0x7c0] sm:$0xf]  ;;  %v5683_v16 = vld [vmem:[#allocation8 + $0x7cc] sm:$0xf0] }
  0xc7   :  { %v968_v9 = vadd.f32 %v967_v59, %v275_v55  ;;  %v4988_v59 = vor.u32 %v5651_v58, %v4987_v57  ;;  %v4157_v57 = vld [vmem:[#allocation8 + $0x50] sm:$0xf0] }
  0xc8   :  { %2781 = vmatpush.bf16.msrb.mxu0 %v4732_v26  ;;  %v981_v1 = vpop.f32.mrf.mxu3  ;;  %v941_v10 = vpop.f32.mrf.mxu0  ;;  %v4795_v26 = vld [vmem:[#allocation8 + $0x540] sm:$0xf]  ;;  %2771 = vmatpush.bf16.msra.mxu3 %v4540_v20  ;;  %v4349_v20 = vld [vmem:[#allocation8 + $0x1d0] sm:$0xf0] }
  0xc9   :  { %v942_v13 = vadd.f32 %v941_v10, %v274_v35  ;;  %v982_v27 = vadd.f32 %v981_v1, %v968_v9  ;;  %v5535_v35 = vld [vmem:[#allocation8 + $0x32c] sm:$0xf0]  ;;  %v4971_v9 = vld [vmem:[#allocation8 + $0x6a0] sm:$0xf]  ;;  %2809 = vmatpush.bf16.msrb.mxu2 %v4988_v59  ;;  %v4368_v10 = vor.u32 %v5493_v7, %v4365_v8  ;;  %v4352_v21 = vor.u32 %v5489_v17, %v4349_v20 }
  0xca   :  { %2795 = vmatpush.bf16.msrb.mxu1 %v4860_v29  ;;  %v955_v19 = vpop.f32.mrf.mxu1  ;;  %v5603_v29 = vld [vmem:[#allocation8 + $0x54c] sm:$0xf0]  ;;  %v4907_v8 = vld [vmem:[#allocation8 + $0x620] sm:$0xf] }
  0xcb   :  { %v956_v22 = vadd.f32 %v955_v19, %v942_v13  ;;  %v4796_v33 = vor.u32 %v5603_v29, %v4795_v26  ;;  %v1155_v45 = vmax.f32 %v982_v27, 0.0  ;;  %v4205_v13 = vld [vmem:[#allocation8 + $0xb0] sm:$0xf0]  ;;  %v5116_v19 = vor.u32 %v5683_v16, %v5115_v15  ;;  %v5099_v29 = vld [vmem:[#allocation8 + $0x7a0] sm:$0xf] }
  0xcc   :  { %2782 = vmatpush.bf16.msrb.mxu0 %v4716_v31  ;;  %v4189_v27 = vld [vmem:[#allocation8 + $0x90] sm:$0xf0]  ;;  %v5051_v17 = vld [vmem:[#allocation8 + $0x740] sm:$0xf] }
  0xcd   :  { %v1162_v31 = vmax.f32 %v956_v22, 0.0  ;;  %v4955_v22 = vld [vmem:[#allocation8 + $0x680] sm:$0xf]  ;;  %v4192_v28 = vor.u32 %v5449_v24, %v4189_v27 }
  0xce   :  { %2796 = vmatpush.bf16.msrb.mxu1 %v4844_v44  ;;  %v969_v32 = vpop.f32.mrf.mxu2  ;;  %v4237_v44 = vld [vmem:[#allocation8 + $0xf0] sm:$0xf0]  ;;  %v4891_v24 = vld [vmem:[#allocation8 + $0x600] sm:$0xf] }
  0xcf   :  { %v970_v36 = vadd.f32 %v969_v32, %v275_v55  ;;  %v6060_v41 = vpack.c.bf16 %v1162_v31, %v1154_v18  ;;  %v4240_v48 = vor.u32 %v5461_v43, %v4237_v44  ;;  %v4508_v55 = vor.u32 %v5531_v53, %v4507_v52  ;;  %v5679_v31 = vld [vmem:[#allocation8 + $0x7ac] sm:$0xf0]  ;;  %v5485_v32 = vld [vmem:[#allocation8 + $0x1a4] sm:$0xf]  ;;  %v5083_v44 = vld [vmem:[#allocation8 + $0x780] sm:$0xf] }
  0xd0   :  { %2783 = vmatpush.bf16.msrb.mxu0 %v4700_v38  ;;  %v983_v37 = vpop.f32.mrf.mxu3  ;;  %v4524_v38 = vor.u32 %v5535_v35, %v4523_v34  ;;  %v4208_v18 = vor.u32 %v5453_v12, %v4205_v13  ;;  %v5100_v34 = vor.u32 %v5679_v31, %v5099_v29  ;;  %v4333_v35 = vld [vmem:[#allocation8 + $0x1b0] sm:$0xf0]  ;;  %v4176_v43 = vor.u32 %v5445_v40, %v4173_v63  ;;  %v5525_v31 = vld [vmem:[#allocation8 + $0x2e4] sm:$0xf]  ;;  %v5663_v40 = vld [vmem:[#allocation8 + $0x72c] sm:$0xf0] }
  0xd1   :  { %v984_v46 = vadd.f32 %v983_v37, %v970_v36  ;;  %2732 = vmatmul.bf16.vlgmr.msra.gmra.mxu0 %v6060_v41  ;;  %v4336_v37 = vor.u32 %v5485_v32, %v4333_v35  ;;  %v277_v53 = vperm.slane %v6056_v30, 3  ;;  %v4125_v29 = vld [vmem:[#allocation8 + $0x10] sm:$0xf0] }
  0xd2   :  { %2797 = vmatpush.bf16.msrb.mxu1 %v4828_v60  ;;  %2772 = vmatpush.bf16.msra.mxu3 %v4524_v38  ;;  %v5457_v60 = vld [vmem:[#allocation8 + $0xc4] sm:$0xf]  ;;  %v4939_v38 = vld [vmem:[#allocation8 + $0x660] sm:$0xf]  ;;  %v4493_v35 = vld [vmem:[#allocation8 + $0x2f0] sm:$0xf0] }
  0xd3   :  { %v1163_v54 = vmax.f32 %v984_v46, 0.0  ;;  %v4224_v1 = vor.u32 %v5457_v60, %v4221_v61  ;;  %v5067_v60 = vld [vmem:[#allocation8 + $0x760] sm:$0xf]  ;;  %v5671_v61 = vld [vmem:[#allocation8 + $0x76c] sm:$0xf0] }
  0xd4   :  { %2784 = vmatpush.bf16.msrb.mxu0 %v4684_v51  ;;  %v4780_v51 = vor.u32 %v5599_v50, %v4779_v49  ;;  %v4923_v50 = vld [vmem:[#allocation8 + $0x640] sm:$0xf]  ;;  %v5068_v3 = vor.u32 %v5671_v61, %v5067_v60  ;;  %v4269_v63 = vld [vmem:[#allocation8 + $0x130] sm:$0xf0]  ;;  %v5517_v61 = vld [vmem:[#allocation8 + $0x2a4] sm:$0xf] }
  0xd5   :  { %v6063_v0 = vpack.c.bf16 %v1163_v54, %v1155_v45  ;;  %v5675_v45 = vld [vmem:[#allocation8 + $0x78c] sm:$0xf0] }
  0xd6   :  { %2798 = vmatpush.bf16.msrb.mxu1 %v4812_v14  ;;  %2773 = vmatpush.bf16.msra.mxu3 %v4508_v55  ;;  %v4972_v14 = vor.u32 %v5647_v11, %v4971_v9  ;;  %v5084_v46 = vor.u32 %v5675_v45, %v5083_v44  ;;  %v5441_v55 = vld [vmem:[#allocation8 + $0x44] sm:$0xf]  ;;  %v5631_v9 = vld [vmem:[#allocation8 + $0x62c] sm:$0xf0] }
  0xd7   :  { %2746 = vmatmul.bf16.vlgmr.msra.gmra.mxu1 %v6063_v0  ;;  %v4160_v59 = vor.u32 %v5441_v55, %v4157_v57  ;;  %v4908_v13 = vor.u32 %v5631_v9, %v4907_v8  ;;  %v5557_v57 = vld [vmem:[#allocation8 + $0x3e4] sm:$0xf]  ;;  %v4589_v9 = vld [vmem:[#allocation8 + $0x3b0] sm:$0xf0] }
  0xd8   :  { %2785 = vmatpush.bf16.msrb.mxu0 %v4668_v5  ;;  %v4764_v5 = vor.u32 %v5595_v2, %v4763_v62  ;;  %2810 = vmatpush.bf16.msrb.mxu2 %v4972_v14  ;;  %v5477_v62 = vld [vmem:[#allocation8 + $0x164] sm:$0xf]  ;;  %v4141_v14 = vld [vmem:[#allocation8 + $0x30] sm:$0xf0] }
  0xd9   :  { %v4304_v7 = vor.u32 %v5477_v62, %v4301_v4  ;;  %v4461_v62 = vld [vmem:[#allocation8 + $0x2b0] sm:$0xf0]  ;;  %v5549_v8 = vld [vmem:[#allocation8 + $0x3a4] sm:$0xf] }
  0xda   :  { %2799 = vmatpush.bf16.msrb.mxu1 %v4796_v33  ;;  %2822 = vmatpush.bf16.msrb.mxu3 %v5132_v6 }
  0xdc   :  { %2786 = vmatpush.bf16.msrb.mxu0 %v4652_v23  ;;  %v5643_v23 = vld [vmem:[#allocation8 + $0x68c] sm:$0xf0] }
  0xdd   :  { %v4956_v26 = vor.u32 %v5643_v23, %v4955_v22 }
  0xde   :  { %2800 = vmatpush.bf16.msrb.mxu1 %v4780_v51  ;;  %2823 = vmatpush.bf16.msrb.mxu3 %v5116_v19  ;;  %v5635_v51 = vld [vmem:[#allocation8 + $0x64c] sm:$0xf0]  ;;  %v5473_v19 = vld [vmem:[#allocation8 + $0x144] sm:$0xf] }
  0xdf   :  { %2811 = vmatpush.bf16.msrb.mxu2 %v4956_v26  ;;  %v4924_v54 = vor.u32 %v5635_v51, %v4923_v50  ;;  %v5659_v50 = vld [vmem:[#allocation8 + $0x70c] sm:$0xf0] }
  0xe0   :  { %2787 = vmatpush.bf16.msrb.mxu0 %v4636_v42  ;;  %v995_v33 = vpop.f32.mrf.mxu0  ;;  %v4940_v42 = vor.u32 %v5639_v39, %v4939_v38  ;;  %v4496_v38 = vor.u32 %v5525_v31, %v4493_v35  ;;  %v5035_v39 = vld [vmem:[#allocation8 + $0x720] sm:$0xf]  ;;  %v4397_v35 = vld [vmem:[#allocation8 + $0x230] sm:$0xf0] }
  0xe1   :  { %v996_v56 = vadd.f32 %v995_v33, %v276_v25 }
  0xe2   :  { %2801 = vmatpush.bf16.msrb.mxu1 %v4764_v5  ;;  %v1009_v36 = vpop.f32.mrf.mxu1  ;;  %2824 = vmatpush.bf16.msrb.mxu3 %v5100_v34 }
  0xe3   :  { %2812 = vmatpush.bf16.msrb.mxu2 %v4940_v42  ;;  %v1010_v52 = vadd.f32 %v1009_v36, %v996_v56  ;;  %v5469_v56 = vld [vmem:[#allocation8 + $0x124] sm:$0xf]  ;;  %v5036_v42 = vor.u32 %v5663_v40, %v5035_v39 }
  0xe4   :  { %2836 = vmatpush.bf16.msra.mxu0 %v4240_v48  ;;  %v4317_v48 = vld [vmem:[#allocation8 + $0x190] sm:$0xf0]  ;;  %v4272_v45 = vor.u32 %v5469_v56, %v4269_v63  ;;  %v5537_v40 = vld [vmem:[#allocation8 + $0x344] sm:$0xf] }
  0xe5   :  { %v4320_v49 = vor.u32 %v5481_v47, %v4317_v48  ;;  %v1156_v11 = vmax.f32 %v1010_v52, 0.0  ;;  %v4477_v47 = vld [vmem:[#allocation8 + $0x2d0] sm:$0xf0]  ;;  %v5465_v52 = vld [vmem:[#allocation8 + $0x104] sm:$0xf] }
  0xe6   :  { %2850 = vmatpush.bf16.msra.mxu1 %v4368_v10  ;;  %2825 = vmatpush.bf16.msrb.mxu3 %v5084_v46  ;;  %v1023_v58 = vpop.f32.mrf.mxu2  ;;  %v5437_v10 = vld [vmem:[#allocation8 + $0x24] sm:$0xf]  ;;  %v4541_v56 = vld [vmem:[#allocation8 + $0x350] sm:$0xf0] }
  0xe7   :  { %2813 = vmatpush.bf16.msrb.mxu2 %v4924_v54  ;;  %v1024_v12 = vadd.f32 %v1023_v58, %v277_v53  ;;  %v4144_v16 = vor.u32 %v5437_v10, %v4141_v14  ;;  %v5521_v46 = vld [vmem:[#allocation8 + $0x2c4] sm:$0xf]  ;;  %v4621_v58 = vld [vmem:[#allocation8 + $0x3f0] sm:$0xf0]  ;;  %v278_v10 = vperm.slane %v6056_v30, 4 }
  0xe8   :  { %2837 = vmatpush.bf16.msra.mxu0 %v4224_v1  ;;  %v997_v1 = vpop.f32.mrf.mxu0  ;;  %v1037_v2 = vpop.f32.mrf.mxu3  ;;  %v4480_v48 = vor.u32 %v5521_v46, %v4477_v47  ;;  %v4624_v60 = vor.u32 %v5557_v57, %v4621_v58  ;;  %v4429_v14 = vld [vmem:[#allocation8 + $0x270] sm:$0xf0]  ;;  %v5497_v46 = vld [vmem:[#allocation8 + $0x204] sm:$0xf] }
  0xe9   :  { %v998_v5 = vadd.f32 %v997_v1, %v276_v25  ;;  %v5627_v25 = vld [vmem:[#allocation8 + $0x60c] sm:$0xf0]  ;;  %v1038_v26 = vadd.f32 %v1037_v2, %v1024_v12  ;;  %v4464_v1 = vor.u32 %v5517_v61, %v4461_v62  ;;  %v5553_v2 = vld [vmem:[#allocation8 + $0x3c4] sm:$0xf]  ;;  %v4592_v12 = vor.u32 %v5549_v8, %v4589_v9  ;;  %v4381_v47 = vld [vmem:[#allocation8 + $0x210] sm:$0xf0] }
  0xea   :  { %2851 = vmatpush.bf16.msra.mxu1 %v4352_v21  ;;  %v1011_v6 = vpop.f32.mrf.mxu1  ;;  %2826 = vmatpush.bf16.msrb.mxu3 %v5068_v3  ;;  %v4285_v21 = vld [vmem:[#allocation8 + $0x150] sm:$0xf0]  ;;  %v4892_v27 = vor.u32 %v5627_v25, %v4891_v24  ;;  %v279_v24 = vperm.slane %v6056_v30, 5  ;;  %v5541_v25 = vld [vmem:[#allocation8 + $0x364] sm:$0xf] }
  0xeb   :  { %v1012_v15 = vadd.f32 %v1011_v6, %v998_v5  ;;  %2814 = vmatpush.bf16.msrb.mxu2 %v4908_v13  ;;  %v4288_v23 = vor.u32 %v5473_v19, %v4285_v21  ;;  %v4605_v3 = vld [vmem:[#allocation8 + $0x3d0] sm:$0xf0]  ;;  %v5513_v5 = vld [vmem:[#allocation8 + $0x284] sm:$0xf] }
  0xec   :  { %2838 = vmatpush.bf16.msra.mxu0 %v4208_v18  ;;  %v5667_v18 = vld [vmem:[#allocation8 + $0x74c] sm:$0xf0]  ;;  %v4608_v4 = vor.u32 %v5553_v2, %v4605_v3  ;;  %v4445_v6 = vld [vmem:[#allocation8 + $0x290] sm:$0xf0]  ;;  %v5509_v13 = vld [vmem:[#allocation8 + $0x264] sm:$0xf] }
  0xed   :  { %v5052_v20 = vor.u32 %v5667_v18, %v5051_v17  ;;  %v1164_v22 = vmax.f32 %v1012_v15, 0.0  ;;  %v5545_v17 = vld [vmem:[#allocation8 + $0x384] sm:$0xf]  ;;  %v4573_v18 = vld [vmem:[#allocation8 + $0x390] sm:$0xf0] }
  0xee   :  { %2852 = vmatpush.bf16.msra.mxu1 %v4336_v37  ;;  %v1025_v33 = vpop.f32.mrf.mxu2  ;;  %v5505_v21 = vld [vmem:[#allocation8 + $0x244] sm:$0xf]  ;;  %v4525_v58 = vld [vmem:[#allocation8 + $0x330] sm:$0xf0] }
  0xef   :  { %2827 = vmatpush.bf16.msrb.mxu3 %v5052_v20  ;;  %v6068_v32 = vpack.c.bf16 %v1164_v22, %v1156_v11  ;;  %v1026_v36 = vadd.f32 %v1025_v33, %v277_v53  ;;  %2815 = vmatpush.bf16.msrb.mxu2 %v4892_v27  ;;  %v4253_v53 = vld [vmem:[#allocation8 + $0x110] sm:$0xf0]  ;;  %v4576_v20 = vor.u32 %v5545_v17, %v4573_v18  ;;  %v5533_v57 = vld [vmem:[#allocation8 + $0x324] sm:$0xf] }
  0xf0   :  { %2839 = vmatpush.bf16.msra.mxu0 %v4192_v28  ;;  %v5433_v28 = vld [vmem:[#allocation8 + $0x4] sm:$0xf]  ;;  %v1039_v37 = vpop.f32.mrf.mxu3  ;;  %v4256_v55 = vor.u32 %v5465_v52, %v4253_v53  ;;  %v4413_v22 = vld [vmem:[#allocation8 + $0x250] sm:$0xf0]  ;;  %v4528_v62 = vor.u32 %v5533_v57, %v4525_v58 }
  0xf1   :  { %v4128_v34 = vor.u32 %v5433_v28, %v4125_v29  ;;  %2760 = vmatmul.bf16.vlgmr.msra.gmra.mxu2 %v6068_v32  ;;  %v1040_v44 = vadd.f32 %v1039_v37, %v1026_v36  ;;  %v5585_v52 = vld [vmem:[#allocation8 + $0x4c4] sm:$0xf]  ;;  %v4877_v2 = vld [vmem:[#allocation8 + $0x5f0] sm:$0xf0] }
  0xf2   :  { %2853 = vmatpush.bf16.msra.mxu1 %v4320_v49  ;;  %v5019_v49 = vld [vmem:[#allocation8 + $0x700] sm:$0xf]  ;;  %v5581_v8 = vld [vmem:[#allocation8 + $0x4a4] sm:$0xf]  ;;  %v4717_v9 = vld [vmem:[#allocation8 + $0x4b0] sm:$0xf0] }
  0xf3   :  { %2864 = vmatpush.bf16.msra.mxu2 %v4496_v38  ;;  %v1165_v51 = vmax.f32 %v1040_v44, 0.0  ;;  %2828 = vmatpush.bf16.msrb.mxu3 %v5036_v42  ;;  %v5020_v54 = vor.u32 %v5659_v50, %v5019_v49  ;;  %v4749_v44 = vld [vmem:[#allocation8 + $0x4f0] sm:$0xf0]  ;;  %v4384_v49 = vor.u32 %v5497_v46, %v4381_v47  ;;  %v5577_v17 = vld [vmem:[#allocation8 + $0x484] sm:$0xf] }
  0xf4   :  { %2840 = vmatpush.bf16.msra.mxu0 %v4176_v43  ;;  %v1157_v43 = vmax.f32 %v1038_v26, 0.0  ;;  %v4557_v26 = vld [vmem:[#allocation8 + $0x370] sm:$0xf0]  ;;  %v5653_v57 = vld [vmem:[#allocation8 + $0x6e4] sm:$0xf] }
  0xf5   :  { %v4560_v33 = vor.u32 %v5541_v25, %v4557_v26  ;;  %v4701_v18 = vld [vmem:[#allocation8 + $0x490] sm:$0xf0] }
  0xf6   :  { %2854 = vmatpush.bf16.msra.mxu1 %v4304_v7  ;;  %v4448_v7 = vor.u32 %v5513_v5, %v4445_v6  ;;  %v5529_v6 = vld [vmem:[#allocation8 + $0x304] sm:$0xf] }
  0xf7   :  { %2865 = vmatpush.bf16.msra.mxu2 %v4480_v48  ;;  %2829 = vmatpush.bf16.msrb.mxu3 %v5020_v54 }
  0xf8   :  { %2841 = vmatpush.bf16.msra.mxu0 %v4160_v59  ;;  %v6071_v59 = vpack.c.bf16 %v1165_v51, %v1157_v43  ;;  %v5589_v43 = vld [vmem:[#allocation8 + $0x4e4] sm:$0xf] }
  0xf9   :  { %v4752_v51 = vor.u32 %v5589_v43, %v4749_v44  ;;  %v281_v43 = vperm.slane %v6056_v30, 7 }
  0xfa   :  { %2855 = vmatpush.bf16.msra.mxu1 %v4288_v23  ;;  %2774 = vmatmul.bf16.vlgmr.msra.gmra.mxu3 %v6071_v59  ;;  %v4416_v23 = vor.u32 %v5505_v21, %v4413_v22  ;;  %v5613_v21 = vld [vmem:[#allocation8 + $0x5a4] sm:$0xf]  ;;  %v4845_v22 = vld [vmem:[#allocation8 + $0x5b0] sm:$0xf0] }
  0xfb   :  { %2878 = vmatpush.bf16.msra.mxu3 %v4624_v60  ;;  %2866 = vmatpush.bf16.msra.mxu2 %v4464_v1  ;;  %v5621_v1 = vld [vmem:[#allocation8 + $0x5e4] sm:$0xf]  ;;  %v4848_v26 = vor.u32 %v5613_v21, %v4845_v22  ;;  %v4765_v21 = vld [vmem:[#allocation8 + $0x510] sm:$0xf0] }
  0xfc   :  { %2842 = vmatpush.bf16.msra.mxu0 %v4144_v16  ;;  %v4432_v16 = vor.u32 %v5509_v13, %v4429_v14  ;;  %v4720_v14 = vor.u32 %v5581_v8, %v4717_v9  ;;  %v5649_v9 = vld [vmem:[#allocation8 + $0x6c4] sm:$0xf] }
  0xfd   :  { %v5685_v22 = vld [vmem:[#allocation8 + $0x7e4] sm:$0xf] }
  0xfe   :  { %2856 = vmatpush.bf16.msra.mxu1 %v4272_v45  ;;  %v4544_v45 = vor.u32 %v5537_v40, %v4541_v56  ;;  %v4813_v40 = vld [vmem:[#allocation8 + $0x570] sm:$0xf0]  ;;  %v5565_v56 = vld [vmem:[#allocation8 + $0x424] sm:$0xf] }
  0xff   :  { %2879 = vmatpush.bf16.msra.mxu3 %v4608_v4  ;;  %2867 = vmatpush.bf16.msra.mxu2 %v4448_v7  ;;  %v4509_v7 = vld [vmem:[#allocation8 + $0x310] sm:$0xf0] }
 0x100   :  { %2843 = vmatpush.bf16.msra.mxu0 %v4128_v34  ;;  %v1051_v11 = vpop.f32.mrf.mxu0  ;;  %v5501_v34 = vld [vmem:[#allocation8 + $0x224] sm:$0xf] }
 0x101   :  { %v1052_v19 = vadd.f32 %v1051_v11, %v278_v10  ;;  %v4400_v38 = vor.u32 %v5501_v34, %v4397_v35  ;;  %v4512_v11 = vor.u32 %v5529_v6, %v4509_v7  ;;  %v5569_v34 = vld [vmem:[#allocation8 + $0x444] sm:$0xf]  ;;  %v4669_v35 = vld [vmem:[#allocation8 + $0x450] sm:$0xf0] }
 0x102   :  { %2857 = vmatpush.bf16.msra.mxu1 %v4256_v55  ;;  %v1065_v15 = vpop.f32.mrf.mxu1  ;;  %v4733_v55 = vld [vmem:[#allocation8 + $0x4d0] sm:$0xf0] }
 0x103   :  { %2880 = vmatpush.bf16.msra.mxu3 %v4592_v12  ;;  %2868 = vmatpush.bf16.msra.mxu2 %v4432_v16  ;;  %v1066_v27 = vadd.f32 %v1065_v15, %v1052_v19  ;;  %v4736_v5 = vor.u32 %v5585_v52, %v4733_v55  ;;  %v4880_v12 = vor.u32 %v5621_v1, %v4877_v2  ;;  %v5617_v15 = vld [vmem:[#allocation8 + $0x5c4] sm:$0xf]  ;;  %v4861_v16 = vld [vmem:[#allocation8 + $0x5d0] sm:$0xf0] }
 0x104   :  { %v4864_v19 = vor.u32 %v5617_v15, %v4861_v16  ;;  %v4637_v55 = vld [vmem:[#allocation8 + $0x410] sm:$0xf0]  ;;  %v5460_v15 = vld [vmem:[#allocation8 + $0xd4] sm:$0xf0] }
 0x105   :  { %v1158_v42 = vmax.f32 %v1066_v27, 0.0  ;;  %v280_v27 = vperm.slane %v6056_v30, 6  ;;  %v5464_v30 = vld [vmem:[#allocation8 + $0xf4] sm:$0xf0]  ;;  %v4781_v6 = vld [vmem:[#allocation8 + $0x530] sm:$0xf0] }
 0x106   :  { %v1079_v28 = vpop.f32.mrf.mxu2 }
 0x107   :  { %2881 = vmatpush.bf16.msra.mxu3 %v4576_v20  ;;  %2869 = vmatpush.bf16.msra.mxu2 %v4416_v23  ;;  %v1080_v39 = vadd.f32 %v1079_v28, %v279_v24  ;;  %v4704_v20 = vor.u32 %v5577_v17, %v4701_v18  ;;  %v5573_v23 = vld [vmem:[#allocation8 + $0x464] sm:$0xf] }
 0x108   :  { %v1053_v29 = vpop.f32.mrf.mxu0  ;;  %v1093_v31 = vpop.f32.mrf.mxu3 }
 0x109   :  { %v1054_v36 = vadd.f32 %v1053_v29, %v278_v10  ;;  %v1094_v50 = vadd.f32 %v1093_v31, %v1080_v39  ;;  %v5609_v31 = vld [vmem:[#allocation8 + $0x584] sm:$0xf] }
 0x10a   :  { %v1067_v37 = vpop.f32.mrf.mxu1  ;;  %v5605_v39 = vld [vmem:[#allocation8 + $0x564] sm:$0xf] }
 0x10b   :  { %v1068_v63 = vadd.f32 %v1067_v37, %v1054_v36  ;;  %2882 = vmatpush.bf16.msra.mxu3 %v4560_v33  ;;  %2870 = vmatpush.bf16.msra.mxu2 %v4400_v38  ;;  %v1159_v3 = vmax.f32 %v1094_v50, 0.0  ;;  %v4829_v33 = vld [vmem:[#allocation8 + $0x590] sm:$0xf0]  ;;  %v4672_v38 = vor.u32 %v5569_v34, %v4669_v35  ;;  %v4816_v46 = vor.u32 %v5605_v39, %v4813_v40  ;;  %v5601_v50 = vld [vmem:[#allocation8 + $0x544] sm:$0xf] }
 0x10c   :  { %v4832_v36 = vor.u32 %v5609_v31, %v4829_v33  ;;  %v4973_v31 = vld [vmem:[#allocation8 + $0x6b0] sm:$0xf0]  ;;  %v4211_v33 = vld [vmem:[#allocation8 + $0xa8] sm:$0xf]  ;;  %v5456_v34 = vld [vmem:[#allocation8 + $0xb4] sm:$0xf0] }
 0x10d   :  { %v1166_v48 = vmax.f32 %v1068_v63, 0.0  ;;  %v5681_v40 = vld [vmem:[#allocation8 + $0x7c4] sm:$0xf] }
 0x10e   :  { %v1081_v54 = vpop.f32.mrf.mxu2 }
 0x10f   :  { %v6076_v53 = vpack.c.bf16 %v1166_v48, %v1158_v42  ;;  %v1082_v60 = vadd.f32 %v1081_v54, %v279_v24  ;;  %2883 = vmatpush.bf16.msra.mxu3 %v4544_v45  ;;  %2871 = vmatpush.bf16.msra.mxu2 %v4384_v49  ;;  %v4685_v24 = vld [vmem:[#allocation8 + $0x470] sm:$0xf0]  ;;  %v5561_v54 = vld [vmem:[#allocation8 + $0x404] sm:$0xf] }
 0x110   :  { %v1095_v61 = vpop.f32.mrf.mxu3  ;;  %v4688_v29 = vor.u32 %v5573_v23, %v4685_v24  ;;  %v4653_v42 = vld [vmem:[#allocation8 + $0x430] sm:$0xf0] }
 0x111   :  { %2788 = vmatmul.bf16.vlgmr.msrb.gmra.mxu0 %v6076_v53  ;;  %v1096_v4 = vadd.f32 %v1095_v61, %v1082_v60  ;;  %v4656_v49 = vor.u32 %v5565_v56, %v4653_v42  ;;  %v5005_v60 = vld [vmem:[#allocation8 + $0x6f0] sm:$0xf0]  ;;  %v4243_v61 = vld [vmem:[#allocation8 + $0xe8] sm:$0xf] }
 0x112   :  { %2892 = vmatpush.bf16.msrb.mxu0 %v4752_v51  ;;  %v4797_v51 = vld [vmem:[#allocation8 + $0x550] sm:$0xf0]  ;;  %v5008_v7 = vor.u32 %v5653_v57, %v5005_v60  ;;  %v4244_v8 = vor.u32 %v5464_v30, %v4243_v61  ;;  %v5488_v60 = vld [vmem:[#allocation8 + $0x1b4] sm:$0xf0]  ;;  %v4179_v61 = vld [vmem:[#allocation8 + $0x68] sm:$0xf] }
 0x113   :  { %v1167_v10 = vmax.f32 %v1096_v4, 0.0  ;;  %2884 = vmatpush.bf16.msra.mxu3 %v4528_v62  ;;  %v4800_v1 = vor.u32 %v5601_v50, %v4797_v51  ;;  %v4640_v4 = vor.u32 %v5561_v54, %v4637_v55  ;;  %v5133_v23 = vld [vmem:[#allocation8 + $0x7f0] sm:$0xf0]  ;;  %v5448_v30 = vld [vmem:[#allocation8 + $0x74] sm:$0xf0] }
 0x114   :  { %v5117_v56 = vld [vmem:[#allocation8 + $0x7d0] sm:$0xf0] }
 0x115   :  { %v6079_v13 = vpack.c.bf16 %v1167_v10, %v1159_v3  ;;  %v5120_v50 = vor.u32 %v5681_v40, %v5117_v56  ;;  %v5101_v57 = vld [vmem:[#allocation8 + $0x7b0] sm:$0xf0]  ;;  %v5436_v40 = vld [vmem:[#allocation8 + $0x14] sm:$0xf0] }
 0x116   :  { %2893 = vmatpush.bf16.msrb.mxu0 %v4736_v5  ;;  %v5597_v5 = vld [vmem:[#allocation8 + $0x524] sm:$0xf]  ;;  %v4893_v56 = vld [vmem:[#allocation8 + $0x610] sm:$0xf0] }
 0x117   :  { %2802 = vmatmul.bf16.vlgmr.msrb.gmra.mxu1 %v6079_v13  ;;  %2885 = vmatpush.bf16.msra.mxu3 %v4512_v11  ;;  %v4784_v18 = vor.u32 %v5597_v5, %v4781_v6  ;;  %v4180_v5 = vor.u32 %v5448_v30, %v4179_v61  ;;  %v5085_v6 = vld [vmem:[#allocation8 + $0x790] sm:$0xf0]  ;;  %v5588_v61 = vld [vmem:[#allocation8 + $0x4d4] sm:$0xf0] }
 0x118   :  { %2906 = vmatpush.bf16.msrb.mxu1 %v4880_v12  ;;  %v4989_v12 = vld [vmem:[#allocation8 + $0x6d0] sm:$0xf0] }
 0x11a   :  { %2894 = vmatpush.bf16.msrb.mxu0 %v4720_v14  ;;  %v4227_v14 = vld [vmem:[#allocation8 + $0xc8] sm:$0xf] }
 0x11c   :  { %2907 = vmatpush.bf16.msrb.mxu1 %v4864_v19  ;;  %v5593_v19 = vld [vmem:[#allocation8 + $0x504] sm:$0xf] }
 0x11e   :  { %2895 = vmatpush.bf16.msrb.mxu0 %v4704_v20 }
 0x120   :  { %v1107_v25 = vpop.f32.mrf.mxu0  ;;  %2908 = vmatpush.bf16.msrb.mxu1 %v4848_v26  ;;  %v4228_v26 = vor.u32 %v5460_v15, %v4227_v14  ;;  %v5633_v14 = vld [vmem:[#allocation8 + $0x644] sm:$0xf]  ;;  %v4925_v15 = vld [vmem:[#allocation8 + $0x650] sm:$0xf0] }
 0x121   :  { %2844 = vmatmul.bf16.vlgmr.msra.gmra.mxu0 %v6060_v41  ;;  %v1108_v37 = vadd.f32 %v1107_v25, %v280_v27  ;;  %v4992_v25 = vor.u32 %v5649_v9, %v4989_v12  ;;  %v5444_v12 = vld [vmem:[#allocation8 + $0x54] sm:$0xf0] }
 0x122   :  { %v1121_v28 = vpop.f32.mrf.mxu1  ;;  %2896 = vmatpush.bf16.msrb.mxu0 %v4688_v29  ;;  %v5645_v29 = vld [vmem:[#allocation8 + $0x6a4] sm:$0xf] }
 0x123   :  { %v1122_v47 = vadd.f32 %v1121_v28, %v1108_v37  ;;  %v5496_v28 = vld [vmem:[#allocation8 + $0x1f4] sm:$0xf0]  ;;  %v4768_v37 = vor.u32 %v5593_v19, %v4765_v21  ;;  %v4307_v21 = vld [vmem:[#allocation8 + $0x168] sm:$0xf] }
 0x124   :  { %2909 = vmatpush.bf16.msrb.mxu1 %v4832_v36 }
 0x125   :  { %v1160_v2 = vmax.f32 %v1122_v47, 0.0  ;;  %v4957_v47 = vld [vmem:[#allocation8 + $0x690] sm:$0xf0] }
 0x126   :  { %v1135_v63 = vpop.f32.mrf.mxu2  ;;  %2897 = vmatpush.bf16.msrb.mxu0 %v4672_v38  ;;  %v5136_v38 = vor.u32 %v5685_v22, %v5133_v23  ;;  %v5480_v22 = vld [vmem:[#allocation8 + $0x174] sm:$0xf0]  ;;  %v4928_v23 = vor.u32 %v5633_v14, %v4925_v15  ;;  %v4723_v14 = vld [vmem:[#allocation8 + $0x4a8] sm:$0xf] }
 0x127   :  { %2858 = vmatmul.bf16.vlgmr.msra.gmra.mxu1 %v6063_v0  ;;  %v1136_v62 = vadd.f32 %v1135_v63, %v281_v43  ;;  %v4976_v63 = vor.u32 %v5645_v29, %v4973_v31  ;;  %v4308_v29 = vor.u32 %v5480_v22, %v4307_v21  ;;  %v5665_v31 = vld [vmem:[#allocation8 + $0x744] sm:$0xf]  ;;  %v5584_v15 = vld [vmem:[#allocation8 + $0x4b4] sm:$0xf0]  ;;  %v4611_v22 = vld [vmem:[#allocation8 + $0x3c8] sm:$0xf] }
 0x128   :  { %v1149_v44 = vpop.f32.mrf.mxu3  ;;  %v1109_v45 = vpop.f32.mrf.mxu0  ;;  %2910 = vmatpush.bf16.msrb.mxu1 %v4816_v46  ;;  %v5641_v46 = vld [vmem:[#allocation8 + $0x684] sm:$0xf] }
 0x129   :  { %v1110_v48 = vadd.f32 %v1109_v45, %v280_v27  ;;  %v1150_v16 = vadd.f32 %v1149_v44, %v1136_v62  ;;  %v4371_v27 = vld [vmem:[#allocation8 + $0x1e8] sm:$0xf]  ;;  %v5492_v45 = vld [vmem:[#allocation8 + $0x1d4] sm:$0xf0]  ;;  %v4960_v54 = vor.u32 %v5641_v46, %v4957_v47  ;;  %v5637_v62 = vld [vmem:[#allocation8 + $0x664] sm:$0xf] }
 0x12a   :  { %v1123_v52 = vpop.f32.mrf.mxu1  ;;  %2898 = vmatpush.bf16.msrb.mxu0 %v4656_v49  ;;  %v4372_v39 = vor.u32 %v5496_v28, %v4371_v27  ;;  %v4355_v44 = vld [vmem:[#allocation8 + $0x1c8] sm:$0xf]  ;;  %v5452_v49 = vld [vmem:[#allocation8 + $0x94] sm:$0xf0]  ;;  %v4909_v27 = vld [vmem:[#allocation8 + $0x630] sm:$0xf0] }
 0x12b   :  { %v1124_v58 = vadd.f32 %v1123_v52, %v1110_v48  ;;  %v1161_v35 = vmax.f32 %v1150_v16, 0.0  ;;  %v4195_v48 = vld [vmem:[#allocation8 + $0x88] sm:$0xf]  ;;  %v4356_v51 = vor.u32 %v5492_v45, %v4355_v44  ;;  %v5677_v52 = vld [vmem:[#allocation8 + $0x7a4] sm:$0xf] }
 0x12c   :  { %2911 = vmatpush.bf16.msrb.mxu1 %v4800_v1  ;;  %v4196_v55 = vor.u32 %v5452_v49, %v4195_v48  ;;  %v4941_v1 = vld [vmem:[#allocation8 + $0x670] sm:$0xf0]  ;;  %v4499_v46 = vld [vmem:[#allocation8 + $0x2e8] sm:$0xf]  ;;  %v5528_v47 = vld [vmem:[#allocation8 + $0x2f4] sm:$0xf0] }
 0x12d   :  { %v1168_v3 = vmax.f32 %v1124_v58, 0.0  ;;  %v4339_v58 = vld [vmem:[#allocation8 + $0x1a8] sm:$0xf]  ;;  %v4944_v9 = vor.u32 %v5637_v62, %v4941_v1  ;;  %v5661_v48 = vld [vmem:[#allocation8 + $0x724] sm:$0xf] }
 0x12e   :  { %v1137_v11 = vpop.f32.mrf.mxu2  ;;  %2899 = vmatpush.bf16.msrb.mxu0 %v4640_v4  ;;  %v5673_v4 = vld [vmem:[#allocation8 + $0x784] sm:$0xf]  ;;  %v5524_v1 = vld [vmem:[#allocation8 + $0x2d4] sm:$0xf0] }
 0x12f   :  { %v6086_v10 = vpack.c.bf16 %v1168_v3, %v1160_v2  ;;  %v1138_v17 = vadd.f32 %v1137_v11, %v281_v43  ;;  %v4212_v43 = vor.u32 %v5456_v34, %v4211_v33  ;;  %v5104_v2 = vor.u32 %v5677_v52, %v5101_v57  ;;  %v4163_v11 = vld [vmem:[#allocation8 + $0x48] sm:$0xf]  ;;  %v5053_v34 = vld [vmem:[#allocation8 + $0x750] sm:$0xf0]  ;;  %v5472_v52 = vld [vmem:[#allocation8 + $0x134] sm:$0xf0] }
 0x130   :  { %v1151_v20 = vpop.f32.mrf.mxu3  ;;  %2912 = vmatpush.bf16.msrb.mxu1 %v4784_v18  ;;  %v4340_v3 = vor.u32 %v5488_v60, %v4339_v58  ;;  %v5088_v16 = vor.u32 %v5673_v4, %v5085_v6  ;;  %v5669_v18 = vld [vmem:[#allocation8 + $0x764] sm:$0xf]  ;;  %v4164_v19 = vor.u32 %v5444_v12, %v4163_v11  ;;  %v5056_v44 = vor.u32 %v5665_v31, %v5053_v34  ;;  %v4483_v58 = vld [vmem:[#allocation8 + $0x2c8] sm:$0xf]  ;;  %v5624_v11 = vld [vmem:[#allocation8 + $0x5f4] sm:$0xf0] }
 0x131   :  { %2816 = vmatmul.bf16.vlgmr.msrb.gmra.mxu2 %v6086_v10  ;;  %v1152_v24 = vadd.f32 %v1151_v20, %v1138_v17  ;;  %2900 = vmatmul.bf16.vlgmr.msrb.gmra.mxu0 %v6076_v53  ;;  %v5069_v20 = vld [vmem:[#allocation8 + $0x770] sm:$0xf0]  ;;  %v4500_v57 = vor.u32 %v5528_v47, %v4499_v46  ;;  %v4739_v60 = vld [vmem:[#allocation8 + $0x4c8] sm:$0xf]  ;;  %v4484_v12 = vor.u32 %v5524_v1, %v4483_v58 }
 0x132   :  { %2920 = vmatpush.bf16.msrb.mxu2 %v5008_v7  ;;  %2948 = vmatpush.bf16.msra.mxu0 %v4244_v8  ;;  %v4323_v7 = vld [vmem:[#allocation8 + $0x188] sm:$0xf]  ;;  %v5484_v8 = vld [vmem:[#allocation8 + $0x194] sm:$0xf0]  ;;  %v5072_v28 = vor.u32 %v5669_v18, %v5069_v20 }
 0x133   :  { %v1169_v36 = vmax.f32 %v1152_v24, 0.0  ;;  %v4324_v17 = vor.u32 %v5484_v8, %v4323_v7  ;;  %v4147_v24 = vld [vmem:[#allocation8 + $0x28] sm:$0xf]  ;;  %v4740_v7 = vor.u32 %v5588_v61, %v4739_v60  ;;  %v5560_v8 = vld [vmem:[#allocation8 + $0x3f4] sm:$0xf0] }
 0x134   :  { %2913 = vmatpush.bf16.msrb.mxu1 %v4768_v37  ;;  %v4259_v4 = vld [vmem:[#allocation8 + $0x108] sm:$0xf]  ;;  %v5508_v60 = vld [vmem:[#allocation8 + $0x254] sm:$0xf0] }
 0x135   :  { %v6090_v42 = vpack.c.bf16 %v1169_v36, %v1161_v35  ;;  %v4291_v35 = vld [vmem:[#allocation8 + $0x148] sm:$0xf]  ;;  %v5476_v36 = vld [vmem:[#allocation8 + $0x154] sm:$0xf0] }
 0x136   :  { %2921 = vmatpush.bf16.msrb.mxu2 %v4992_v25  ;;  %2949 = vmatpush.bf16.msra.mxu0 %v4228_v26  ;;  %v5440_v25 = vld [vmem:[#allocation8 + $0x34] sm:$0xf0]  ;;  %v5629_v26 = vld [vmem:[#allocation8 + $0x624] sm:$0xf]  ;;  %v4292_v45 = vor.u32 %v5476_v36, %v4291_v35  ;;  %v4627_v6 = vld [vmem:[#allocation8 + $0x3e8] sm:$0xf] }
 0x137   :  { %2830 = vmatmul.bf16.vlgmr.msrb.gmra.mxu3 %v6090_v42  ;;  %2914 = vmatmul.bf16.vlgmr.msrb.gmra.mxu1 %v6079_v13  ;;  %v4148_v33 = vor.u32 %v5440_v25, %v4147_v24  ;;  %v4912_v37 = vor.u32 %v5629_v26, %v4909_v27  ;;  %v4467_v18 = vld [vmem:[#allocation8 + $0x2a8] sm:$0xf]  ;;  %v4628_v20 = vor.u32 %v5560_v8, %v4627_v6  ;;  %v5556_v24 = vld [vmem:[#allocation8 + $0x3d4] sm:$0xf0] }
 0x138   :  { %2934 = vmatpush.bf16.msrb.mxu3 %v5136_v38  ;;  %2962 = vmatpush.bf16.msra.mxu1 %v4372_v39  ;;  %v5625_v38 = vld [vmem:[#allocation8 + $0x604] sm:$0xf]  ;;  %v4131_v39 = vld [vmem:[#allocation8 + $0x8] sm:$0xf]  ;;  %v5620_v26 = vld [vmem:[#allocation8 + $0x5d4] sm:$0xf0]  ;;  %v4612_v34 = vor.u32 %v5556_v24, %v4611_v22 }
 0x139   :  { %v4132_v49 = vor.u32 %v5436_v40, %v4131_v39  ;;  %v4867_v25 = vld [vmem:[#allocation8 + $0x5c8] sm:$0xf]  ;;  %v5616_v40 = vld [vmem:[#allocation8 + $0x5b4] sm:$0xf0]  ;;  %v5462_v24 = vld [vmem:[#allocation8 + $0xec] sm:$0xf] }
 0x13a   :  { %2922 = vmatpush.bf16.msrb.mxu2 %v4976_v63  ;;  %2950 = vmatpush.bf16.msra.mxu0 %v4212_v43  ;;  %v4755_v63 = vld [vmem:[#allocation8 + $0x4e8] sm:$0xf]  ;;  %v5592_v43 = vld [vmem:[#allocation8 + $0x4f4] sm:$0xf0]  ;;  %v4868_v35 = vor.u32 %v5620_v26, %v4867_v25  ;;  %v4245_v25 = vld [vmem:[#allocation8 + $0xf8] sm:$0xf0] }
 0x13b   :  { %v4451_v31 = vld [vmem:[#allocation8 + $0x288] sm:$0xf]  ;;  %v5564_v22 = vld [vmem:[#allocation8 + $0x414] sm:$0xf0] }
 0x13c   :  { %2935 = vmatpush.bf16.msrb.mxu3 %v5120_v50  ;;  %2963 = vmatpush.bf16.msra.mxu1 %v4356_v51  ;;  %v5037_v50 = vld [vmem:[#allocation8 + $0x730] sm:$0xf0]  ;;  %v4275_v51 = vld [vmem:[#allocation8 + $0x128] sm:$0xf] }
 0x13d   :  { %v5040_v30 = vor.u32 %v5661_v48, %v5037_v50  ;;  %v4276_v62 = vor.u32 %v5472_v52, %v4275_v51  ;;  %v4595_v36 = vld [vmem:[#allocation8 + $0x3a8] sm:$0xf]  ;;  %v5548_v50 = vld [vmem:[#allocation8 + $0x394] sm:$0xf0] }
 0x13e   :  { %2923 = vmatpush.bf16.msrb.mxu2 %v4960_v54  ;;  %2951 = vmatpush.bf16.msra.mxu0 %v4196_v55  ;;  %v4896_v54 = vor.u32 %v5625_v38, %v4893_v56  ;;  %v4756_v55 = vor.u32 %v5592_v43, %v4755_v63  ;;  %v5552_v38 = vld [vmem:[#allocation8 + $0x3b4] sm:$0xf0]  ;;  %v4851_v39 = vld [vmem:[#allocation8 + $0x5a8] sm:$0xf] }
 0x13f   :  { %v4691_v63 = vld [vmem:[#allocation8 + $0x468] sm:$0xf]  ;;  %v5576_v43 = vld [vmem:[#allocation8 + $0x474] sm:$0xf0]  ;;  %v4596_v46 = vor.u32 %v5552_v38, %v4595_v36  ;;  %v4852_v47 = vor.u32 %v5616_v40, %v4851_v39  ;;  %v4248_v38 = vor.u32 %v5462_v24, %v4245_v25  ;;  %v4181_v24 = vld [vmem:[#allocation8 + $0x78] sm:$0xf0] }
 0x140   :  { %2936 = vmatpush.bf16.msrb.mxu3 %v5104_v2  ;;  %2964 = vmatpush.bf16.msra.mxu1 %v4340_v3  ;;  %v5657_v2 = vld [vmem:[#allocation8 + $0x704] sm:$0xf]  ;;  %v5021_v3 = vld [vmem:[#allocation8 + $0x710] sm:$0xf0]  ;;  %v4579_v48 = vld [vmem:[#allocation8 + $0x388] sm:$0xf] }
 0x141   :  { %2872 = vmatmul.bf16.vlgmr.msra.gmra.mxu2 %v6068_v32  ;;  %v4835_v51 = vld [vmem:[#allocation8 + $0x588] sm:$0xf]  ;;  %v5612_v52 = vld [vmem:[#allocation8 + $0x594] sm:$0xf0]  ;;  %v4580_v61 = vor.u32 %v5548_v50, %v4579_v48 }
 0x142   :  { %2952 = vmatpush.bf16.msra.mxu0 %v4180_v5  ;;  %2924 = vmatpush.bf16.msrb.mxu2 %v4944_v9  ;;  %v5468_v5 = vld [vmem:[#allocation8 + $0x114] sm:$0xf0]  ;;  %v4883_v9 = vld [vmem:[#allocation8 + $0x5e8] sm:$0xf] }
 0x143   :  { %v4884_v21 = vor.u32 %v5624_v11, %v4883_v9  ;;  %v4419_v58 = vld [vmem:[#allocation8 + $0x248] sm:$0xf]  ;;  %v5504_v9 = vld [vmem:[#allocation8 + $0x234] sm:$0xf0] }
 0x144   :  { %2937 = vmatpush.bf16.msrb.mxu3 %v5088_v16  ;;  %2965 = vmatpush.bf16.msra.mxu1 %v4324_v17  ;;  %v5024_v16 = vor.u32 %v5657_v2, %v5021_v3  ;;  %v4260_v17 = vor.u32 %v5468_v5, %v4259_v4  ;;  %v5544_v2 = vld [vmem:[#allocation8 + $0x374] sm:$0xf0]  ;;  %v4819_v3 = vld [vmem:[#allocation8 + $0x568] sm:$0xf]  ;;  %v4420_v5 = vor.u32 %v5508_v60, %v4419_v58  ;;  %v5454_v58 = vld [vmem:[#allocation8 + $0xac] sm:$0xf] }
 0x145   :  { %v5608_v4 = vld [vmem:[#allocation8 + $0x574] sm:$0xf0]  ;;  %v4659_v6 = vld [vmem:[#allocation8 + $0x428] sm:$0xf]  ;;  %v4213_v60 = vld [vmem:[#allocation8 + $0xb8] sm:$0xf0] }
 0x146   :  { %2953 = vmatpush.bf16.msra.mxu0 %v4164_v19  ;;  %2925 = vmatpush.bf16.msrb.mxu2 %v4928_v23  ;;  %v5520_v19 = vld [vmem:[#allocation8 + $0x2b4] sm:$0xf0]  ;;  %v4724_v23 = vor.u32 %v5584_v15, %v4723_v14  ;;  %v4403_v8 = vld [vmem:[#allocation8 + $0x228] sm:$0xf] }
 0x147   :  { %2886 = vmatmul.bf16.vlgmr.msra.gmra.mxu3 %v6071_v59  ;;  %v4468_v27 = vor.u32 %v5520_v19, %v4467_v18  ;;  %v4547_v14 = vld [vmem:[#allocation8 + $0x348] sm:$0xf]  ;;  %v5604_v18 = vld [vmem:[#allocation8 + $0x554] sm:$0xf0]  ;;  %v4404_v19 = vor.u32 %v5504_v9, %v4403_v8  ;;  %v4357_v8 = vld [vmem:[#allocation8 + $0x1d8] sm:$0xf0] }
 0x148   :  { %2938 = vmatpush.bf16.msrb.mxu3 %v5072_v28  ;;  %2966 = vmatpush.bf16.msra.mxu1 %v4308_v29  ;;  %v4707_v28 = vld [vmem:[#allocation8 + $0x488] sm:$0xf]  ;;  %v5580_v29 = vld [vmem:[#allocation8 + $0x494] sm:$0xf0]  ;;  %v5450_v9 = vld [vmem:[#allocation8 + $0x8c] sm:$0xf] }
 0x149   :  { %v5600_v36 = vld [vmem:[#allocation8 + $0x534] sm:$0xf0]  ;;  %v4995_v40 = vld [vmem:[#allocation8 + $0x6c8] sm:$0xf] }
 0x14a   :  { %2954 = vmatpush.bf16.msra.mxu0 %v4148_v33  ;;  %2926 = vmatpush.bf16.msrb.mxu2 %v4912_v37  ;;  %v5516_v33 = vld [vmem:[#allocation8 + $0x294] sm:$0xf0]  ;;  %v4708_v37 = vor.u32 %v5580_v29, %v4707_v28  ;;  %v5011_v28 = vld [vmem:[#allocation8 + $0x6e8] sm:$0xf] }
 0x14b   :  { %v4452_v56 = vor.u32 %v5516_v33, %v4451_v31  ;;  %v5656_v29 = vld [vmem:[#allocation8 + $0x6f4] sm:$0xf0]  ;;  %v4531_v31 = vld [vmem:[#allocation8 + $0x328] sm:$0xf] }
 0x14c   :  { %2939 = vmatpush.bf16.msrb.mxu3 %v5056_v44  ;;  %2967 = vmatpush.bf16.msra.mxu1 %v4292_v45  ;;  %v4435_v44 = vld [vmem:[#allocation8 + $0x268] sm:$0xf]  ;;  %v5512_v45 = vld [vmem:[#allocation8 + $0x274] sm:$0xf0]  ;;  %v5012_v39 = vor.u32 %v5656_v29, %v5011_v28 }
 0x14d   :  { %v4771_v48 = vld [vmem:[#allocation8 + $0x508] sm:$0xf]  ;;  %v5640_v29 = vld [vmem:[#allocation8 + $0x674] sm:$0xf0] }
 0x14e   :  { %2955 = vmatpush.bf16.msra.mxu0 %v4132_v49  ;;  %2927 = vmatpush.bf16.msrb.mxu2 %v4896_v54  ;;  %v4692_v49 = vor.u32 %v5576_v43, %v4691_v63  ;;  %v4436_v54 = vor.u32 %v5512_v45, %v4435_v44  ;;  %v4229_v63 = vld [vmem:[#allocation8 + $0xd8] sm:$0xf0]  ;;  %v5652_v45 = vld [vmem:[#allocation8 + $0x6d4] sm:$0xf0]  ;;  %v5139_v50 = vld [vmem:[#allocation8 + $0x7e8] sm:$0xf] }
 0x14f   :  { %v4947_v28 = vld [vmem:[#allocation8 + $0x668] sm:$0xf] }
 0x150   :  { %2940 = vmatpush.bf16.msrb.mxu3 %v5040_v30  ;;  %2968 = vmatpush.bf16.msra.mxu1 %v4276_v62  ;;  %v4836_v30 = vor.u32 %v5612_v52, %v4835_v51  ;;  %v4563_v62 = vld [vmem:[#allocation8 + $0x368] sm:$0xf]  ;;  %v5688_v52 = vld [vmem:[#allocation8 + $0x7f4] sm:$0xf0] }
 0x151   :  { %2956 = vmatmul.bf16.vlgmr.msra.gmra.mxu0 %v6060_v41  ;;  %2928 = vmatmul.bf16.vlgmr.msrb.gmra.mxu2 %v6086_v10  ;;  %v4564_v11 = vor.u32 %v5544_v2, %v4563_v62  ;;  %v5140_v62 = vor.u32 %v5688_v52, %v5139_v50  ;;  %v4979_v2 = vld [vmem:[#allocation8 + $0x6a8] sm:$0xf]  ;;  %v4149_v50 = vld [vmem:[#allocation8 + $0x38] sm:$0xf0] }
 0x152   :  { %3004 = vmatpush.bf16.msrb.mxu0 %v4756_v55  ;;  %2976 = vmatpush.bf16.msra.mxu2 %v4500_v57  ;;  %v4675_v55 = vld [vmem:[#allocation8 + $0x448] sm:$0xf]  ;;  %v5572_v57 = vld [vmem:[#allocation8 + $0x454] sm:$0xf0] }
 0x153   :  { %v4676_v1 = vor.u32 %v5572_v57, %v4675_v55  ;;  %v4373_v55 = vld [vmem:[#allocation8 + $0x1f8] sm:$0xf0]  ;;  %v4996_v57 = vor.u32 %v5652_v45, %v4995_v40 }
 0x154   :  { %2941 = vmatpush.bf16.msrb.mxu3 %v5024_v16  ;;  %2969 = vmatpush.bf16.msra.mxu1 %v4260_v17  ;;  %v5540_v16 = vld [vmem:[#allocation8 + $0x354] sm:$0xf0]  ;;  %v4803_v17 = vld [vmem:[#allocation8 + $0x548] sm:$0xf] }
 0x155   :  { %v4548_v26 = vor.u32 %v5540_v16, %v4547_v14  ;;  %v4963_v16 = vld [vmem:[#allocation8 + $0x688] sm:$0xf] }
 0x156   :  { %3005 = vmatpush.bf16.msrb.mxu0 %v4740_v7  ;;  %2977 = vmatpush.bf16.msra.mxu2 %v4484_v12  ;;  %v5568_v7 = vld [vmem:[#allocation8 + $0x434] sm:$0xf0]  ;;  %v4820_v12 = vor.u32 %v5608_v4, %v4819_v3  ;;  %v5123_v4 = vld [vmem:[#allocation8 + $0x7c8] sm:$0xf] }
 0x157   :  { %2970 = vmatmul.bf16.vlgmr.msra.gmra.mxu1 %v6063_v0  ;;  %2942 = vmatmul.bf16.vlgmr.msrb.gmra.mxu3 %v6090_v42  ;;  %v4660_v15 = vor.u32 %v5568_v7, %v4659_v6  ;;  %v5648_v3 = vld [vmem:[#allocation8 + $0x6b4] sm:$0xf0]  ;;  %v5490_v7 = vld [vmem:[#allocation8 + $0x1cc] sm:$0xf] }
 0x158   :  { %2990 = vmatpush.bf16.msra.mxu3 %v4628_v20  ;;  %3018 = vmatpush.bf16.msrb.mxu1 %v4884_v21  ;;  %v4387_v20 = vld [vmem:[#allocation8 + $0x208] sm:$0xf]  ;;  %v5684_v6 = vld [vmem:[#allocation8 + $0x7d4] sm:$0xf0] }
 0x159   :  { %v4643_v21 = vld [vmem:[#allocation8 + $0x408] sm:$0xf]  ;;  %v5124_v14 = vor.u32 %v5684_v6, %v5123_v4  ;;  %v5590_v4 = vld [vmem:[#allocation8 + $0x4ec] sm:$0xf] }
 0x15a   :  { %3006 = vmatpush.bf16.msrb.mxu0 %v4724_v23  ;;  %2978 = vmatpush.bf16.msra.mxu2 %v4468_v27  ;;  %v5500_v23 = vld [vmem:[#allocation8 + $0x214] sm:$0xf0]  ;;  %v4804_v27 = vor.u32 %v5604_v18, %v4803_v17  ;;  %v4644_v33 = vor.u32 %v5564_v22, %v4643_v21  ;;  %v5107_v18 = vld [vmem:[#allocation8 + $0x7a8] sm:$0xf]  ;;  %v5486_v21 = vld [vmem:[#allocation8 + $0x1ac] sm:$0xf] }
 0x15b   :  { %v5644_v17 = vld [vmem:[#allocation8 + $0x694] sm:$0xf0]  ;;  %v4341_v22 = vld [vmem:[#allocation8 + $0x1b8] sm:$0xf0] }
 0x15c   :  { %2991 = vmatpush.bf16.msra.mxu3 %v4612_v34  ;;  %3019 = vmatpush.bf16.msrb.mxu1 %v4868_v35  ;;  %v5536_v34 = vld [vmem:[#allocation8 + $0x334] sm:$0xf0]  ;;  %v4787_v35 = vld [vmem:[#allocation8 + $0x528] sm:$0xf]  ;;  %v4964_v25 = vor.u32 %v5644_v17, %v4963_v16 }
 0x15d   :  { %v4532_v43 = vor.u32 %v5536_v34, %v4531_v31  ;;  %v4788_v44 = vor.u32 %v5600_v36, %v4787_v35  ;;  %v5091_v31 = vld [vmem:[#allocation8 + $0x788] sm:$0xf]  ;;  %v5676_v34 = vld [vmem:[#allocation8 + $0x794] sm:$0xf0]  ;;  %v5482_v35 = vld [vmem:[#allocation8 + $0x18c] sm:$0xf] }
 0x15e   :  { %3007 = vmatpush.bf16.msrb.mxu0 %v4708_v37  ;;  %2979 = vmatpush.bf16.msra.mxu2 %v4452_v56  ;;  %v4388_v37 = vor.u32 %v5500_v23, %v4387_v20  ;;  %v5458_v56 = vld [vmem:[#allocation8 + $0xcc] sm:$0xf]  ;;  %v5680_v20 = vld [vmem:[#allocation8 + $0x7b4] sm:$0xf0]  ;;  %v4325_v36 = vld [vmem:[#allocation8 + $0x198] sm:$0xf0]  ;;  %v5092_v40 = vor.u32 %v5676_v34, %v5091_v31 }
 0x15f   :  { %v4232_v51 = vor.u32 %v5458_v56, %v4229_v63  ;;  %v5446_v23 = vld [vmem:[#allocation8 + $0x6c] sm:$0xf]  ;;  %v4328_v56 = vor.u32 %v5482_v35, %v4325_v36  ;;  %v4931_v63 = vld [vmem:[#allocation8 + $0x648] sm:$0xf]  ;;  %v5664_v16 = vld [vmem:[#allocation8 + $0x734] sm:$0xf0] }
 0x160   :  { %2992 = vmatpush.bf16.msra.mxu3 %v4596_v46  ;;  %3020 = vmatpush.bf16.msrb.mxu1 %v4852_v47  ;;  %v4515_v46 = vld [vmem:[#allocation8 + $0x308] sm:$0xf]  ;;  %v5532_v47 = vld [vmem:[#allocation8 + $0x314] sm:$0xf0]  ;;  %v5466_v31 = vld [vmem:[#allocation8 + $0x10c] sm:$0xf] }
 0x161   :  { %v5558_v35 = vld [vmem:[#allocation8 + $0x3ec] sm:$0xf]  ;;  %v4629_v36 = vld [vmem:[#allocation8 + $0x3f8] sm:$0xf0] }
 0x162   :  { %3008 = vmatpush.bf16.msrb.mxu0 %v4692_v49  ;;  %2980 = vmatpush.bf16.msra.mxu2 %v4436_v54  ;;  %v5596_v49 = vld [vmem:[#allocation8 + $0x514] sm:$0xf0]  ;;  %v5494_v54 = vld [vmem:[#allocation8 + $0x1ec] sm:$0xf] }
 0x164   :  { %2993 = vmatpush.bf16.msra.mxu3 %v4580_v61  ;;  %3021 = vmatpush.bf16.msrb.mxu1 %v4836_v30  ;;  %v4516_v61 = vor.u32 %v5532_v47, %v4515_v46  ;;  %v4772_v30 = vor.u32 %v5596_v49, %v4771_v48  ;;  %v5672_v46 = vld [vmem:[#allocation8 + $0x774] sm:$0xf0]  ;;  %v5478_v47 = vld [vmem:[#allocation8 + $0x16c] sm:$0xf]  ;;  %v4309_v48 = vld [vmem:[#allocation8 + $0x178] sm:$0xf0] }
 0x165   :  { %v5438_v49 = vld [vmem:[#allocation8 + $0x2c] sm:$0xf] }
 0x166   :  { %3009 = vmatpush.bf16.msrb.mxu0 %v4676_v1  ;;  %2981 = vmatpush.bf16.msra.mxu2 %v4420_v5  ;;  %v4376_v1 = vor.u32 %v5494_v54, %v4373_v55  ;;  %v4216_v5 = vor.u32 %v5454_v58, %v4213_v60  ;;  %v4312_v54 = vor.u32 %v5478_v47, %v4309_v48  ;;  %v4915_v55 = vld [vmem:[#allocation8 + $0x628] sm:$0xf] }
 0x167   :  { %v5059_v58 = vld [vmem:[#allocation8 + $0x748] sm:$0xf]  ;;  %v4152_v60 = vor.u32 %v5438_v49, %v4149_v50  ;;  %v5554_v49 = vld [vmem:[#allocation8 + $0x3cc] sm:$0xf]  ;;  %v4613_v50 = vld [vmem:[#allocation8 + $0x3d8] sm:$0xf0] }
 0x168   :  { %2994 = vmatpush.bf16.msra.mxu3 %v4564_v11  ;;  %3022 = vmatpush.bf16.msrb.mxu1 %v4820_v12  ;;  %v4197_v11 = vld [vmem:[#allocation8 + $0x98] sm:$0xf0]  ;;  %v4980_v12 = vor.u32 %v5648_v3, %v4979_v2 }
 0x169   :  { %v4133_v2 = vld [vmem:[#allocation8 + $0x18] sm:$0xf0] }
 0x16a   :  { %3010 = vmatpush.bf16.msrb.mxu0 %v4660_v15  ;;  %2982 = vmatpush.bf16.msra.mxu2 %v4404_v19  ;;  %v4360_v15 = vor.u32 %v5490_v7, %v4357_v8  ;;  %v4200_v19 = vor.u32 %v5450_v9, %v4197_v11  ;;  %v4899_v8 = vld [vmem:[#allocation8 + $0x608] sm:$0xf]  ;;  %v5628_v9 = vld [vmem:[#allocation8 + $0x614] sm:$0xf0]  ;;  %v5526_v11 = vld [vmem:[#allocation8 + $0x2ec] sm:$0xf] }
 0x16c   :  { %2995 = vmatpush.bf16.msra.mxu3 %v4548_v26  ;;  %3023 = vmatpush.bf16.msrb.mxu1 %v4804_v27  ;;  %v5108_v26 = vor.u32 %v5680_v20, %v5107_v18  ;;  %v4344_v27 = vor.u32 %v5486_v21, %v4341_v22  ;;  %v5470_v18 = vld [vmem:[#allocation8 + $0x12c] sm:$0xf]  ;;  %v4900_v20 = vor.u32 %v5628_v9, %v4899_v8  ;;  %v4741_v22 = vld [vmem:[#allocation8 + $0x4d8] sm:$0xf0] }
 0x16d   :  { %v5586_v21 = vld [vmem:[#allocation8 + $0x4cc] sm:$0xf]  ;;  %v4437_v9 = vld [vmem:[#allocation8 + $0x278] sm:$0xf0] }
 0x16e   :  { %3011 = vmatpush.bf16.msrb.mxu0 %v4644_v33  ;;  %2983 = vmatpush.bf16.msra.mxu2 %v4388_v37  ;;  %v4184_v33 = vor.u32 %v5446_v23, %v4181_v24  ;;  %v5442_v37 = vld [vmem:[#allocation8 + $0x4c] sm:$0xf]  ;;  %v4744_v34 = vor.u32 %v5586_v21, %v4741_v22  ;;  %v6108_v21 = vpop.f32.mrf.mxu0 }
 0x16f   :  { %v5510_v8 = vld [vmem:[#allocation8 + $0x26c] sm:$0xf] }
 0x170   :  { %2996 = vmatpush.bf16.msra.mxu3 %v4532_v43  ;;  %3024 = vmatpush.bf16.msrb.mxu1 %v4788_v44  ;;  %v5636_v43 = vld [vmem:[#allocation8 + $0x654] sm:$0xf0]  ;;  %v5075_v44 = vld [vmem:[#allocation8 + $0x768] sm:$0xf]  ;;  %v5506_v22 = vld [vmem:[#allocation8 + $0x24c] sm:$0xf] }
 0x171   :  { %2984 = vmatmul.bf16.vlgmr.msra.gmra.mxu2 %v6068_v32  ;;  %3012 = vmatmul.bf16.vlgmr.msrb.gmra.mxu0 %v6076_v53  ;;  %v5076_v52 = vor.u32 %v5672_v46, %v5075_v44  ;;  %v4632_v44 = vor.u32 %v5558_v35, %v4629_v36  ;;  %v4469_v46 = vld [vmem:[#allocation8 + $0x2b8] sm:$0xf0]  ;;  %v6110_v35 = vpop.f32.mrf.mxu1 }
 0x172   :  { %3060 = vmatpush.bf16.msra.mxu0 %v4248_v38  ;;  %3032 = vmatpush.bf16.msrb.mxu2 %v5012_v39  ;;  %v4165_v38 = vld [vmem:[#allocation8 + $0x58] sm:$0xf0]  ;;  %v4948_v39 = vor.u32 %v5640_v29, %v4947_v28  ;;  %v5660_v29 = vld [vmem:[#allocation8 + $0x714] sm:$0xf0] }
 0x173   :  { %v4168_v45 = vor.u32 %v5442_v37, %v4165_v38  ;;  %v5622_v37 = vld [vmem:[#allocation8 + $0x5ec] sm:$0xf]  ;;  %v4885_v38 = vld [vmem:[#allocation8 + $0x5f8] sm:$0xf0] }
 0x174   :  { %2997 = vmatpush.bf16.msra.mxu3 %v4516_v61  ;;  %3025 = vmatpush.bf16.msrb.mxu1 %v4772_v30  ;;  %v5668_v61 = vld [vmem:[#allocation8 + $0x754] sm:$0xf0]  ;;  %v5474_v30 = vld [vmem:[#allocation8 + $0x14c] sm:$0xf]  ;;  %v4888_v47 = vor.u32 %v5622_v37, %v4885_v38  ;;  %v4405_v38 = vld [vmem:[#allocation8 + $0x238] sm:$0xf0] }
 0x175   :  { %v5060_v6 = vor.u32 %v5668_v61, %v5059_v58  ;;  %v5514_v58 = vld [vmem:[#allocation8 + $0x28c] sm:$0xf] }
 0x176   :  { %3061 = vmatpush.bf16.msra.mxu0 %v4232_v51  ;;  %3033 = vmatpush.bf16.msrb.mxu2 %v4996_v57  ;;  %v4932_v51 = vor.u32 %v5636_v43, %v4931_v63  ;;  %v5632_v57 = vld [vmem:[#allocation8 + $0x634] sm:$0xf0]  ;;  %v5502_v37 = vld [vmem:[#allocation8 + $0x22c] sm:$0xf] }
 0x177   :  { %2998 = vmatmul.bf16.vlgmr.msra.gmra.mxu3 %v6071_v59  ;;  %3026 = vmatmul.bf16.vlgmr.msrb.gmra.mxu1 %v6079_v13  ;;  %v4916_v3 = vor.u32 %v5632_v57, %v4915_v55  ;;  %v4709_v55 = vld [vmem:[#allocation8 + $0x498] sm:$0xf0] }
 0x178   :  { %3046 = vmatpush.bf16.msrb.mxu3 %v5140_v62  ;;  %3074 = vmatpush.bf16.msra.mxu1 %v4376_v1  ;;  %v4293_v62 = vld [vmem:[#allocation8 + $0x158] sm:$0xf0]  ;;  %v5434_v1 = vld [vmem:[#allocation8 + $0xc] sm:$0xf] }
 0x179   :  { %v4296_v7 = vor.u32 %v5474_v30, %v4293_v62  ;;  %v5550_v62 = vld [vmem:[#allocation8 + $0x3ac] sm:$0xf] }
 0x17a   :  { %3062 = vmatpush.bf16.msra.mxu0 %v4216_v5  ;;  %3034 = vmatpush.bf16.msrb.mxu2 %v4980_v12  ;;  %v4757_v5 = vld [vmem:[#allocation8 + $0x4f8] sm:$0xf0]  ;;  %v4136_v12 = vor.u32 %v5434_v1, %v4133_v2  ;;  %v5614_v2 = vld [vmem:[#allocation8 + $0x5ac] sm:$0xf] }
 0x17b   :  { %v4760_v17 = vor.u32 %v5590_v4, %v4757_v5  ;;  %v4597_v1 = vld [vmem:[#allocation8 + $0x3b8] sm:$0xf0]  ;;  %v5574_v4 = vld [vmem:[#allocation8 + $0x46c] sm:$0xf] }
 0x17c   :  { %3047 = vmatpush.bf16.msrb.mxu3 %v5124_v14  ;;  %3075 = vmatpush.bf16.msra.mxu1 %v4360_v15  ;;  %v4501_v14 = vld [vmem:[#allocation8 + $0x2f8] sm:$0xf0]  ;;  %v5043_v15 = vld [vmem:[#allocation8 + $0x728] sm:$0xf] }
 0x17d   :  { %v4504_v23 = vor.u32 %v5526_v11, %v4501_v14  ;;  %v5044_v24 = vor.u32 %v5664_v16, %v5043_v15  ;;  %v4693_v5 = vld [vmem:[#allocation8 + $0x478] sm:$0xf0]  ;;  %v5546_v14 = vld [vmem:[#allocation8 + $0x38c] sm:$0xf] }
 0x17e   :  { %3063 = vmatpush.bf16.msra.mxu0 %v4200_v19  ;;  %3035 = vmatpush.bf16.msrb.mxu2 %v4964_v25  ;;  %v4277_v19 = vld [vmem:[#allocation8 + $0x138] sm:$0xf0]  ;;  %v5522_v25 = vld [vmem:[#allocation8 + $0x2cc] sm:$0xf] }
 0x17f   :  { %v4280_v28 = vor.u32 %v5470_v18, %v4277_v19  ;;  %v4581_v15 = vld [vmem:[#allocation8 + $0x398] sm:$0xf0]  ;;  %v5610_v16 = vld [vmem:[#allocation8 + $0x58c] sm:$0xf] }
 0x180   :  { %3048 = vmatpush.bf16.msrb.mxu3 %v5108_v26  ;;  %3076 = vmatpush.bf16.msra.mxu1 %v4344_v27  ;;  %v4485_v26 = vld [vmem:[#allocation8 + $0x2d8] sm:$0xf0]  ;;  %v5027_v27 = vld [vmem:[#allocation8 + $0x708] sm:$0xf]  ;;  %v5570_v18 = vld [vmem:[#allocation8 + $0x44c] sm:$0xf] }
 0x181   :  { %v5028_v63 = vor.u32 %v5660_v29, %v5027_v27  ;;  %v4677_v19 = vld [vmem:[#allocation8 + $0x458] sm:$0xf0] }
 0x182   :  { %3064 = vmatpush.bf16.msra.mxu0 %v4184_v33  ;;  %3036 = vmatpush.bf16.msrb.mxu2 %v4948_v39  ;;  %v4261_v33 = vld [vmem:[#allocation8 + $0x118] sm:$0xf0]  ;;  %v5582_v39 = vld [vmem:[#allocation8 + $0x4ac] sm:$0xf] }
 0x183   :  { %v4264_v43 = vor.u32 %v5466_v31, %v4261_v33  ;;  %v4565_v27 = vld [vmem:[#allocation8 + $0x378] sm:$0xf0]  ;;  %v5566_v31 = vld [vmem:[#allocation8 + $0x42c] sm:$0xf] }
 0x184   :  { %3049 = vmatpush.bf16.msrb.mxu3 %v5092_v40  ;;  %3077 = vmatpush.bf16.msra.mxu1 %v4328_v56  ;;  %v4725_v40 = vld [vmem:[#allocation8 + $0x4b8] sm:$0xf0]  ;;  %v4488_v56 = vor.u32 %v5522_v25, %v4485_v26  ;;  %v4680_v25 = vor.u32 %v5570_v18, %v4677_v19  ;;  %v5542_v26 = vld [vmem:[#allocation8 + $0x36c] sm:$0xf]  ;;  %v6118_v19 = vpop.f32.mrf.mxu3 }
 0x185   :  { %v4728_v48 = vor.u32 %v5582_v39, %v4725_v40  ;;  %v4821_v29 = vld [vmem:[#allocation8 + $0x578] sm:$0xf0]  ;;  %v4568_v36 = vor.u32 %v5542_v26, %v4565_v27  ;;  %v5694_v27 = vld [vmem:[#allocation11 + $0x28] sm:$0xff] }
 0x186   :  { %3065 = vmatpush.bf16.msra.mxu0 %v4168_v45  ;;  %3037 = vmatpush.bf16.msrb.mxu2 %v4932_v51  ;;  %v5518_v45 = vld [vmem:[#allocation8 + $0x2ac] sm:$0xf]  ;;  %v4661_v33 = vld [vmem:[#allocation8 + $0x438] sm:$0xf0] }
 0x187   :  { %v5618_v51 = vld [vmem:[#allocation8 + $0x5cc] sm:$0xf]  ;;  %v4472_v57 = vor.u32 %v5518_v45, %v4469_v46  ;;  %v4664_v40 = vor.u32 %v5566_v31, %v4661_v33  ;;  %v4645_v46 = vld [vmem:[#allocation8 + $0x418] sm:$0xf0] }
 0x188   :  { %3050 = vmatpush.bf16.msrb.mxu3 %v5076_v52  ;;  %3078 = vmatpush.bf16.msra.mxu1 %v4312_v54  ;;  %v4869_v52 = vld [vmem:[#allocation8 + $0x5d8] sm:$0xf0]  ;;  %v5578_v54 = vld [vmem:[#allocation8 + $0x48c] sm:$0xf] }
 0x189   :  { %v4872_v61 = vor.u32 %v5618_v51, %v4869_v52  ;;  %v4712_v30 = vor.u32 %v5578_v54, %v4709_v55  ;;  %v5562_v45 = vld [vmem:[#allocation8 + $0x40c] sm:$0xf]  ;;  %v5013_v55 = vld [vmem:[#allocation8 + $0x6f8] sm:$0xf0] }
 0x18a   :  { %3066 = vmatpush.bf16.msra.mxu0 %v4152_v60  ;;  %3038 = vmatpush.bf16.msrb.mxu2 %v4916_v3  ;;  %v4453_v60 = vld [vmem:[#allocation8 + $0x298] sm:$0xf0]  ;;  %v5654_v51 = vld [vmem:[#allocation8 + $0x6ec] sm:$0xf]  ;;  %v4648_v54 = vor.u32 %v5562_v45, %v4645_v46 }
 0x18b   :  { %v4853_v3 = vld [vmem:[#allocation8 + $0x5b8] sm:$0xf0] }
 0x18c   :  { %3051 = vmatpush.bf16.msrb.mxu3 %v5060_v6  ;;  %3079 = vmatpush.bf16.msra.mxu1 %v4296_v7  ;;  %v4456_v6 = vor.u32 %v5514_v58, %v4453_v60  ;;  %v4600_v7 = vor.u32 %v5550_v62, %v4597_v1  ;;  %v4856_v11 = vor.u32 %v5614_v2, %v4853_v3  ;;  %v6112_v58 = vpop.f32.mrf.mxu0  ;;  %v6114_v60 = vpop.f32.mrf.mxu2  ;;  %v5696_v62 = vld [vmem:[#allocation11 + $0x38] sm:$0xff] }
 0x18d   :  { %v5016_v2 = vor.u32 %v5654_v51, %v5013_v55  ;;  %v5125_v26 = vld [vmem:[#allocation8 + $0x7d8] sm:$0xf0]  ;;  %v5702_v51 = vld [vmem:[#allocation11 + $0x68] sm:$0xff] }
 0x18e   :  { %3067 = vmatpush.bf16.msra.mxu0 %v4136_v12  ;;  %3039 = vmatpush.bf16.msrb.mxu2 %v4900_v20  ;;  %v4696_v12 = vor.u32 %v5574_v4, %v4693_v5  ;;  %v4440_v20 = vor.u32 %v5510_v8, %v4437_v9  ;;  %v5650_v4 = vld [vmem:[#allocation8 + $0x6cc] sm:$0xf]  ;;  %v4997_v5 = vld [vmem:[#allocation8 + $0x6d8] sm:$0xf0] }
 0x18f   :  { %v4517_v8 = vld [vmem:[#allocation8 + $0x318] sm:$0xf0]  ;;  %v5594_v9 = vld [vmem:[#allocation8 + $0x50c] sm:$0xf] }
 0x190   :  { %3052 = vmatpush.bf16.msrb.mxu3 %v5044_v24  ;;  %3080 = vmatpush.bf16.msra.mxu1 %v4280_v28  ;;  %v5606_v28 = vld [vmem:[#allocation8 + $0x56c] sm:$0xf]  ;;  %v4949_v45 = vld [vmem:[#allocation8 + $0x678] sm:$0xf0] }
 0x191   :  { %3068 = vmatmul.bf16.vlgmr.msra.gmra.mxu0 %v6060_v41  ;;  %3040 = vmatmul.bf16.vlgmr.msrb.gmra.mxu2 %v6086_v10  ;;  %v4616_v41 = vor.u32 %v5554_v49, %v4613_v50  ;;  %v4824_v39 = vor.u32 %v5606_v28, %v4821_v29  ;;  %v5498_v49 = vld [vmem:[#allocation8 + $0x20c] sm:$0xf]  ;;  %v4389_v50 = vld [vmem:[#allocation8 + $0x218] sm:$0xf0]  ;;  %v6124_v28 = vld [vmem:[#allocation10] sm:$0xf] }
 0x192   :  { %3116 = vmatpush.bf16.msrb.mxu0 %v4760_v17  ;;  %3088 = vmatpush.bf16.msra.mxu2 %v4504_v23  ;;  %v4837_v17 = vld [vmem:[#allocation8 + $0x598] sm:$0xf0]  ;;  %v4392_v1 = vor.u32 %v5498_v49, %v4389_v50  ;;  %v2777_v50 = vpop.f32.mrf.mxu3 }
 0x193   :  { %v4421_v23 = vld [vmem:[#allocation8 + $0x258] sm:$0xf0]  ;;  %v4840_v24 = vor.u32 %v5610_v16, %v4837_v17  ;;  %v5695_v16 = vld [vmem:[#allocation11 + $0x30] sm:$0xff]  ;;  %v5000_v17 = vor.u32 %v5650_v4, %v4997_v5 }
 0x194   :  { %3053 = vmatpush.bf16.msrb.mxu3 %v5028_v63  ;;  %3081 = vmatpush.bf16.msra.mxu1 %v4264_v43  ;;  %v4549_v63 = vld [vmem:[#allocation8 + $0x358] sm:$0xf0]  ;;  %v5602_v43 = vld [vmem:[#allocation8 + $0x54c] sm:$0xf]  ;;  %v2763_v31 = vpop.f32.mrf.mxu2 }
 0x195   :  { %v5704_v29 = vld [vmem:[#allocation11 + $0x78] sm:$0xff] }
 0x196   :  { %3117 = vmatpush.bf16.msrb.mxu0 %v4744_v34  ;;  %3089 = vmatpush.bf16.msra.mxu2 %v4488_v56  ;;  %v4424_v34 = vor.u32 %v5506_v22, %v4421_v23  ;;  %v5538_v56 = vld [vmem:[#allocation8 + $0x34c] sm:$0xf]  ;;  %v4981_v23 = vld [vmem:[#allocation8 + $0x6b8] sm:$0xf0] }
 0x197   :  { %3054 = vmatmul.bf16.vlgmr.msrb.gmra.mxu3 %v6090_v42  ;;  %3082 = vmatmul.bf16.vlgmr.msra.gmra.mxu1 %v6063_v0  ;;  %v4584_v0 = vor.u32 %v5546_v14, %v4581_v15  ;;  %v5686_v14 = vld [vmem:[#allocation8 + $0x7ec] sm:$0xf]  ;;  %v5141_v15 = vld [vmem:[#allocation8 + $0x7f8] sm:$0xf0] }
 0x198   :  { %3102 = vmatpush.bf16.msra.mxu3 %v4632_v44  ;;  %3130 = vmatpush.bf16.msrb.mxu1 %v4888_v47  ;;  %v4805_v44 = vld [vmem:[#allocation8 + $0x558] sm:$0xf0]  ;;  %v4408_v47 = vor.u32 %v5502_v37, %v4405_v38  ;;  %v5646_v22 = vld [vmem:[#allocation8 + $0x6ac] sm:$0xf]  ;;  %v1436_v37 = vperm.slane %v6124_v28, 0 }
 0x199   :  { %v4808_v52 = vor.u32 %v5602_v43, %v4805_v44  ;;  %v4984_v33 = vor.u32 %v5646_v22, %v4981_v23  ;;  %v5638_v44 = vld [vmem:[#allocation8 + $0x66c] sm:$0xf]  ;;  %v5692_v49 = vld [vmem:[#allocation11 + $0x18] sm:$0xff] }
 0x19a   :  { %3118 = vmatpush.bf16.msrb.mxu0 %v4728_v48  ;;  %3090 = vmatpush.bf16.msra.mxu2 %v4472_v57  ;;  %v4552_v48 = vor.u32 %v5538_v56, %v4549_v63  ;;  %v5534_v57 = vld [vmem:[#allocation8 + $0x32c] sm:$0xf]  ;;  %v5703_v56 = vld [vmem:[#allocation11 + $0x70] sm:$0xff]  ;;  %v2734_v46 = vadd.f32 %v6108_v21, %v1436_v37  ;;  %v4901_v22 = vld [vmem:[#allocation8 + $0x618] sm:$0xf0] }
 0x19b   :  { %v5670_v21 = vld [vmem:[#allocation8 + $0x76c] sm:$0xf] }
 0x19c   :  { %3103 = vmatpush.bf16.msra.mxu3 %v4616_v41  ;;  %3131 = vmatpush.bf16.msrb.mxu1 %v4872_v61  ;;  %v4533_v41 = vld [vmem:[#allocation8 + $0x338] sm:$0xf0]  ;;  %v5598_v61 = vld [vmem:[#allocation8 + $0x52c] sm:$0xf] }
 0x19d   :  { %v4536_v3 = vor.u32 %v5534_v57, %v4533_v41  ;;  %v5634_v57 = vld [vmem:[#allocation8 + $0x64c] sm:$0xf]  ;;  %v4933_v41 = vld [vmem:[#allocation8 + $0x658] sm:$0xf0] }
 0x19e   :  { %3119 = vmatpush.bf16.msrb.mxu0 %v4712_v30  ;;  %3091 = vmatpush.bf16.msra.mxu2 %v4456_v6  ;;  %v4789_v30 = vld [vmem:[#allocation8 + $0x538] sm:$0xf0]  ;;  %v5530_v6 = vld [vmem:[#allocation8 + $0x30c] sm:$0xf]  ;;  %v4936_v4 = vor.u32 %v5634_v57, %v4933_v41 }
 0x19f   :  { %v4520_v18 = vor.u32 %v5530_v6, %v4517_v8  ;;  %v5630_v6 = vld [vmem:[#allocation8 + $0x62c] sm:$0xf] }
 0x1a0   :  { %3104 = vmatpush.bf16.msra.mxu3 %v4600_v7  ;;  %3132 = vmatpush.bf16.msrb.mxu1 %v4856_v11  ;;  %v4792_v7 = vor.u32 %v5598_v61, %v4789_v30  ;;  %v4773_v11 = vld [vmem:[#allocation8 + $0x518] sm:$0xf0]  ;;  %v2748_v61 = vadd.f32 %v6110_v35, %v2734_v46 }
 0x1a1   :  { %v5077_v30 = vld [vmem:[#allocation8 + $0x778] sm:$0xf0] }
 0x1a2   :  { %3120 = vmatpush.bf16.msrb.mxu0 %v4696_v12  ;;  %3092 = vmatpush.bf16.msra.mxu2 %v4440_v20  ;;  %v6116_v12 = vpop.f32.mrf.mxu1  ;;  %v4776_v20 = vor.u32 %v5594_v9, %v4773_v11  ;;  %v5080_v5 = vor.u32 %v5670_v21, %v5077_v30  ;;  %v5666_v9 = vld [vmem:[#allocation8 + $0x74c] sm:$0xf]  ;;  %v5061_v11 = vld [vmem:[#allocation8 + $0x758] sm:$0xf0] }
 0x1a4   :  { %3105 = vmatpush.bf16.msra.mxu3 %v4584_v0  ;;  %3133 = vmatpush.bf16.msrb.mxu1 %v4840_v24  ;;  %v5144_v0 = vor.u32 %v5686_v14, %v5141_v15  ;;  %v6121_v24 = vpop.f32.mrf.mxu0  ;;  %v5690_v14 = vld [vmem:[#allocation11 + $0x8] sm:$0xff] }
 0x1a6   :  { %3121 = vmatpush.bf16.msrb.mxu0 %v4680_v25  ;;  %3093 = vmatpush.bf16.msra.mxu2 %v4424_v34  ;;  %v5682_v25 = vld [vmem:[#allocation8 + $0x7cc] sm:$0xf] }
 0x1a7   :  { %v5642_v34 = vld [vmem:[#allocation8 + $0x68c] sm:$0xf] }
 0x1a8   :  { %3106 = vmatpush.bf16.msra.mxu3 %v4568_v36  ;;  %3134 = vmatpush.bf16.msrb.mxu1 %v4824_v39  ;;  %v4965_v36 = vld [vmem:[#allocation8 + $0x698] sm:$0xf0] }
 0x1a9   :  { %v5109_v39 = vld [vmem:[#allocation8 + $0x7b8] sm:$0xf0]  ;;  %v4968_v63 = vor.u32 %v5642_v34, %v4965_v36 }
 0x1aa   :  { %3122 = vmatpush.bf16.msrb.mxu0 %v4664_v40  ;;  %3094 = vmatpush.bf16.msra.mxu2 %v4408_v47  ;;  %v6127_v38 = vpop.f32.mrf.mxu1  ;;  %v5693_v40 = vld [vmem:[#allocation11 + $0x20] sm:$0xff]  ;;  %v5674_v47 = vld [vmem:[#allocation8 + $0x78c] sm:$0xf] }
 0x1ac   :  { %3107 = vmatpush.bf16.msra.mxu3 %v4552_v48  ;;  %3135 = vmatpush.bf16.msrb.mxu1 %v4808_v52  ;;  %v5093_v48 = vld [vmem:[#allocation8 + $0x798] sm:$0xf0]  ;;  %v2791_v52 = vpop.f32.mrf.mxu0 }
 0x1ad   :  { %v5096_v55 = vor.u32 %v5674_v47, %v5093_v48  ;;  %v5697_v47 = vld [vmem:[#allocation11 + $0x40] sm:$0xff] }
 0x1ae   :  { %3123 = vmatpush.bf16.msrb.mxu0 %v4648_v54  ;;  %3095 = vmatpush.bf16.msra.mxu2 %v4392_v1  ;;  %v4952_v54 = vor.u32 %v5638_v44, %v4949_v45  ;;  %v5701_v1 = vld [vmem:[#allocation11 + $0x60] sm:$0xff] }
 0x1b0   :  { %3108 = vmatpush.bf16.msra.mxu3 %v4536_v3  ;;  %3136 = vmatpush.bf16.msrb.mxu1 %v4792_v7  ;;  %v4917_v7 = vld [vmem:[#allocation8 + $0x638] sm:$0xf0] }
 0x1b1   :  { %3124 = vmatmul.bf16.vlgmr.msrb.gmra.mxu0 %v6076_v53  ;;  %3096 = vmatmul.bf16.vlgmr.msra.gmra.mxu2 %v6068_v32  ;;  %v5128_v53 = vor.u32 %v5682_v25, %v5125_v26  ;;  %v5678_v32 = vld [vmem:[#allocation8 + $0x7ac] sm:$0xf] }
 0x1b2   :  { %3444 = vmatpush.bf16.msra.mxu0 %v5696_v62  ;;  %3144 = vmatpush.bf16.msrb.mxu2 %v5016_v2  ;;  %v5112_v43 = vor.u32 %v5678_v32, %v5109_v39  ;;  %v5691_v62 = vld [vmem:[#allocation11 + $0x10] sm:$0xff]  ;;  %v2805_v3 = vpop.f32.mrf.mxu1  ;;  %v5662_v26 = vld [vmem:[#allocation8 + $0x72c] sm:$0xf] }
 0x1b3   :  { %v5658_v39 = vld [vmem:[#allocation8 + $0x70c] sm:$0xf] }
 0x1b4   :  { %3109 = vmatpush.bf16.msra.mxu3 %v4520_v18  ;;  %3137 = vmatpush.bf16.msrb.mxu1 %v4776_v20  ;;  %v4920_v18 = vor.u32 %v5630_v6, %v4917_v7  ;;  %v5064_v20 = vor.u32 %v5666_v9, %v5061_v11  ;;  %v2845_v25 = vpop.f32.mrf.mxu0 }
 0x1b6   :  { %3445 = vmatpush.bf16.msra.mxu0 %v5695_v16  ;;  %3145 = vmatpush.bf16.msrb.mxu2 %v5000_v17  ;;  %v5700_v16 = vld [vmem:[#allocation11 + $0x58] sm:$0xff] }
 0x1b7   :  { %3110 = vmatmul.bf16.vlgmr.msra.gmra.mxu3 %v6071_v59  ;;  %3138 = vmatmul.bf16.vlgmr.msrb.gmra.mxu1 %v6079_v13  ;;  %v2736_v59 = vadd.f32 %v6112_v58, %v1436_v37  ;;  %v2817_v13 = vpop.f32.mrf.mxu2  ;;  %v2762_v58 = vadd.f32 %v6114_v60, %v2748_v61 }
 0x1b8   :  { %3158 = vmatpush.bf16.msrb.mxu3 %v5144_v0  ;;  %3458 = vmatpush.bf16.msra.mxu1 %v5704_v29  ;;  %v5626_v0 = vld [vmem:[#allocation8 + $0x60c] sm:$0xf]  ;;  %v5689_v29 = vld [vmem:[#allocation11] sm:$0xff] }
 0x1b9   :  { %v2750_v2 = vadd.f32 %v6116_v12, %v2736_v59  ;;  %v2776_v8 = vadd.f32 %v6118_v19, %v2762_v58  ;;  %v1437_v59 = vperm.slane %v6124_v28, 1 }
 0x1ba   :  { %3446 = vmatpush.bf16.msra.mxu0 %v5694_v27  ;;  %3146 = vmatpush.bf16.msrb.mxu2 %v4984_v33  ;;  %v2831_v15 = vpop.f32.mrf.mxu3  ;;  %v5045_v27 = vld [vmem:[#allocation8 + $0x738] sm:$0xf0]  ;;  %v2859_v36 = vpop.f32.mrf.mxu1 }
 0x1bb   :  { %v2764_v35 = vadd.f32 %v2763_v31, %v2750_v2  ;;  %v2790_v60 = vadd.f32 %v6121_v24, %v2776_v8  ;;  %v5699_v31 = vld [vmem:[#allocation11 + $0x50] sm:$0xff]  ;;  %v4904_v24 = vor.u32 %v5626_v0, %v4901_v22  ;;  %v5048_v34 = vor.u32 %v5662_v26, %v5045_v27  ;;  %v5709_v0 = vld [vmem:[#allocation11 + $0xa0] sm:$0xff]  ;;  %v5708_v22 = vld [vmem:[#allocation11 + $0x98] sm:$0xff] }
 0x1bc   :  { %3159 = vmatpush.bf16.msrb.mxu3 %v5128_v53  ;;  %3459 = vmatpush.bf16.msra.mxu1 %v5703_v56  ;;  %v5698_v56 = vld [vmem:[#allocation11 + $0x48] sm:$0xff]  ;;  %v2847_v48 = vpop.f32.mrf.mxu0 }
 0x1bd   :  { %v2778_v12 = vadd.f32 %v2777_v50, %v2764_v35  ;;  %v2804_v19 = vadd.f32 %v6127_v38, %v2790_v60  ;;  %v5029_v38 = vld [vmem:[#allocation8 + $0x718] sm:$0xf0]  ;;  %v2848_v57 = vadd.f32 %v2847_v48, %v1437_v59 }
 0x1be   :  { %3447 = vmatpush.bf16.msra.mxu0 %v5693_v40  ;;  %3147 = vmatpush.bf16.msrb.mxu2 %v4968_v63  ;;  %v5032_v44 = vor.u32 %v5658_v39, %v5029_v38 }
 0x1bf   :  { %v2819_v17 = vpop.f32.mrf.mxu2  ;;  %v2792_v23 = vadd.f32 %v2791_v52, %v2778_v12  ;;  %v2818_v53 = vadd.f32 %v2817_v13, %v2804_v19  ;;  %v2846_v13 = vadd.f32 %v2845_v25, %v1437_v59  ;;  %v5707_v19 = vld [vmem:[#allocation11 + $0x90] sm:$0xff]  ;;  %v5706_v25 = vld [vmem:[#allocation11 + $0x88] sm:$0xff] }
 0x1c0   :  { %3160 = vmatpush.bf16.msrb.mxu3 %v5112_v43  ;;  %3460 = vmatpush.bf16.msra.mxu1 %v5702_v51 }
 0x1c1   :  { %v2806_v33 = vadd.f32 %v2805_v3, %v2792_v23  ;;  %v2832_v37 = vadd.f32 %v2831_v15, %v2818_v53  ;;  %v1438_v53 = vperm.slane %v6124_v28, 2 }
 0x1c2   :  { %3448 = vmatpush.bf16.msra.mxu0 %v5692_v49  ;;  %3148 = vmatpush.bf16.msrb.mxu2 %v4952_v54  ;;  %v2833_v40 = vpop.f32.mrf.mxu3  ;;  %v2861_v51 = vpop.f32.mrf.mxu1 }
 0x1c3   :  { %v2820_v32 = vadd.f32 %v2819_v17, %v2806_v33  ;;  %v3172_v45 = vmax.f32 %v2832_v37, 0.0  ;;  %v2862_v61 = vadd.f32 %v2861_v51, %v2848_v57  ;;  %v5711_v17 = vld [vmem:[#allocation11 + $0xb0] sm:$0xff] }
 0x1c4   :  { %3161 = vmatpush.bf16.msrb.mxu3 %v5096_v55  ;;  %3461 = vmatpush.bf16.msra.mxu1 %v5701_v1  ;;  %v2901_v54 = vpop.f32.mrf.mxu0  ;;  %v2860_v55 = vadd.f32 %v2859_v36, %v2846_v13 }
 0x1c5   :  { %v2834_v63 = vadd.f32 %v2833_v40, %v2820_v32 }
 0x1c6   :  { %3449 = vmatpush.bf16.msra.mxu0 %v5691_v62  ;;  %3149 = vmatpush.bf16.msrb.mxu2 %v4936_v4 }
 0x1c7   :  { %v2873_v43 = vpop.f32.mrf.mxu2  ;;  %v3176_v46 = vmax.f32 %v2834_v63, 0.0 }
 0x1c8   :  { %3162 = vmatpush.bf16.msrb.mxu3 %v5080_v5  ;;  %3462 = vmatpush.bf16.msra.mxu1 %v5700_v16 }
 0x1c9   :  { %v3180_v49 = vpack.c.bf16 %v3176_v46, %v3172_v45 }
 0x1ca   :  { %3450 = vmatpush.bf16.msra.mxu0 %v5690_v14  ;;  %3150 = vmatpush.bf16.msrb.mxu2 %v4920_v18  ;;  %v2887_v50 = vpop.f32.mrf.mxu3  ;;  %v2915_v21 = vpop.f32.mrf.mxu1  ;;  %v5712_v14 = vld [vmem:[#allocation11 + $0xb8] sm:$0xff] }
 0x1cc   :  { %3163 = vmatpush.bf16.msrb.mxu3 %v5064_v20  ;;  %3463 = vmatpush.bf16.msra.mxu1 %v5699_v31  ;;  %v2903_v3 = vpop.f32.mrf.mxu0  ;;  %v5710_v20 = vld [vmem:[#allocation11 + $0xa8] sm:$0xff] }
 0x1ce   :  { %3451 = vmatpush.bf16.msra.mxu0 %v5689_v29  ;;  %3151 = vmatpush.bf16.msrb.mxu2 %v4904_v24  ;;  %v5705_v29 = vld [vmem:[#allocation11 + $0x80] sm:$0xff] }
 0x1cf   :  { %v2875_v52 = vpop.f32.mrf.mxu2 }
 0x1d0   :  { %3164 = vmatpush.bf16.msrb.mxu3 %v5048_v34  ;;  %3464 = vmatpush.bf16.msra.mxu1 %v5698_v56  ;;  %v2876_v1 = vadd.f32 %v2875_v52, %v2862_v61  ;;  %v5720_v61 = vld [vmem:[#allocation11 + $0xf8] sm:$0xff] }
 0x1d1   :  { %3152 = vmatmul.bf16.vlgmr.msrb.gmra.mxu2 %v6086_v10  ;;  %3452 = vmatmul.bf16.vlgmr.msra.gmra.mxu0 %v3180_v49  ;;  %v2874_v10 = vadd.f32 %v2873_v43, %v2860_v55 }
 0x1d2   :  { %v2889_v41 = vpop.f32.mrf.mxu3  ;;  %v2917_v6 = vpop.f32.mrf.mxu1  ;;  %3472 = vmatpush.bf16.msra.mxu2 %v5712_v14 }
 0x1d3   :  { %v2888_v62 = vadd.f32 %v2887_v50, %v2874_v10  ;;  %v2890_v2 = vadd.f32 %v2889_v41, %v2876_v1 }
 0x1d4   :  { %3165 = vmatpush.bf16.msrb.mxu3 %v5032_v44  ;;  %3465 = vmatpush.bf16.msra.mxu1 %v5697_v47  ;;  %v2957_v23 = vpop.f32.mrf.mxu0 }
 0x1d5   :  { %v2902_v58 = vadd.f32 %v2901_v54, %v2888_v62  ;;  %v2904_v5 = vadd.f32 %v2903_v3, %v2890_v2  ;;  %v2958_v36 = vadd.f32 %v2957_v23, %v1438_v53  ;;  %v5718_v2 = vld [vmem:[#allocation11 + $0xe8] sm:$0xff]  ;;  %v5716_v3 = vld [vmem:[#allocation11 + $0xd8] sm:$0xff] }
 0x1d6   :  { %3473 = vmatpush.bf16.msra.mxu2 %v5711_v17 }
 0x1d7   :  { %3166 = vmatmul.bf16.vlgmr.msrb.gmra.mxu3 %v6090_v42  ;;  %v2929_v30 = vpop.f32.mrf.mxu2  ;;  %v2916_v42 = vadd.f32 %v2915_v21, %v2902_v58  ;;  %v2918_v35 = vadd.f32 %v2917_v6, %v2904_v5  ;;  %v5719_v21 = vld [vmem:[#allocation11 + $0xf0] sm:$0xff]  ;;  %v5717_v58 = vld [vmem:[#allocation11 + $0xe0] sm:$0xff] }
 0x1d8   :  { %3486 = vmatpush.bf16.msra.mxu3 %v5720_v61 }
 0x1d9   :  { %v2930_v8 = vadd.f32 %v2929_v30, %v2916_v42  ;;  %v5714_v42 = vld [vmem:[#allocation11 + $0xc8] sm:$0xff] }
 0x1da   :  { %v2943_v4 = vpop.f32.mrf.mxu3  ;;  %3474 = vmatpush.bf16.msra.mxu2 %v5710_v20  ;;  %v2971_v26 = vpop.f32.mrf.mxu1 }
 0x1db   :  { %v2944_v9 = vadd.f32 %v2943_v4, %v2930_v8  ;;  %v2972_v32 = vadd.f32 %v2971_v26, %v2958_v36  ;;  %v5715_v4 = vld [vmem:[#allocation11 + $0xd0] sm:$0xff]  ;;  %v5713_v8 = vld [vmem:[#allocation11 + $0xc0] sm:$0xff] }
 0x1dc   :  { %v2959_v31 = vpop.f32.mrf.mxu0  ;;  %3487 = vmatpush.bf16.msra.mxu3 %v5719_v21 }
 0x1dd   :  { %v3173_v12 = vmax.f32 %v2944_v9, 0.0  ;;  %v2960_v39 = vadd.f32 %v2959_v31, %v1438_v53 }
 0x1de   :  { %3475 = vmatpush.bf16.msra.mxu2 %v5709_v0 }
 0x1df   :  { %v2931_v7 = vpop.f32.mrf.mxu2 }
 0x1e0   :  { %v2932_v11 = vadd.f32 %v2931_v7, %v2918_v35  ;;  %3488 = vmatpush.bf16.msra.mxu3 %v5718_v2 }
 0x1e2   :  { %v2945_v15 = vpop.f32.mrf.mxu3  ;;  %3476 = vmatpush.bf16.msra.mxu2 %v5708_v22  ;;  %v2973_v24 = vpop.f32.mrf.mxu1 }
 0x1e3   :  { %v2946_v16 = vadd.f32 %v2945_v15, %v2932_v11  ;;  %v2974_v40 = vadd.f32 %v2973_v24, %v2960_v39  ;;  %v1439_v11 = vperm.slane %v6124_v28, 3 }
 0x1e4   :  { %3489 = vmatpush.bf16.msra.mxu3 %v5717_v58 }
 0x1e5   :  { %v3177_v60 = vmax.f32 %v2946_v16, 0.0 }
 0x1e6   :  { %3477 = vmatpush.bf16.msra.mxu2 %v5707_v19 }
 0x1e7   :  { %v3181_v18 = vpack.c.bf16 %v3177_v60, %v3173_v12 }
 0x1e8   :  { %3490 = vmatpush.bf16.msra.mxu3 %v5716_v3 }
 0x1e9   :  { %3466 = vmatmul.bf16.vlgmr.msra.gmra.mxu1 %v3181_v18 }
 0x1ea   :  { %3478 = vmatpush.bf16.msra.mxu2 %v5706_v25 }
 0x1ec   :  { %3491 = vmatpush.bf16.msra.mxu3 %v5715_v4 }
 0x1ee   :  { %3479 = vmatpush.bf16.msra.mxu2 %v5705_v29  ;;  %v3013_v37 = vpop.f32.mrf.mxu0 }
 0x1f0   :  { %3492 = vmatpush.bf16.msra.mxu3 %v5714_v42 }
 0x1f4   :  { %v2985_v27 = vpop.f32.mrf.mxu2  ;;  %v3027_v63 = vpop.f32.mrf.mxu1  ;;  %3493 = vmatpush.bf16.msra.mxu3 %v5713_v8 }
 0x1f5   :  { %v2986_v56 = vadd.f32 %v2985_v27, %v2972_v32 }
 0x1f6   :  { %v3015_v48 = vpop.f32.mrf.mxu0 }
 0x1fa   :  { %v2999_v33 = vpop.f32.mrf.mxu3 }
 0x1fb   :  { %v3000_v43 = vadd.f32 %v2999_v33, %v2986_v56 }
 0x1fc   :  { %v2987_v34 = vpop.f32.mrf.mxu2  ;;  %v3029_v59 = vpop.f32.mrf.mxu1 }
 0x1fd   :  { %v2988_v44 = vadd.f32 %v2987_v34, %v2974_v40  ;;  %v3014_v47 = vadd.f32 %v3013_v37, %v3000_v43  ;;  %v5728_v43 = vld [vmem:[#allocation13 + $0x38] sm:$0xff] }
 0x1fe   :  { %3571 = vmatpush.bf16.msrb.mxu0 %v5728_v43 }
 0x1ff   :  { %v3028_v51 = vadd.f32 %v3027_v63, %v3014_v47  ;;  %v5724_v47 = vld [vmem:[#allocation13 + $0x18] sm:$0xff] }
 0x202   :  { %v3001_v38 = vpop.f32.mrf.mxu3 }
 0x203   :  { %v3002_v46 = vadd.f32 %v3001_v38, %v2988_v44  ;;  %v5727_v44 = vld [vmem:[#allocation13 + $0x30] sm:$0xff] }
 0x204   :  { %3572 = vmatpush.bf16.msrb.mxu0 %v5727_v44 }
 0x205   :  { %v3016_v50 = vadd.f32 %v3015_v48, %v3002_v46  ;;  %v5725_v46 = vld [vmem:[#allocation13 + $0x20] sm:$0xff]  ;;  %v5723_v48 = vld [vmem:[#allocation13 + $0x10] sm:$0xff] }
 0x207   :  { %v3030_v54 = vadd.f32 %v3029_v59, %v3016_v50  ;;  %v5721_v50 = vld [vmem:[#allocation13] sm:$0xff] }
 0x20e   :  { %v3069_v5 = vpop.f32.mrf.mxu0 }
 0x20f   :  { %v3070_v16 = vadd.f32 %v3069_v5, %v1439_v11 }
 0x214   :  { %v3041_v45 = vpop.f32.mrf.mxu2  ;;  %v3083_v6 = vpop.f32.mrf.mxu1 }
 0x215   :  { %v3042_v13 = vadd.f32 %v3041_v45, %v3028_v51  ;;  %v3084_v60 = vadd.f32 %v3083_v6, %v3070_v16  ;;  %v5726_v45 = vld [vmem:[#allocation13 + $0x28] sm:$0xff]  ;;  %v5746_v6 = vld [vmem:[%s6161_s8] ss:$0 sm:$0xff] }
 0x216   :  { %v3071_v35 = vpop.f32.mrf.mxu0  ;;  %3573 = vmatpush.bf16.msrb.mxu0 %v5726_v45 }
 0x217   :  { %v3072_v17 = vadd.f32 %v3071_v35, %v1439_v11 }
 0x21a   :  { %v3055_v49 = vpop.f32.mrf.mxu3  ;;  %3574 = vmatpush.bf16.msrb.mxu0 %v5725_v46 }
 0x21b   :  { %v3056_v55 = vadd.f32 %v3055_v49, %v3042_v13  ;;  %v5722_v49 = vld [vmem:[#allocation13 + $0x8] sm:$0xff]  ;;  %v5745_v13 = vld [vmem:[%s6159_s6] ss:$0 sm:$0xff]  ;;  %s5962_s6 = smov [#allocation14]  }
 0x21c   :  { %v3043_v52 = vpop.f32.mrf.mxu2  ;;  %v3085_v14 = vpop.f32.mrf.mxu1  ;;  %s3591_s25 = sshll.u32 %s5962_s6, 4  ;;  %s3592_s25 = int_to_ptr.vmem [resolvable:$true] %s3591_s25 }
 0x21d   :  { %v3044_v57 = vadd.f32 %v3043_v52, %v3030_v54  ;;  %v3174_v30 = vmax.f32 %v3056_v55, 0.0  ;;  %v3086_v20 = vadd.f32 %v3085_v14, %v3072_v17 }
 0x21e   :  { %3575 = vmatpush.bf16.msrb.mxu0 %v5724_v47 }
 0x222   :  { %v3057_v41 = vpop.f32.mrf.mxu3  ;;  %3576 = vmatpush.bf16.msrb.mxu0 %v5723_v48 }
 0x223   :  { %v3058_v10 = vadd.f32 %v3057_v41, %v3044_v57 }
 0x225   :  { %v3178_v62 = vmax.f32 %v3058_v10, 0.0 }
 0x226   :  { %3577 = vmatpush.bf16.msrb.mxu0 %v5722_v49 }
 0x227   :  { %v3182_v1 = vpack.c.bf16 %v3178_v62, %v3174_v30 }
 0x229   :  { %3480 = vmatmul.bf16.vlgmr.msra.gmra.mxu2 %v3182_v1 }
 0x22a   :  { %3578 = vmatpush.bf16.msrb.mxu0 %v5721_v50 }
 0x22e   :  { %v3125_v12 = vpop.f32.mrf.mxu0 }
 0x234   :  { %v3097_v7 = vpop.f32.mrf.mxu2  ;;  %v3139_v22 = vpop.f32.mrf.mxu1 }
 0x235   :  { %v3098_v0 = vadd.f32 %v3097_v7, %v3084_v60 }
 0x236   :  { %v3127_v29 = vpop.f32.mrf.mxu0 }
 0x23a   :  { %v3111_v9 = vpop.f32.mrf.mxu3 }
 0x23b   :  { %v3112_v19 = vadd.f32 %v3111_v9, %v3098_v0 }
 0x23c   :  { %v3099_v15 = vpop.f32.mrf.mxu2  ;;  %v3141_v28 = vpop.f32.mrf.mxu1 }
 0x23d   :  { %v3100_v23 = vadd.f32 %v3099_v15, %v3086_v20  ;;  %v3126_v27 = vadd.f32 %v3125_v12, %v3112_v19 }
 0x23f   :  { %v3140_v53 = vadd.f32 %v3139_v22, %v3126_v27 }
 0x242   :  { %v3113_v18 = vpop.f32.mrf.mxu3 }
 0x243   :  { %v3114_v26 = vadd.f32 %v3113_v18, %v3100_v23 }
 0x245   :  { %v3128_v33 = vadd.f32 %v3127_v29, %v3114_v26 }
 0x247   :  { %v3142_v36 = vadd.f32 %v3141_v28, %v3128_v33 }
 0x24e   :  { %v3453_v51 = vpop.f32.mrf.mxu0 }
 0x24f   :  { %v3454_v57 = vadd.f32 %v5745_v13, %v3453_v51 }
 0x254   :  { %v3153_v25 = vpop.f32.mrf.mxu2 }
 0x255   :  { %v3154_v34 = vadd.f32 %v3153_v25, %v3140_v53 }
 0x256   :  { %v3455_v54 = vpop.f32.mrf.mxu0 }
 0x257   :  { %v3456_v61 = vadd.f32 %v5745_v13, %v3455_v54 }
 0x25a   :  { %v3167_v31 = vpop.f32.mrf.mxu3 }
 0x25b   :  { %v3168_v37 = vadd.f32 %v3167_v31, %v3154_v34 }
 0x25c   :  { %v3155_v24 = vpop.f32.mrf.mxu2 }
 0x25d   :  { %v3156_v32 = vadd.f32 %v3155_v24, %v3142_v36  ;;  %v3175_v40 = vmax.f32 %v3168_v37, 0.0 }
 0x262   :  { %v3169_v39 = vpop.f32.mrf.mxu3 }
 0x263   :  { %v3170_v38 = vadd.f32 %v3169_v39, %v3156_v32 }
 0x265   :  { %v3179_v56 = vmax.f32 %v3170_v38, 0.0 }
 0x266   :  { %v3467_v59 = vpop.f32.mrf.mxu1 }
 0x267   :  { %v3183_v63 = vpack.c.bf16 %v3179_v56, %v3175_v40  ;;  %v3468_v10 = vadd.f32 %v3467_v59, %v3454_v57 }
 0x269   :  { %3494 = vmatmul.bf16.vlgmr.msra.gmra.mxu3 %v3183_v63 }
 0x26e   :  { %v3469_v41 = vpop.f32.mrf.mxu1 }
 0x26f   :  { %v3470_v30 = vadd.f32 %v3469_v41, %v3456_v61 }
 0x2ac   :  { %v3481_v52 = vpop.f32.mrf.mxu2 }
 0x2ad   :  { %v3482_v62 = vadd.f32 %v3481_v52, %v3468_v10 }
 0x2b4   :  { %v3483_v21 = vpop.f32.mrf.mxu2 }
 0x2b5   :  { %v3484_v1 = vadd.f32 %v3483_v21, %v3470_v30 }
 0x2ec   :  { %v3495_v55 = vpop.f32.mrf.mxu3 }
 0x2ed   :  { %v3496_v2 = vadd.f32 %v3495_v55, %v3482_v62 }
 0x2ef   :  { %v3500_v4 = vmax.f32 %v3496_v2, 0.0 }
 0x2f4   :  { %v3497_v58 = vpop.f32.mrf.mxu3 }
 0x2f5   :  { %v3498_v3 = vadd.f32 %v3497_v58, %v3484_v1 }
 0x2f7   :  { %v3501_v5 = vmax.f32 %v3498_v3, 0.0 }
 0x2f9   :  { %v3502_v42 = vpack.c.bf16 %v3501_v5, %v3500_v4 }
 0x2fb   :  { %3579 = vmatmul.bf16.vlgmr.msrb.gmra.mxu0 %v3502_v42 }
 0x378   :  { %v3580_v7 = vpop.f32.mrf.mxu0 }
 0x379   :  { %v3581_v8 = vadd.f32 %v5746_v6, %v3580_v7 }
 0x37b   :  { %3585 = vst [vmem:[#allocation14] sm:$0xff] %v3581_v8 }
 0x380   :  { %v3582_v35 = vpop.f32.mrf.mxu0 }
 0x381   :  { %v3583_v9 = vadd.f32 %v5746_v6, %v3582_v35 }
 0x383   :  { %3586 = vst [vmem:[#allocation14 + $0x8] sm:$0xff] %v3583_v9 }
 0x384   :  { %3599 = dma.vmem_to_hbm [thread:$0]  %s3592_s25, 256, %s3594_s28, [#allocation4], %s5963_s29, %s5963_s29, %s5964_s3  }
 0x385   :  { %5947 = dma.done.wait [#allocation4], 256  }
 0x386   :  { %5948 = vsyncadd [#allocation4], 4294967040 }
 0x387   :  { %3604 = vsyncpa [#allocation3], 1 }
 0x388   :  { %3605 = vsyncpa [#allocation6], 1 }
 0x389   :  { %3606 = vsyncpa [#allocation9], 1 }
 0x38a   :  { %3607 = vsyncpa [#allocation12], 1 }
 0x38b   :  { %3608 = vsyncpa [#allocation4], 1 }

</bundles_post_ra>
